<compile_context>
chip_gen: v7x
topology: tpu7x:2x2x1
jax: 0.10.0
libtpu: 0.0.40
codegen_flags: <defaults>
</compile_context>

<pallas_src>
import math
from functools import partial

import jax
import jax.numpy as jnp
from jax.experimental import pallas as pl
from jax.experimental.pallas import tpu as pltpu


def _conv_surface_kernel(dirn_ref, sdir_ref, out_ref, *,
                         support_num, k_pad, lane_chunk):
    """One (batch, V-tile) grid step.

    dirn_ref : (1, 3, N, TILE_V) f32  pre-normalized neighbor directions (V on lanes)
    sdir_ref : (S*K_pad, 3)      f32  column-normalized support directions ((s,k) row-major)
    out_ref  : (1, K_pad, TILE_V) f32 lane-dense output (K on sublanes, V on lanes)
    """
    _, _, N, TILE_V = dirn_ref.shape
    S, K, C = support_num, k_pad, lane_chunk

    # Full unroll for small neighbor counts keeps LLO visibility; partial unroll
    # bounds code size / live ranges for production-sized N.
    n_unroll = True if N <= 32 else 4

    # Static lane-chunk loop: bounds the vreg working set (~50 vregs at K=32, C=256)
    # so the carry + hoisted broadcasts never spill, while the grid tile stays large.
    for c0 in range(0, TILE_V, C):
        feat = jnp.zeros((K, C), jnp.float32)
        for s in range(S):                       # static; support_num is small
            base = s * K
            # Loop-invariant lane broadcasts of this support group's directions,
            # hoisted out of the neighbor loop.
            sdx = jnp.broadcast_to(sdir_ref[base:base + K, 0:1], (K, C))
            sdy = jnp.broadcast_to(sdir_ref[base:base + K, 1:2], (K, C))
            sdz = jnp.broadcast_to(sdir_ref[base:base + K, 2:3], (K, C))

            def body(n, tmax):
                # One neighbor row per xyz plane: (1, C), V stays on lanes.
                ndx = dirn_ref[0, 0, pl.ds(n, 1), c0:c0 + C]
                ndy = dirn_ref[0, 1, pl.ds(n, 1), c0:c0 + C]
                ndz = dirn_ref[0, 2, pl.ds(n, 1), c0:c0 + C]
                # theta[k, v] = <dir_norm[v], support_dir[s, k]> via VPU broadcast FMAs.
                theta = jnp.maximum(ndx * sdx + ndy * sdy + ndz * sdz, 0.0)  # ReLU
                return jnp.maximum(tmax, theta)          # running max over neighbors

            # ReLU makes every theta >= 0, so 0 is a valid identity for the max.
            tmax = jax.lax.fori_loop(0, N, body, jnp.zeros((K, C), jnp.float32),
                                     unroll=n_unroll)
            feat = feat + tmax                           # sum over the support axis

        out_ref[0, :, c0:c0 + C] = feat.astype(out_ref.dtype)   # aligned, unmasked store


def conv_surface_forward(neighbor_index, vertices, directions, *,
                         support_num, kernel_num):
    """Pallas implementation of Conv_surface.forward.

    neighbor_index : (B, V, N) int32
    vertices       : (B, V, 3) float32
    directions     : (3, support_num * kernel_num) float32 (module parameter)
    returns        : (B, V, kernel_num) float32
    """
    B, V, N = neighbor_index.shape
    SK = support_num * kernel_num
    assert directions.shape == (3, SK)

    # Sublane-align the kernel axis (padded columns are zero -> contribute nothing).
    K_pad = ((kernel_num + 7) // 8) * 8
    SK_pad = support_num * K_pad

    # Lane-align V by padding (padded vertices are sliced off at the end).
    V_pad = ((V + 127) // 128) * 128
    tile_v = 128
    for cand in (512, 256, 128):
        if V_pad % cand == 0:
            tile_v = cand
            break
    # v7x megacore: keep at least two grid steps when possible.
    while B * (V_pad // tile_v) < 2 and tile_v > 128:
        tile_v //= 2
    lane_chunk = min(256 if K_pad <= 32 else 128, tile_v)

    # --- glue: F.normalize(directions, dim=0), pad K to x8, transpose to (SK_pad, 3) ---
    dnorm = jnp.sqrt(jnp.sum(directions * directions, axis=0, keepdims=True))
    sdirs = (directions / jnp.maximum(dnorm, 1e-12)).astype(jnp.float32)    # (3, SK)
    sdirs = sdirs.reshape(3, support_num, kernel_num)
    if K_pad != kernel_num:
        sdirs = jnp.pad(sdirs, ((0, 0), (0, 0), (0, K_pad - kernel_num)))
    sdirs_t = sdirs.reshape(3, SK_pad).T                                    # (SK_pad, 3)

    # --- glue: gather + direction + F.normalize(dir, dim=-1), produced directly in the
    #     kernel's (B, 3, N, V_pad) lane-dense layout (no extra transpose pass; the
    #     normalization fuses into the same memory-bound pass).
    # TODO(synk): fuse this gather into the kernel (vertices resident in VMEM +
    #             neighbor_index scalar prefetch) to drop this HBM intermediate entirely.
    verts = vertices.astype(jnp.float32)
    idx = neighbor_index
    if V_pad != V:
        verts = jnp.pad(verts, ((0, 0), (0, V_pad - V), (0, 0)))
        idx = jnp.pad(idx, ((0, 0), (0, V_pad - V), (0, 0)))
    verts_t = jnp.transpose(verts, (0, 2, 1))                     # (B, 3, V_pad)  (tiny)
    idx_t = jnp.transpose(idx, (0, 2, 1))                         # (B, N, V_pad)  (tiny)
    gathered = jax.vmap(lambda vt, it: vt[:, it])(verts_t, idx_t)  # (B, 3, N, V_pad)
    direction = gathered - verts_t[:, :, None, :]
    nrm = jnp.sqrt(jnp.sum(direction * direction, axis=1, keepdims=True))
    dir_norm = direction / jnp.maximum(nrm, 1e-12)                 # F.normalize semantics

    kernel = partial(_conv_surface_kernel, support_num=support_num,
                     k_pad=K_pad, lane_chunk=lane_chunk)

    # Tight-but-safe VMEM budget: double-buffered blocks + slack for internal scratch.
    in_block = 3 * N * tile_v * 4
    dirs_block = max(SK_pad, 8) * 128 * 4
    out_block = K_pad * tile_v * 4
    vmem_limit = int(max(4 * (in_block + dirs_block + out_block) + (2 << 20), 4 << 20))

    cost = pl.CostEstimate(
        flops=7 * B * V_pad * N * SK_pad,
        transcendentals=0,
        bytes_accessed=dir_norm.size * 4 + sdirs_t.size * 4 + B * K_pad * V_pad * 4,
    )

    out_kv = pl.pallas_call(
        kernel,
        out_shape=jax.ShapeDtypeStruct((B, K_pad, V_pad), jnp.float32),
        grid=(B, V_pad // tile_v),
        in_specs=[
            pl.BlockSpec((1, 3, N, tile_v), lambda b, vt: (b, 0, 0, vt)),
            pl.BlockSpec((SK_pad, 3), lambda b, vt: (0, 0)),
        ],
        out_specs=pl.BlockSpec((1, K_pad, tile_v), lambda b, vt: (b, 0, vt)),
        compiler_params=pltpu.CompilerParams(
            dimension_semantics=("parallel", "parallel"),
            vmem_limit_bytes=vmem_limit),
        cost_estimate=cost,
    )(dir_norm, sdirs_t)                                           # (B, K_pad, V_pad)

    # TODO(synk): keep the lane-dense (B, K, V) layout for the downstream consumer (or
    #             fuse this transpose into it) to remove this extra HBM pass.
    out = jnp.transpose(out_kv, (0, 2, 1))                         # (B, V_pad, K_pad)
    if V_pad != V or K_pad != kernel_num:
        out = out[:, :V, :kernel_num]
    return out


def conv_surface_reference(neighbor_index, vertices, directions, *,
                           support_num, kernel_num):
    """Pure-JAX reference (float32) mirroring the PyTorch forward."""
    neighbors = jax.vmap(lambda verts, idx: verts[idx])(vertices, neighbor_index)
    direction = neighbors - vertices[:, :, None, :]
    nrm = jnp.linalg.norm(direction, axis=-1, keepdims=True)
    dir_norm = direction / jnp.maximum(nrm, 1e-12)
    sd = directions / jnp.maximum(
        jnp.linalg.norm(directions, axis=0, keepdims=True), 1e-12)
    theta = jnp.maximum(dir_norm @ sd, 0.0)
    B, V, N = neighbor_index.shape
    theta = theta.reshape(B, V, N, support_num, kernel_num)
    theta = jnp.max(theta, axis=2)
    return jnp.sum(theta, axis=2)


if __name__ == "__main__":
    # Small, deterministic shapes consistent with the module.
    bs, vertice_num, neighbor_num = 2, 64, 8
    kernel_num, support_num = 32, 4

    key = jax.random.PRNGKey(0)
    k_vert, k_idx, k_dir = jax.random.split(key, 3)

    vertices = jax.random.normal(k_vert, (bs, vertice_num, 3), dtype=jnp.float32)
    neighbor_index = jax.random.randint(
        k_idx, (bs, vertice_num, neighbor_num), 0, vertice_num, dtype=jnp.int32)

    # Parameter init exactly as Conv_surface.initialize(): uniform(-stdv, stdv)
    stdv = 1.0 / math.sqrt(support_num * kernel_num)
    directions = jax.random.uniform(
        k_dir, (3, support_num * kernel_num), dtype=jnp.float32,
        minval=-stdv, maxval=stdv)

    out = conv_surface_forward(neighbor_index, vertices, directions,
                               support_num=support_num, kernel_num=kernel_num)
    out = jax.block_until_ready(out)

    ref = conv_surface_reference(neighbor_index, vertices, directions,
                                 support_num=support_num, kernel_num=kernel_num)
    assert out.shape == (bs, vertice_num, kernel_num)
    assert jnp.allclose(out, ref, atol=1e-4, rtol=1e-4), "mismatch vs reference"

    print("KERNEL_OK")
</pallas_src>

<mosaic_0001>
module attributes {stable_mosaic.version = 11 : i64} {
  func.func @_conv_surface_kernel(%arg0: i32, %arg1: i32, %arg2: memref<1x3x8x128xf32, #tpu.memory_space<vmem>>, %arg3: memref<128x3xf32, #tpu.memory_space<vmem>>, %arg4: memref<1x32x128xf32, #tpu.memory_space<vmem>>) attributes {dimension_semantics = [#tpu.dimension_semantics<parallel>, #tpu.dimension_semantics<parallel>], iteration_bounds = array<i64: 2, 1>, scalar_prefetch = 0 : i64, scratch_operands = 0 : i64, tpu.core_type = #tpu.core_type<tc>, window_params = [{transform_indices = @transform_0, window_bounds = array<i64: 1, 3, 8, 128>}, {pipeline_mode = #tpu.pipeline_mode<synchronous>, transform_indices = @transform_1, window_bounds = array<i64: 128, 3>}, {transform_indices = @transform_2, window_bounds = array<i64: 1, 32, 128>}]} {
    %cst = arith.constant 0.000000e+00 : f32
    %0 = vector.broadcast %cst : f32 to vector<32x128xf32>
    %c0 = arith.constant 0 : index
    %c0_0 = arith.constant 0 : index
    %1 = vector.load %arg3[%c0, %c0_0] : memref<128x3xf32, #tpu.memory_space<vmem>>, vector<32x1xf32>
    %2 = vector.shape_cast %1 : vector<32x1xf32> to vector<32x1xf32>
    %3 = vector.broadcast %2 : vector<32x1xf32> to vector<32x128xf32>
    %c0_1 = arith.constant 0 : index
    %c1 = arith.constant 1 : index
    %4 = vector.load %arg3[%c0_1, %c1] : memref<128x3xf32, #tpu.memory_space<vmem>>, vector<32x1xf32>
    %5 = vector.shape_cast %4 : vector<32x1xf32> to vector<32x1xf32>
    %6 = vector.broadcast %5 : vector<32x1xf32> to vector<32x128xf32>
    %c0_2 = arith.constant 0 : index
    %c2 = arith.constant 2 : index
    %7 = vector.load %arg3[%c0_2, %c2] : memref<128x3xf32, #tpu.memory_space<vmem>>, vector<32x1xf32>
    %8 = vector.shape_cast %7 : vector<32x1xf32> to vector<32x1xf32>
    %9 = vector.broadcast %8 : vector<32x1xf32> to vector<32x128xf32>
    %cst_3 = arith.constant 0.000000e+00 : f32
    %10 = vector.broadcast %cst_3 : f32 to vector<32x128xf32>
    %c0_i32 = arith.constant 0 : i32
    %c0_4 = arith.constant 0 : index
    %c0_5 = arith.constant 0 : index
    %11 = arith.index_cast %c0_i32 : i32 to index
    %c0_6 = arith.constant 0 : index
    %12 = vector.load %arg2[%c0_4, %c0_5, %11, %c0_6] : memref<1x3x8x128xf32, #tpu.memory_space<vmem>>, vector<1x1x1x128xf32>
    %13 = vector.shape_cast %12 : vector<1x1x1x128xf32> to vector<1x128xf32>
    %c0_7 = arith.constant 0 : index
    %c1_8 = arith.constant 1 : index
    %14 = arith.index_cast %c0_i32 : i32 to index
    %c0_9 = arith.constant 0 : index
    %15 = vector.load %arg2[%c0_7, %c1_8, %14, %c0_9] : memref<1x3x8x128xf32, #tpu.memory_space<vmem>>, vector<1x1x1x128xf32>
    %16 = vector.shape_cast %15 : vector<1x1x1x128xf32> to vector<1x128xf32>
    %c0_10 = arith.constant 0 : index
    %c2_11 = arith.constant 2 : index
    %17 = arith.index_cast %c0_i32 : i32 to index
    %c0_12 = arith.constant 0 : index
    %18 = vector.load %arg2[%c0_10, %c2_11, %17, %c0_12] : memref<1x3x8x128xf32, #tpu.memory_space<vmem>>, vector<1x1x1x128xf32>
    %19 = vector.shape_cast %18 : vector<1x1x1x128xf32> to vector<1x128xf32>
    %20 = vector.broadcast %13 : vector<1x128xf32> to vector<32x128xf32>
    %21 = arith.mulf %20, %3 : vector<32x128xf32>
    %22 = vector.broadcast %16 : vector<1x128xf32> to vector<32x128xf32>
    %23 = arith.mulf %22, %6 : vector<32x128xf32>
    %24 = arith.addf %21, %23 : vector<32x128xf32>
    %25 = vector.broadcast %19 : vector<1x128xf32> to vector<32x128xf32>
    %26 = arith.mulf %25, %9 : vector<32x128xf32>
    %27 = arith.addf %24, %26 : vector<32x128xf32>
    %cst_13 = arith.constant 0.000000e+00 : f32
    %28 = vector.broadcast %cst_13 : f32 to vector<32x128xf32>
    %29 = arith.maximumf %27, %28 : vector<32x128xf32>
    %30 = arith.maximumf %10, %29 : vector<32x128xf32>
    %c1_i32 = arith.constant 1 : i32
    %c0_14 = arith.constant 0 : index
    %c0_15 = arith.constant 0 : index
    %31 = arith.index_cast %c1_i32 : i32 to index
    %c0_16 = arith.constant 0 : index
    %32 = vector.load %arg2[%c0_14, %c0_15, %31, %c0_16] : memref<1x3x8x128xf32, #tpu.memory_space<vmem>>, vector<1x1x1x128xf32>
    %33 = vector.shape_cast %32 : vector<1x1x1x128xf32> to vector<1x128xf32>
    %c0_17 = arith.constant 0 : index
    %c1_18 = arith.constant 1 : index
    %34 = arith.index_cast %c1_i32 : i32 to index
    %c0_19 = arith.constant 0 : index
    %35 = vector.load %arg2[%c0_17, %c1_18, %34, %c0_19] : memref<1x3x8x128xf32, #tpu.memory_space<vmem>>, vector<1x1x1x128xf32>
    %36 = vector.shape_cast %35 : vector<1x1x1x128xf32> to vector<1x128xf32>
    %c0_20 = arith.constant 0 : index
    %c2_21 = arith.constant 2 : index
    %37 = arith.index_cast %c1_i32 : i32 to index
    %c0_22 = arith.constant 0 : index
    %38 = vector.load %arg2[%c0_20, %c2_21, %37, %c0_22] : memref<1x3x8x128xf32, #tpu.memory_space<vmem>>, vector<1x1x1x128xf32>
    %39 = vector.shape_cast %38 : vector<1x1x1x128xf32> to vector<1x128xf32>
    %40 = vector.broadcast %33 : vector<1x128xf32> to vector<32x128xf32>
    %41 = arith.mulf %40, %3 : vector<32x128xf32>
    %42 = vector.broadcast %36 : vector<1x128xf32> to vector<32x128xf32>
    %43 = arith.mulf %42, %6 : vector<32x128xf32>
    %44 = arith.addf %41, %43 : vector<32x128xf32>
    %45 = vector.broadcast %39 : vector<1x128xf32> to vector<32x128xf32>
    %46 = arith.mulf %45, %9 : vector<32x128xf32>
    %47 = arith.addf %44, %46 : vector<32x128xf32>
    %cst_23 = arith.constant 0.000000e+00 : f32
    %48 = vector.broadcast %cst_23 : f32 to vector<32x128xf32>
    %49 = arith.maximumf %47, %48 : vector<32x128xf32>
    %50 = arith.maximumf %30, %49 : vector<32x128xf32>
    %c2_i32 = arith.constant 2 : i32
    %c0_24 = arith.constant 0 : index
    %c0_25 = arith.constant 0 : index
    %51 = arith.index_cast %c2_i32 : i32 to index
    %c0_26 = arith.constant 0 : index
    %52 = vector.load %arg2[%c0_24, %c0_25, %51, %c0_26] : memref<1x3x8x128xf32, #tpu.memory_space<vmem>>, vector<1x1x1x128xf32>
    %53 = vector.shape_cast %52 : vector<1x1x1x128xf32> to vector<1x128xf32>
    %c0_27 = arith.constant 0 : index
    %c1_28 = arith.constant 1 : index
    %54 = arith.index_cast %c2_i32 : i32 to index
    %c0_29 = arith.constant 0 : index
    %55 = vector.load %arg2[%c0_27, %c1_28, %54, %c0_29] : memref<1x3x8x128xf32, #tpu.memory_space<vmem>>, vector<1x1x1x128xf32>
    %56 = vector.shape_cast %55 : vector<1x1x1x128xf32> to vector<1x128xf32>
    %c0_30 = arith.constant 0 : index
    %c2_31 = arith.constant 2 : index
    %57 = arith.index_cast %c2_i32 : i32 to index
    %c0_32 = arith.constant 0 : index
    %58 = vector.load %arg2[%c0_30, %c2_31, %57, %c0_32] : memref<1x3x8x128xf32, #tpu.memory_space<vmem>>, vector<1x1x1x128xf32>
    %59 = vector.shape_cast %58 : vector<1x1x1x128xf32> to vector<1x128xf32>
    %60 = vector.broadcast %53 : vector<1x128xf32> to vector<32x128xf32>
    %61 = arith.mulf %60, %3 : vector<32x128xf32>
    %62 = vector.broadcast %56 : vector<1x128xf32> to vector<32x128xf32>
    %63 = arith.mulf %62, %6 : vector<32x128xf32>
    %64 = arith.addf %61, %63 : vector<32x128xf32>
    %65 = vector.broadcast %59 : vector<1x128xf32> to vector<32x128xf32>
    %66 = arith.mulf %65, %9 : vector<32x128xf32>
    %67 = arith.addf %64, %66 : vector<32x128xf32>
    %cst_33 = arith.constant 0.000000e+00 : f32
    %68 = vector.broadcast %cst_33 : f32 to vector<32x128xf32>
    %69 = arith.maximumf %67, %68 : vector<32x128xf32>
    %70 = arith.maximumf %50, %69 : vector<32x128xf32>
    %c3_i32 = arith.constant 3 : i32
    %c0_34 = arith.constant 0 : index
    %c0_35 = arith.constant 0 : index
    %71 = arith.index_cast %c3_i32 : i32 to index
    %c0_36 = arith.constant 0 : index
    %72 = vector.load %arg2[%c0_34, %c0_35, %71, %c0_36] : memref<1x3x8x128xf32, #tpu.memory_space<vmem>>, vector<1x1x1x128xf32>
    %73 = vector.shape_cast %72 : vector<1x1x1x128xf32> to vector<1x128xf32>
    %c0_37 = arith.constant 0 : index
    %c1_38 = arith.constant 1 : index
    %74 = arith.index_cast %c3_i32 : i32 to index
    %c0_39 = arith.constant 0 : index
    %75 = vector.load %arg2[%c0_37, %c1_38, %74, %c0_39] : memref<1x3x8x128xf32, #tpu.memory_space<vmem>>, vector<1x1x1x128xf32>
    %76 = vector.shape_cast %75 : vector<1x1x1x128xf32> to vector<1x128xf32>
    %c0_40 = arith.constant 0 : index
    %c2_41 = arith.constant 2 : index
    %77 = arith.index_cast %c3_i32 : i32 to index
    %c0_42 = arith.constant 0 : index
    %78 = vector.load %arg2[%c0_40, %c2_41, %77, %c0_42] : memref<1x3x8x128xf32, #tpu.memory_space<vmem>>, vector<1x1x1x128xf32>
    %79 = vector.shape_cast %78 : vector<1x1x1x128xf32> to vector<1x128xf32>
    %80 = vector.broadcast %73 : vector<1x128xf32> to vector<32x128xf32>
    %81 = arith.mulf %80, %3 : vector<32x128xf32>
    %82 = vector.broadcast %76 : vector<1x128xf32> to vector<32x128xf32>
    %83 = arith.mulf %82, %6 : vector<32x128xf32>
    %84 = arith.addf %81, %83 : vector<32x128xf32>
    %85 = vector.broadcast %79 : vector<1x128xf32> to vector<32x128xf32>
    %86 = arith.mulf %85, %9 : vector<32x128xf32>
    %87 = arith.addf %84, %86 : vector<32x128xf32>
    %cst_43 = arith.constant 0.000000e+00 : f32
    %88 = vector.broadcast %cst_43 : f32 to vector<32x128xf32>
    %89 = arith.maximumf %87, %88 : vector<32x128xf32>
    %90 = arith.maximumf %70, %89 : vector<32x128xf32>
    %c4_i32 = arith.constant 4 : i32
    %c0_44 = arith.constant 0 : index
    %c0_45 = arith.constant 0 : index
    %91 = arith.index_cast %c4_i32 : i32 to index
    %c0_46 = arith.constant 0 : index
    %92 = vector.load %arg2[%c0_44, %c0_45, %91, %c0_46] : memref<1x3x8x128xf32, #tpu.memory_space<vmem>>, vector<1x1x1x128xf32>
    %93 = vector.shape_cast %92 : vector<1x1x1x128xf32> to vector<1x128xf32>
    %c0_47 = arith.constant 0 : index
    %c1_48 = arith.constant 1 : index
    %94 = arith.index_cast %c4_i32 : i32 to index
    %c0_49 = arith.constant 0 : index
    %95 = vector.load %arg2[%c0_47, %c1_48, %94, %c0_49] : memref<1x3x8x128xf32, #tpu.memory_space<vmem>>, vector<1x1x1x128xf32>
    %96 = vector.shape_cast %95 : vector<1x1x1x128xf32> to vector<1x128xf32>
    %c0_50 = arith.constant 0 : index
    %c2_51 = arith.constant 2 : index
    %97 = arith.index_cast %c4_i32 : i32 to index
    %c0_52 = arith.constant 0 : index
    %98 = vector.load %arg2[%c0_50, %c2_51, %97, %c0_52] : memref<1x3x8x128xf32, #tpu.memory_space<vmem>>, vector<1x1x1x128xf32>
    %99 = vector.shape_cast %98 : vector<1x1x1x128xf32> to vector<1x128xf32>
    %100 = vector.broadcast %93 : vector<1x128xf32> to vector<32x128xf32>
    %101 = arith.mulf %100, %3 : vector<32x128xf32>
    %102 = vector.broadcast %96 : vector<1x128xf32> to vector<32x128xf32>
    %103 = arith.mulf %102, %6 : vector<32x128xf32>
    %104 = arith.addf %101, %103 : vector<32x128xf32>
    %105 = vector.broadcast %99 : vector<1x128xf32> to vector<32x128xf32>
    %106 = arith.mulf %105, %9 : vector<32x128xf32>
    %107 = arith.addf %104, %106 : vector<32x128xf32>
    %cst_53 = arith.constant 0.000000e+00 : f32
    %108 = vector.broadcast %cst_53 : f32 to vector<32x128xf32>
    %109 = arith.maximumf %107, %108 : vector<32x128xf32>
    %110 = arith.maximumf %90, %109 : vector<32x128xf32>
    %c5_i32 = arith.constant 5 : i32
    %c0_54 = arith.constant 0 : index
    %c0_55 = arith.constant 0 : index
    %111 = arith.index_cast %c5_i32 : i32 to index
    %c0_56 = arith.constant 0 : index
    %112 = vector.load %arg2[%c0_54, %c0_55, %111, %c0_56] : memref<1x3x8x128xf32, #tpu.memory_space<vmem>>, vector<1x1x1x128xf32>
    %113 = vector.shape_cast %112 : vector<1x1x1x128xf32> to vector<1x128xf32>
    %c0_57 = arith.constant 0 : index
    %c1_58 = arith.constant 1 : index
    %114 = arith.index_cast %c5_i32 : i32 to index
    %c0_59 = arith.constant 0 : index
    %115 = vector.load %arg2[%c0_57, %c1_58, %114, %c0_59] : memref<1x3x8x128xf32, #tpu.memory_space<vmem>>, vector<1x1x1x128xf32>
    %116 = vector.shape_cast %115 : vector<1x1x1x128xf32> to vector<1x128xf32>
    %c0_60 = arith.constant 0 : index
    %c2_61 = arith.constant 2 : index
    %117 = arith.index_cast %c5_i32 : i32 to index
    %c0_62 = arith.constant 0 : index
    %118 = vector.load %arg2[%c0_60, %c2_61, %117, %c0_62] : memref<1x3x8x128xf32, #tpu.memory_space<vmem>>, vector<1x1x1x128xf32>
    %119 = vector.shape_cast %118 : vector<1x1x1x128xf32> to vector<1x128xf32>
    %120 = vector.broadcast %113 : vector<1x128xf32> to vector<32x128xf32>
    %121 = arith.mulf %120, %3 : vector<32x128xf32>
    %122 = vector.broadcast %116 : vector<1x128xf32> to vector<32x128xf32>
    %123 = arith.mulf %122, %6 : vector<32x128xf32>
    %124 = arith.addf %121, %123 : vector<32x128xf32>
    %125 = vector.broadcast %119 : vector<1x128xf32> to vector<32x128xf32>
    %126 = arith.mulf %125, %9 : vector<32x128xf32>
    %127 = arith.addf %124, %126 : vector<32x128xf32>
    %cst_63 = arith.constant 0.000000e+00 : f32
    %128 = vector.broadcast %cst_63 : f32 to vector<32x128xf32>
    %129 = arith.maximumf %127, %128 : vector<32x128xf32>
    %130 = arith.maximumf %110, %129 : vector<32x128xf32>
    %c6_i32 = arith.constant 6 : i32
    %c0_64 = arith.constant 0 : index
    %c0_65 = arith.constant 0 : index
    %131 = arith.index_cast %c6_i32 : i32 to index
    %c0_66 = arith.constant 0 : index
    %132 = vector.load %arg2[%c0_64, %c0_65, %131, %c0_66] : memref<1x3x8x128xf32, #tpu.memory_space<vmem>>, vector<1x1x1x128xf32>
    %133 = vector.shape_cast %132 : vector<1x1x1x128xf32> to vector<1x128xf32>
    %c0_67 = arith.constant 0 : index
    %c1_68 = arith.constant 1 : index
    %134 = arith.index_cast %c6_i32 : i32 to index
    %c0_69 = arith.constant 0 : index
    %135 = vector.load %arg2[%c0_67, %c1_68, %134, %c0_69] : memref<1x3x8x128xf32, #tpu.memory_space<vmem>>, vector<1x1x1x128xf32>
    %136 = vector.shape_cast %135 : vector<1x1x1x128xf32> to vector<1x128xf32>
    %c0_70 = arith.constant 0 : index
    %c2_71 = arith.constant 2 : index
    %137 = arith.index_cast %c6_i32 : i32 to index
    %c0_72 = arith.constant 0 : index
    %138 = vector.load %arg2[%c0_70, %c2_71, %137, %c0_72] : memref<1x3x8x128xf32, #tpu.memory_space<vmem>>, vector<1x1x1x128xf32>
    %139 = vector.shape_cast %138 : vector<1x1x1x128xf32> to vector<1x128xf32>
    %140 = vector.broadcast %133 : vector<1x128xf32> to vector<32x128xf32>
    %141 = arith.mulf %140, %3 : vector<32x128xf32>
    %142 = vector.broadcast %136 : vector<1x128xf32> to vector<32x128xf32>
    %143 = arith.mulf %142, %6 : vector<32x128xf32>
    %144 = arith.addf %141, %143 : vector<32x128xf32>
    %145 = vector.broadcast %139 : vector<1x128xf32> to vector<32x128xf32>
    %146 = arith.mulf %145, %9 : vector<32x128xf32>
    %147 = arith.addf %144, %146 : vector<32x128xf32>
    %cst_73 = arith.constant 0.000000e+00 : f32
    %148 = vector.broadcast %cst_73 : f32 to vector<32x128xf32>
    %149 = arith.maximumf %147, %148 : vector<32x128xf32>
    %150 = arith.maximumf %130, %149 : vector<32x128xf32>
    %c7_i32 = arith.constant 7 : i32
    %c0_74 = arith.constant 0 : index
    %c0_75 = arith.constant 0 : index
    %151 = arith.index_cast %c7_i32 : i32 to index
    %c0_76 = arith.constant 0 : index
    %152 = vector.load %arg2[%c0_74, %c0_75, %151, %c0_76] : memref<1x3x8x128xf32, #tpu.memory_space<vmem>>, vector<1x1x1x128xf32>
    %153 = vector.shape_cast %152 : vector<1x1x1x128xf32> to vector<1x128xf32>
    %c0_77 = arith.constant 0 : index
    %c1_78 = arith.constant 1 : index
    %154 = arith.index_cast %c7_i32 : i32 to index
    %c0_79 = arith.constant 0 : index
    %155 = vector.load %arg2[%c0_77, %c1_78, %154, %c0_79] : memref<1x3x8x128xf32, #tpu.memory_space<vmem>>, vector<1x1x1x128xf32>
    %156 = vector.shape_cast %155 : vector<1x1x1x128xf32> to vector<1x128xf32>
    %c0_80 = arith.constant 0 : index
    %c2_81 = arith.constant 2 : index
    %157 = arith.index_cast %c7_i32 : i32 to index
    %c0_82 = arith.constant 0 : index
    %158 = vector.load %arg2[%c0_80, %c2_81, %157, %c0_82] : memref<1x3x8x128xf32, #tpu.memory_space<vmem>>, vector<1x1x1x128xf32>
    %159 = vector.shape_cast %158 : vector<1x1x1x128xf32> to vector<1x128xf32>
    %160 = vector.broadcast %153 : vector<1x128xf32> to vector<32x128xf32>
    %161 = arith.mulf %160, %3 : vector<32x128xf32>
    %162 = vector.broadcast %156 : vector<1x128xf32> to vector<32x128xf32>
    %163 = arith.mulf %162, %6 : vector<32x128xf32>
    %164 = arith.addf %161, %163 : vector<32x128xf32>
    %165 = vector.broadcast %159 : vector<1x128xf32> to vector<32x128xf32>
    %166 = arith.mulf %165, %9 : vector<32x128xf32>
    %167 = arith.addf %164, %166 : vector<32x128xf32>
    %cst_83 = arith.constant 0.000000e+00 : f32
    %168 = vector.broadcast %cst_83 : f32 to vector<32x128xf32>
    %169 = arith.maximumf %167, %168 : vector<32x128xf32>
    %170 = arith.maximumf %150, %169 : vector<32x128xf32>
    %c8_i32 = arith.constant 8 : i32
    %171 = arith.addf %0, %170 : vector<32x128xf32>
    %c32 = arith.constant 32 : index
    %c0_84 = arith.constant 0 : index
    %172 = vector.load %arg3[%c32, %c0_84] : memref<128x3xf32, #tpu.memory_space<vmem>>, vector<32x1xf32>
    %173 = vector.shape_cast %172 : vector<32x1xf32> to vector<32x1xf32>
    %174 = vector.broadcast %173 : vector<32x1xf32> to vector<32x128xf32>
    %c32_85 = arith.constant 32 : index
    %c1_86 = arith.constant 1 : index
    %175 = vector.load %arg3[%c32_85, %c1_86] : memref<128x3xf32, #tpu.memory_space<vmem>>, vector<32x1xf32>
    %176 = vector.shape_cast %175 : vector<32x1xf32> to vector<32x1xf32>
    %177 = vector.broadcast %176 : vector<32x1xf32> to vector<32x128xf32>
    %c32_87 = arith.constant 32 : index
    %c2_88 = arith.constant 2 : index
    %178 = vector.load %arg3[%c32_87, %c2_88] : memref<128x3xf32, #tpu.memory_space<vmem>>, vector<32x1xf32>
    %179 = vector.shape_cast %178 : vector<32x1xf32> to vector<32x1xf32>
    %180 = vector.broadcast %179 : vector<32x1xf32> to vector<32x128xf32>
    %cst_89 = arith.constant 0.000000e+00 : f32
    %181 = vector.broadcast %cst_89 : f32 to vector<32x128xf32>
    %c0_i32_90 = arith.constant 0 : i32
    %c0_91 = arith.constant 0 : index
    %c0_92 = arith.constant 0 : index
    %182 = arith.index_cast %c0_i32_90 : i32 to index
    %c0_93 = arith.constant 0 : index
    %183 = vector.load %arg2[%c0_91, %c0_92, %182, %c0_93] : memref<1x3x8x128xf32, #tpu.memory_space<vmem>>, vector<1x1x1x128xf32>
    %184 = vector.shape_cast %183 : vector<1x1x1x128xf32> to vector<1x128xf32>
    %c0_94 = arith.constant 0 : index
    %c1_95 = arith.constant 1 : index
    %185 = arith.index_cast %c0_i32_90 : i32 to index
    %c0_96 = arith.constant 0 : index
    %186 = vector.load %arg2[%c0_94, %c1_95, %185, %c0_96] : memref<1x3x8x128xf32, #tpu.memory_space<vmem>>, vector<1x1x1x128xf32>
    %187 = vector.shape_cast %186 : vector<1x1x1x128xf32> to vector<1x128xf32>
    %c0_97 = arith.constant 0 : index
    %c2_98 = arith.constant 2 : index
    %188 = arith.index_cast %c0_i32_90 : i32 to index
    %c0_99 = arith.constant 0 : index
    %189 = vector.load %arg2[%c0_97, %c2_98, %188, %c0_99] : memref<1x3x8x128xf32, #tpu.memory_space<vmem>>, vector<1x1x1x128xf32>
    %190 = vector.shape_cast %189 : vector<1x1x1x128xf32> to vector<1x128xf32>
    %191 = vector.broadcast %184 : vector<1x128xf32> to vector<32x128xf32>
    %192 = arith.mulf %191, %174 : vector<32x128xf32>
    %193 = vector.broadcast %187 : vector<1x128xf32> to vector<32x128xf32>
    %194 = arith.mulf %193, %177 : vector<32x128xf32>
    %195 = arith.addf %192, %194 : vector<32x128xf32>
    %196 = vector.broadcast %190 : vector<1x128xf32> to vector<32x128xf32>
    %197 = arith.mulf %196, %180 : vector<32x128xf32>
    %198 = arith.addf %195, %197 : vector<32x128xf32>
    %cst_100 = arith.constant 0.000000e+00 : f32
    %199 = vector.broadcast %cst_100 : f32 to vector<32x128xf32>
    %200 = arith.maximumf %198, %199 : vector<32x128xf32>
    %201 = arith.maximumf %181, %200 : vector<32x128xf32>
    %c1_i32_101 = arith.constant 1 : i32
    %c0_102 = arith.constant 0 : index
    %c0_103 = arith.constant 0 : index
    %202 = arith.index_cast %c1_i32_101 : i32 to index
    %c0_104 = arith.constant 0 : index
    %203 = vector.load %arg2[%c0_102, %c0_103, %202, %c0_104] : memref<1x3x8x128xf32, #tpu.memory_space<vmem>>, vector<1x1x1x128xf32>
    %204 = vector.shape_cast %203 : vector<1x1x1x128xf32> to vector<1x128xf32>
    %c0_105 = arith.constant 0 : index
    %c1_106 = arith.constant 1 : index
    %205 = arith.index_cast %c1_i32_101 : i32 to index
    %c0_107 = arith.constant 0 : index
    %206 = vector.load %arg2[%c0_105, %c1_106, %205, %c0_107] : memref<1x3x8x128xf32, #tpu.memory_space<vmem>>, vector<1x1x1x128xf32>
    %207 = vector.shape_cast %206 : vector<1x1x1x128xf32> to vector<1x128xf32>
    %c0_108 = arith.constant 0 : index
    %c2_109 = arith.constant 2 : index
    %208 = arith.index_cast %c1_i32_101 : i32 to index
    %c0_110 = arith.constant 0 : index
    %209 = vector.load %arg2[%c0_108, %c2_109, %208, %c0_110] : memref<1x3x8x128xf32, #tpu.memory_space<vmem>>, vector<1x1x1x128xf32>
    %210 = vector.shape_cast %209 : vector<1x1x1x128xf32> to vector<1x128xf32>
    %211 = vector.broadcast %204 : vector<1x128xf32> to vector<32x128xf32>
    %212 = arith.mulf %211, %174 : vector<32x128xf32>
    %213 = vector.broadcast %207 : vector<1x128xf32> to vector<32x128xf32>
    %214 = arith.mulf %213, %177 : vector<32x128xf32>
    %215 = arith.addf %212, %214 : vector<32x128xf32>
    %216 = vector.broadcast %210 : vector<1x128xf32> to vector<32x128xf32>
    %217 = arith.mulf %216, %180 : vector<32x128xf32>
    %218 = arith.addf %215, %217 : vector<32x128xf32>
    %cst_111 = arith.constant 0.000000e+00 : f32
    %219 = vector.broadcast %cst_111 : f32 to vector<32x128xf32>
    %220 = arith.maximumf %218, %219 : vector<32x128xf32>
    %221 = arith.maximumf %201, %220 : vector<32x128xf32>
    %c2_i32_112 = arith.constant 2 : i32
    %c0_113 = arith.constant 0 : index
    %c0_114 = arith.constant 0 : index
    %222 = arith.index_cast %c2_i32_112 : i32 to index
    %c0_115 = arith.constant 0 : index
    %223 = vector.load %arg2[%c0_113, %c0_114, %222, %c0_115] : memref<1x3x8x128xf32, #tpu.memory_space<vmem>>, vector<1x1x1x128xf32>
    %224 = vector.shape_cast %223 : vector<1x1x1x128xf32> to vector<1x128xf32>
    %c0_116 = arith.constant 0 : index
    %c1_117 = arith.constant 1 : index
    %225 = arith.index_cast %c2_i32_112 : i32 to index
    %c0_118 = arith.constant 0 : index
    %226 = vector.load %arg2[%c0_116, %c1_117, %225, %c0_118] : memref<1x3x8x128xf32, #tpu.memory_space<vmem>>, vector<1x1x1x128xf32>
    %227 = vector.shape_cast %226 : vector<1x1x1x128xf32> to vector<1x128xf32>
    %c0_119 = arith.constant 0 : index
    %c2_120 = arith.constant 2 : index
    %228 = arith.index_cast %c2_i32_112 : i32 to index
    %c0_121 = arith.constant 0 : index
    %229 = vector.load %arg2[%c0_119, %c2_120, %228, %c0_121] : memref<1x3x8x128xf32, #tpu.memory_space<vmem>>, vector<1x1x1x128xf32>
    %230 = vector.shape_cast %229 : vector<1x1x1x128xf32> to vector<1x128xf32>
    %231 = vector.broadcast %224 : vector<1x128xf32> to vector<32x128xf32>
    %232 = arith.mulf %231, %174 : vector<32x128xf32>
    %233 = vector.broadcast %227 : vector<1x128xf32> to vector<32x128xf32>
    %234 = arith.mulf %233, %177 : vector<32x128xf32>
    %235 = arith.addf %232, %234 : vector<32x128xf32>
    %236 = vector.broadcast %230 : vector<1x128xf32> to vector<32x128xf32>
    %237 = arith.mulf %236, %180 : vector<32x128xf32>
    %238 = arith.addf %235, %237 : vector<32x128xf32>
    %cst_122 = arith.constant 0.000000e+00 : f32
    %239 = vector.broadcast %cst_122 : f32 to vector<32x128xf32>
    %240 = arith.maximumf %238, %239 : vector<32x128xf32>
    %241 = arith.maximumf %221, %240 : vector<32x128xf32>
    %c3_i32_123 = arith.constant 3 : i32
    %c0_124 = arith.constant 0 : index
    %c0_125 = arith.constant 0 : index
    %242 = arith.index_cast %c3_i32_123 : i32 to index
    %c0_126 = arith.constant 0 : index
    %243 = vector.load %arg2[%c0_124, %c0_125, %242, %c0_126] : memref<1x3x8x128xf32, #tpu.memory_space<vmem>>, vector<1x1x1x128xf32>
    %244 = vector.shape_cast %243 : vector<1x1x1x128xf32> to vector<1x128xf32>
    %c0_127 = arith.constant 0 : index
    %c1_128 = arith.constant 1 : index
    %245 = arith.index_cast %c3_i32_123 : i32 to index
    %c0_129 = arith.constant 0 : index
    %246 = vector.load %arg2[%c0_127, %c1_128, %245, %c0_129] : memref<1x3x8x128xf32, #tpu.memory_space<vmem>>, vector<1x1x1x128xf32>
    %247 = vector.shape_cast %246 : vector<1x1x1x128xf32> to vector<1x128xf32>
    %c0_130 = arith.constant 0 : index
    %c2_131 = arith.constant 2 : index
    %248 = arith.index_cast %c3_i32_123 : i32 to index
    %c0_132 = arith.constant 0 : index
    %249 = vector.load %arg2[%c0_130, %c2_131, %248, %c0_132] : memref<1x3x8x128xf32, #tpu.memory_space<vmem>>, vector<1x1x1x128xf32>
    %250 = vector.shape_cast %249 : vector<1x1x1x128xf32> to vector<1x128xf32>
    %251 = vector.broadcast %244 : vector<1x128xf32> to vector<32x128xf32>
    %252 = arith.mulf %251, %174 : vector<32x128xf32>
    %253 = vector.broadcast %247 : vector<1x128xf32> to vector<32x128xf32>
    %254 = arith.mulf %253, %177 : vector<32x128xf32>
    %255 = arith.addf %252, %254 : vector<32x128xf32>
    %256 = vector.broadcast %250 : vector<1x128xf32> to vector<32x128xf32>
    %257 = arith.mulf %256, %180 : vector<32x128xf32>
    %258 = arith.addf %255, %257 : vector<32x128xf32>
    %cst_133 = arith.constant 0.000000e+00 : f32
    %259 = vector.broadcast %cst_133 : f32 to vector<32x128xf32>
    %260 = arith.maximumf %258, %259 : vector<32x128xf32>
    %261 = arith.maximumf %241, %260 : vector<32x128xf32>
    %c4_i32_134 = arith.constant 4 : i32
    %c0_135 = arith.constant 0 : index
    %c0_136 = arith.constant 0 : index
    %262 = arith.index_cast %c4_i32_134 : i32 to index
    %c0_137 = arith.constant 0 : index
    %263 = vector.load %arg2[%c0_135, %c0_136, %262, %c0_137] : memref<1x3x8x128xf32, #tpu.memory_space<vmem>>, vector<1x1x1x128xf32>
    %264 = vector.shape_cast %263 : vector<1x1x1x128xf32> to vector<1x128xf32>
    %c0_138 = arith.constant 0 : index
    %c1_139 = arith.constant 1 : index
    %265 = arith.index_cast %c4_i32_134 : i32 to index
    %c0_140 = arith.constant 0 : index
    %266 = vector.load %arg2[%c0_138, %c1_139, %265, %c0_140] : memref<1x3x8x128xf32, #tpu.memory_space<vmem>>, vector<1x1x1x128xf32>
    %267 = vector.shape_cast %266 : vector<1x1x1x128xf32> to vector<1x128xf32>
    %c0_141 = arith.constant 0 : index
    %c2_142 = arith.constant 2 : index
    %268 = arith.index_cast %c4_i32_134 : i32 to index
    %c0_143 = arith.constant 0 : index
    %269 = vector.load %arg2[%c0_141, %c2_142, %268, %c0_143] : memref<1x3x8x128xf32, #tpu.memory_space<vmem>>, vector<1x1x1x128xf32>
    %270 = vector.shape_cast %269 : vector<1x1x1x128xf32> to vector<1x128xf32>
    %271 = vector.broadcast %264 : vector<1x128xf32> to vector<32x128xf32>
    %272 = arith.mulf %271, %174 : vector<32x128xf32>
    %273 = vector.broadcast %267 : vector<1x128xf32> to vector<32x128xf32>
    %274 = arith.mulf %273, %177 : vector<32x128xf32>
    %275 = arith.addf %272, %274 : vector<32x128xf32>
    %276 = vector.broadcast %270 : vector<1x128xf32> to vector<32x128xf32>
    %277 = arith.mulf %276, %180 : vector<32x128xf32>
    %278 = arith.addf %275, %277 : vector<32x128xf32>
    %cst_144 = arith.constant 0.000000e+00 : f32
    %279 = vector.broadcast %cst_144 : f32 to vector<32x128xf32>
    %280 = arith.maximumf %278, %279 : vector<32x128xf32>
    %281 = arith.maximumf %261, %280 : vector<32x128xf32>
    %c5_i32_145 = arith.constant 5 : i32
    %c0_146 = arith.constant 0 : index
    %c0_147 = arith.constant 0 : index
    %282 = arith.index_cast %c5_i32_145 : i32 to index
    %c0_148 = arith.constant 0 : index
    %283 = vector.load %arg2[%c0_146, %c0_147, %282, %c0_148] : memref<1x3x8x128xf32, #tpu.memory_space<vmem>>, vector<1x1x1x128xf32>
    %284 = vector.shape_cast %283 : vector<1x1x1x128xf32> to vector<1x128xf32>
    %c0_149 = arith.constant 0 : index
    %c1_150 = arith.constant 1 : index
    %285 = arith.index_cast %c5_i32_145 : i32 to index
    %c0_151 = arith.constant 0 : index
    %286 = vector.load %arg2[%c0_149, %c1_150, %285, %c0_151] : memref<1x3x8x128xf32, #tpu.memory_space<vmem>>, vector<1x1x1x128xf32>
    %287 = vector.shape_cast %286 : vector<1x1x1x128xf32> to vector<1x128xf32>
    %c0_152 = arith.constant 0 : index
    %c2_153 = arith.constant 2 : index
    %288 = arith.index_cast %c5_i32_145 : i32 to index
    %c0_154 = arith.constant 0 : index
    %289 = vector.load %arg2[%c0_152, %c2_153, %288, %c0_154] : memref<1x3x8x128xf32, #tpu.memory_space<vmem>>, vector<1x1x1x128xf32>
    %290 = vector.shape_cast %289 : vector<1x1x1x128xf32> to vector<1x128xf32>
    %291 = vector.broadcast %284 : vector<1x128xf32> to vector<32x128xf32>
    %292 = arith.mulf %291, %174 : vector<32x128xf32>
    %293 = vector.broadcast %287 : vector<1x128xf32> to vector<32x128xf32>
    %294 = arith.mulf %293, %177 : vector<32x128xf32>
    %295 = arith.addf %292, %294 : vector<32x128xf32>
    %296 = vector.broadcast %290 : vector<1x128xf32> to vector<32x128xf32>
    %297 = arith.mulf %296, %180 : vector<32x128xf32>
    %298 = arith.addf %295, %297 : vector<32x128xf32>
    %cst_155 = arith.constant 0.000000e+00 : f32
    %299 = vector.broadcast %cst_155 : f32 to vector<32x128xf32>
    %300 = arith.maximumf %298, %299 : vector<32x128xf32>
    %301 = arith.maximumf %281, %300 : vector<32x128xf32>
    %c6_i32_156 = arith.constant 6 : i32
    %c0_157 = arith.constant 0 : index
    %c0_158 = arith.constant 0 : index
    %302 = arith.index_cast %c6_i32_156 : i32 to index
    %c0_159 = arith.constant 0 : index
    %303 = vector.load %arg2[%c0_157, %c0_158, %302, %c0_159] : memref<1x3x8x128xf32, #tpu.memory_space<vmem>>, vector<1x1x1x128xf32>
    %304 = vector.shape_cast %303 : vector<1x1x1x128xf32> to vector<1x128xf32>
    %c0_160 = arith.constant 0 : index
    %c1_161 = arith.constant 1 : index
    %305 = arith.index_cast %c6_i32_156 : i32 to index
    %c0_162 = arith.constant 0 : index
    %306 = vector.load %arg2[%c0_160, %c1_161, %305, %c0_162] : memref<1x3x8x128xf32, #tpu.memory_space<vmem>>, vector<1x1x1x128xf32>
    %307 = vector.shape_cast %306 : vector<1x1x1x128xf32> to vector<1x128xf32>
    %c0_163 = arith.constant 0 : index
    %c2_164 = arith.constant 2 : index
    %308 = arith.index_cast %c6_i32_156 : i32 to index
    %c0_165 = arith.constant 0 : index
    %309 = vector.load %arg2[%c0_163, %c2_164, %308, %c0_165] : memref<1x3x8x128xf32, #tpu.memory_space<vmem>>, vector<1x1x1x128xf32>
    %310 = vector.shape_cast %309 : vector<1x1x1x128xf32> to vector<1x128xf32>
    %311 = vector.broadcast %304 : vector<1x128xf32> to vector<32x128xf32>
    %312 = arith.mulf %311, %174 : vector<32x128xf32>
    %313 = vector.broadcast %307 : vector<1x128xf32> to vector<32x128xf32>
    %314 = arith.mulf %313, %177 : vector<32x128xf32>
    %315 = arith.addf %312, %314 : vector<32x128xf32>
    %316 = vector.broadcast %310 : vector<1x128xf32> to vector<32x128xf32>
    %317 = arith.mulf %316, %180 : vector<32x128xf32>
    %318 = arith.addf %315, %317 : vector<32x128xf32>
    %cst_166 = arith.constant 0.000000e+00 : f32
    %319 = vector.broadcast %cst_166 : f32 to vector<32x128xf32>
    %320 = arith.maximumf %318, %319 : vector<32x128xf32>
    %321 = arith.maximumf %301, %320 : vector<32x128xf32>
    %c7_i32_167 = arith.constant 7 : i32
    %c0_168 = arith.constant 0 : index
    %c0_169 = arith.constant 0 : index
    %322 = arith.index_cast %c7_i32_167 : i32 to index
    %c0_170 = arith.constant 0 : index
    %323 = vector.load %arg2[%c0_168, %c0_169, %322, %c0_170] : memref<1x3x8x128xf32, #tpu.memory_space<vmem>>, vector<1x1x1x128xf32>
    %324 = vector.shape_cast %323 : vector<1x1x1x128xf32> to vector<1x128xf32>
    %c0_171 = arith.constant 0 : index
    %c1_172 = arith.constant 1 : index
    %325 = arith.index_cast %c7_i32_167 : i32 to index
    %c0_173 = arith.constant 0 : index
    %326 = vector.load %arg2[%c0_171, %c1_172, %325, %c0_173] : memref<1x3x8x128xf32, #tpu.memory_space<vmem>>, vector<1x1x1x128xf32>
    %327 = vector.shape_cast %326 : vector<1x1x1x128xf32> to vector<1x128xf32>
    %c0_174 = arith.constant 0 : index
    %c2_175 = arith.constant 2 : index
    %328 = arith.index_cast %c7_i32_167 : i32 to index
    %c0_176 = arith.constant 0 : index
    %329 = vector.load %arg2[%c0_174, %c2_175, %328, %c0_176] : memref<1x3x8x128xf32, #tpu.memory_space<vmem>>, vector<1x1x1x128xf32>
    %330 = vector.shape_cast %329 : vector<1x1x1x128xf32> to vector<1x128xf32>
    %331 = vector.broadcast %324 : vector<1x128xf32> to vector<32x128xf32>
    %332 = arith.mulf %331, %174 : vector<32x128xf32>
    %333 = vector.broadcast %327 : vector<1x128xf32> to vector<32x128xf32>
    %334 = arith.mulf %333, %177 : vector<32x128xf32>
    %335 = arith.addf %332, %334 : vector<32x128xf32>
    %336 = vector.broadcast %330 : vector<1x128xf32> to vector<32x128xf32>
    %337 = arith.mulf %336, %180 : vector<32x128xf32>
    %338 = arith.addf %335, %337 : vector<32x128xf32>
    %cst_177 = arith.constant 0.000000e+00 : f32
    %339 = vector.broadcast %cst_177 : f32 to vector<32x128xf32>
    %340 = arith.maximumf %338, %339 : vector<32x128xf32>
    %341 = arith.maximumf %321, %340 : vector<32x128xf32>
    %c8_i32_178 = arith.constant 8 : i32
    %342 = arith.addf %171, %341 : vector<32x128xf32>
    %c64 = arith.constant 64 : index
    %c0_179 = arith.constant 0 : index
    %343 = vector.load %arg3[%c64, %c0_179] : memref<128x3xf32, #tpu.memory_space<vmem>>, vector<32x1xf32>
    %344 = vector.shape_cast %343 : vector<32x1xf32> to vector<32x1xf32>
    %345 = vector.broadcast %344 : vector<32x1xf32> to vector<32x128xf32>
    %c64_180 = arith.constant 64 : index
    %c1_181 = arith.constant 1 : index
    %346 = vector.load %arg3[%c64_180, %c1_181] : memref<128x3xf32, #tpu.memory_space<vmem>>, vector<32x1xf32>
    %347 = vector.shape_cast %346 : vector<32x1xf32> to vector<32x1xf32>
    %348 = vector.broadcast %347 : vector<32x1xf32> to vector<32x128xf32>
    %c64_182 = arith.constant 64 : index
    %c2_183 = arith.constant 2 : index
    %349 = vector.load %arg3[%c64_182, %c2_183] : memref<128x3xf32, #tpu.memory_space<vmem>>, vector<32x1xf32>
    %350 = vector.shape_cast %349 : vector<32x1xf32> to vector<32x1xf32>
    %351 = vector.broadcast %350 : vector<32x1xf32> to vector<32x128xf32>
    %cst_184 = arith.constant 0.000000e+00 : f32
    %352 = vector.broadcast %cst_184 : f32 to vector<32x128xf32>
    %c0_i32_185 = arith.constant 0 : i32
    %c0_186 = arith.constant 0 : index
    %c0_187 = arith.constant 0 : index
    %353 = arith.index_cast %c0_i32_185 : i32 to index
    %c0_188 = arith.constant 0 : index
    %354 = vector.load %arg2[%c0_186, %c0_187, %353, %c0_188] : memref<1x3x8x128xf32, #tpu.memory_space<vmem>>, vector<1x1x1x128xf32>
    %355 = vector.shape_cast %354 : vector<1x1x1x128xf32> to vector<1x128xf32>
    %c0_189 = arith.constant 0 : index
    %c1_190 = arith.constant 1 : index
    %356 = arith.index_cast %c0_i32_185 : i32 to index
    %c0_191 = arith.constant 0 : index
    %357 = vector.load %arg2[%c0_189, %c1_190, %356, %c0_191] : memref<1x3x8x128xf32, #tpu.memory_space<vmem>>, vector<1x1x1x128xf32>
    %358 = vector.shape_cast %357 : vector<1x1x1x128xf32> to vector<1x128xf32>
    %c0_192 = arith.constant 0 : index
    %c2_193 = arith.constant 2 : index
    %359 = arith.index_cast %c0_i32_185 : i32 to index
    %c0_194 = arith.constant 0 : index
    %360 = vector.load %arg2[%c0_192, %c2_193, %359, %c0_194] : memref<1x3x8x128xf32, #tpu.memory_space<vmem>>, vector<1x1x1x128xf32>
    %361 = vector.shape_cast %360 : vector<1x1x1x128xf32> to vector<1x128xf32>
    %362 = vector.broadcast %355 : vector<1x128xf32> to vector<32x128xf32>
    %363 = arith.mulf %362, %345 : vector<32x128xf32>
    %364 = vector.broadcast %358 : vector<1x128xf32> to vector<32x128xf32>
    %365 = arith.mulf %364, %348 : vector<32x128xf32>
    %366 = arith.addf %363, %365 : vector<32x128xf32>
    %367 = vector.broadcast %361 : vector<1x128xf32> to vector<32x128xf32>
    %368 = arith.mulf %367, %351 : vector<32x128xf32>
    %369 = arith.addf %366, %368 : vector<32x128xf32>
    %cst_195 = arith.constant 0.000000e+00 : f32
    %370 = vector.broadcast %cst_195 : f32 to vector<32x128xf32>
    %371 = arith.maximumf %369, %370 : vector<32x128xf32>
    %372 = arith.maximumf %352, %371 : vector<32x128xf32>
    %c1_i32_196 = arith.constant 1 : i32
    %c0_197 = arith.constant 0 : index
    %c0_198 = arith.constant 0 : index
    %373 = arith.index_cast %c1_i32_196 : i32 to index
    %c0_199 = arith.constant 0 : index
    %374 = vector.load %arg2[%c0_197, %c0_198, %373, %c0_199] : memref<1x3x8x128xf32, #tpu.memory_space<vmem>>, vector<1x1x1x128xf32>
    %375 = vector.shape_cast %374 : vector<1x1x1x128xf32> to vector<1x128xf32>
    %c0_200 = arith.constant 0 : index
    %c1_201 = arith.constant 1 : index
    %376 = arith.index_cast %c1_i32_196 : i32 to index
    %c0_202 = arith.constant 0 : index
    %377 = vector.load %arg2[%c0_200, %c1_201, %376, %c0_202] : memref<1x3x8x128xf32, #tpu.memory_space<vmem>>, vector<1x1x1x128xf32>
    %378 = vector.shape_cast %377 : vector<1x1x1x128xf32> to vector<1x128xf32>
    %c0_203 = arith.constant 0 : index
    %c2_204 = arith.constant 2 : index
    %379 = arith.index_cast %c1_i32_196 : i32 to index
    %c0_205 = arith.constant 0 : index
    %380 = vector.load %arg2[%c0_203, %c2_204, %379, %c0_205] : memref<1x3x8x128xf32, #tpu.memory_space<vmem>>, vector<1x1x1x128xf32>
    %381 = vector.shape_cast %380 : vector<1x1x1x128xf32> to vector<1x128xf32>
    %382 = vector.broadcast %375 : vector<1x128xf32> to vector<32x128xf32>
    %383 = arith.mulf %382, %345 : vector<32x128xf32>
    %384 = vector.broadcast %378 : vector<1x128xf32> to vector<32x128xf32>
    %385 = arith.mulf %384, %348 : vector<32x128xf32>
    %386 = arith.addf %383, %385 : vector<32x128xf32>
    %387 = vector.broadcast %381 : vector<1x128xf32> to vector<32x128xf32>
    %388 = arith.mulf %387, %351 : vector<32x128xf32>
    %389 = arith.addf %386, %388 : vector<32x128xf32>
    %cst_206 = arith.constant 0.000000e+00 : f32
    %390 = vector.broadcast %cst_206 : f32 to vector<32x128xf32>
    %391 = arith.maximumf %389, %390 : vector<32x128xf32>
    %392 = arith.maximumf %372, %391 : vector<32x128xf32>
    %c2_i32_207 = arith.constant 2 : i32
    %c0_208 = arith.constant 0 : index
    %c0_209 = arith.constant 0 : index
    %393 = arith.index_cast %c2_i32_207 : i32 to index
    %c0_210 = arith.constant 0 : index
    %394 = vector.load %arg2[%c0_208, %c0_209, %393, %c0_210] : memref<1x3x8x128xf32, #tpu.memory_space<vmem>>, vector<1x1x1x128xf32>
    %395 = vector.shape_cast %394 : vector<1x1x1x128xf32> to vector<1x128xf32>
    %c0_211 = arith.constant 0 : index
    %c1_212 = arith.constant 1 : index
    %396 = arith.index_cast %c2_i32_207 : i32 to index
    %c0_213 = arith.constant 0 : index
    %397 = vector.load %arg2[%c0_211, %c1_212, %396, %c0_213] : memref<1x3x8x128xf32, #tpu.memory_space<vmem>>, vector<1x1x1x128xf32>
    %398 = vector.shape_cast %397 : vector<1x1x1x128xf32> to vector<1x128xf32>
    %c0_214 = arith.constant 0 : index
    %c2_215 = arith.constant 2 : index
    %399 = arith.index_cast %c2_i32_207 : i32 to index
    %c0_216 = arith.constant 0 : index
    %400 = vector.load %arg2[%c0_214, %c2_215, %399, %c0_216] : memref<1x3x8x128xf32, #tpu.memory_space<vmem>>, vector<1x1x1x128xf32>
    %401 = vector.shape_cast %400 : vector<1x1x1x128xf32> to vector<1x128xf32>
    %402 = vector.broadcast %395 : vector<1x128xf32> to vector<32x128xf32>
    %403 = arith.mulf %402, %345 : vector<32x128xf32>
    %404 = vector.broadcast %398 : vector<1x128xf32> to vector<32x128xf32>
    %405 = arith.mulf %404, %348 : vector<32x128xf32>
    %406 = arith.addf %403, %405 : vector<32x128xf32>
    %407 = vector.broadcast %401 : vector<1x128xf32> to vector<32x128xf32>
    %408 = arith.mulf %407, %351 : vector<32x128xf32>
    %409 = arith.addf %406, %408 : vector<32x128xf32>
    %cst_217 = arith.constant 0.000000e+00 : f32
    %410 = vector.broadcast %cst_217 : f32 to vector<32x128xf32>
    %411 = arith.maximumf %409, %410 : vector<32x128xf32>
    %412 = arith.maximumf %392, %411 : vector<32x128xf32>
    %c3_i32_218 = arith.constant 3 : i32
    %c0_219 = arith.constant 0 : index
    %c0_220 = arith.constant 0 : index
    %413 = arith.index_cast %c3_i32_218 : i32 to index
    %c0_221 = arith.constant 0 : index
    %414 = vector.load %arg2[%c0_219, %c0_220, %413, %c0_221] : memref<1x3x8x128xf32, #tpu.memory_space<vmem>>, vector<1x1x1x128xf32>
    %415 = vector.shape_cast %414 : vector<1x1x1x128xf32> to vector<1x128xf32>
    %c0_222 = arith.constant 0 : index
    %c1_223 = arith.constant 1 : index
    %416 = arith.index_cast %c3_i32_218 : i32 to index
    %c0_224 = arith.constant 0 : index
    %417 = vector.load %arg2[%c0_222, %c1_223, %416, %c0_224] : memref<1x3x8x128xf32, #tpu.memory_space<vmem>>, vector<1x1x1x128xf32>
    %418 = vector.shape_cast %417 : vector<1x1x1x128xf32> to vector<1x128xf32>
    %c0_225 = arith.constant 0 : index
    %c2_226 = arith.constant 2 : index
    %419 = arith.index_cast %c3_i32_218 : i32 to index
    %c0_227 = arith.constant 0 : index
    %420 = vector.load %arg2[%c0_225, %c2_226, %419, %c0_227] : memref<1x3x8x128xf32, #tpu.memory_space<vmem>>, vector<1x1x1x128xf32>
    %421 = vector.shape_cast %420 : vector<1x1x1x128xf32> to vector<1x128xf32>
    %422 = vector.broadcast %415 : vector<1x128xf32> to vector<32x128xf32>
    %423 = arith.mulf %422, %345 : vector<32x128xf32>
    %424 = vector.broadcast %418 : vector<1x128xf32> to vector<32x128xf32>
    %425 = arith.mulf %424, %348 : vector<32x128xf32>
    %426 = arith.addf %423, %425 : vector<32x128xf32>
    %427 = vector.broadcast %421 : vector<1x128xf32> to vector<32x128xf32>
    %428 = arith.mulf %427, %351 : vector<32x128xf32>
    %429 = arith.addf %426, %428 : vector<32x128xf32>
    %cst_228 = arith.constant 0.000000e+00 : f32
    %430 = vector.broadcast %cst_228 : f32 to vector<32x128xf32>
    %431 = arith.maximumf %429, %430 : vector<32x128xf32>
    %432 = arith.maximumf %412, %431 : vector<32x128xf32>
    %c4_i32_229 = arith.constant 4 : i32
    %c0_230 = arith.constant 0 : index
    %c0_231 = arith.constant 0 : index
    %433 = arith.index_cast %c4_i32_229 : i32 to index
    %c0_232 = arith.constant 0 : index
    %434 = vector.load %arg2[%c0_230, %c0_231, %433, %c0_232] : memref<1x3x8x128xf32, #tpu.memory_space<vmem>>, vector<1x1x1x128xf32>
    %435 = vector.shape_cast %434 : vector<1x1x1x128xf32> to vector<1x128xf32>
    %c0_233 = arith.constant 0 : index
    %c1_234 = arith.constant 1 : index
    %436 = arith.index_cast %c4_i32_229 : i32 to index
    %c0_235 = arith.constant 0 : index
    %437 = vector.load %arg2[%c0_233, %c1_234, %436, %c0_235] : memref<1x3x8x128xf32, #tpu.memory_space<vmem>>, vector<1x1x1x128xf32>
    %438 = vector.shape_cast %437 : vector<1x1x1x128xf32> to vector<1x128xf32>
    %c0_236 = arith.constant 0 : index
    %c2_237 = arith.constant 2 : index
    %439 = arith.index_cast %c4_i32_229 : i32 to index
    %c0_238 = arith.constant 0 : index
    %440 = vector.load %arg2[%c0_236, %c2_237, %439, %c0_238] : memref<1x3x8x128xf32, #tpu.memory_space<vmem>>, vector<1x1x1x128xf32>
    %441 = vector.shape_cast %440 : vector<1x1x1x128xf32> to vector<1x128xf32>
    %442 = vector.broadcast %435 : vector<1x128xf32> to vector<32x128xf32>
    %443 = arith.mulf %442, %345 : vector<32x128xf32>
    %444 = vector.broadcast %438 : vector<1x128xf32> to vector<32x128xf32>
    %445 = arith.mulf %444, %348 : vector<32x128xf32>
    %446 = arith.addf %443, %445 : vector<32x128xf32>
    %447 = vector.broadcast %441 : vector<1x128xf32> to vector<32x128xf32>
    %448 = arith.mulf %447, %351 : vector<32x128xf32>
    %449 = arith.addf %446, %448 : vector<32x128xf32>
    %cst_239 = arith.constant 0.000000e+00 : f32
    %450 = vector.broadcast %cst_239 : f32 to vector<32x128xf32>
    %451 = arith.maximumf %449, %450 : vector<32x128xf32>
    %452 = arith.maximumf %432, %451 : vector<32x128xf32>
    %c5_i32_240 = arith.constant 5 : i32
    %c0_241 = arith.constant 0 : index
    %c0_242 = arith.constant 0 : index
    %453 = arith.index_cast %c5_i32_240 : i32 to index
    %c0_243 = arith.constant 0 : index
    %454 = vector.load %arg2[%c0_241, %c0_242, %453, %c0_243] : memref<1x3x8x128xf32, #tpu.memory_space<vmem>>, vector<1x1x1x128xf32>
    %455 = vector.shape_cast %454 : vector<1x1x1x128xf32> to vector<1x128xf32>
    %c0_244 = arith.constant 0 : index
    %c1_245 = arith.constant 1 : index
    %456 = arith.index_cast %c5_i32_240 : i32 to index
    %c0_246 = arith.constant 0 : index
    %457 = vector.load %arg2[%c0_244, %c1_245, %456, %c0_246] : memref<1x3x8x128xf32, #tpu.memory_space<vmem>>, vector<1x1x1x128xf32>
    %458 = vector.shape_cast %457 : vector<1x1x1x128xf32> to vector<1x128xf32>
    %c0_247 = arith.constant 0 : index
    %c2_248 = arith.constant 2 : index
    %459 = arith.index_cast %c5_i32_240 : i32 to index
    %c0_249 = arith.constant 0 : index
    %460 = vector.load %arg2[%c0_247, %c2_248, %459, %c0_249] : memref<1x3x8x128xf32, #tpu.memory_space<vmem>>, vector<1x1x1x128xf32>
    %461 = vector.shape_cast %460 : vector<1x1x1x128xf32> to vector<1x128xf32>
    %462 = vector.broadcast %455 : vector<1x128xf32> to vector<32x128xf32>
    %463 = arith.mulf %462, %345 : vector<32x128xf32>
    %464 = vector.broadcast %458 : vector<1x128xf32> to vector<32x128xf32>
    %465 = arith.mulf %464, %348 : vector<32x128xf32>
    %466 = arith.addf %463, %465 : vector<32x128xf32>
    %467 = vector.broadcast %461 : vector<1x128xf32> to vector<32x128xf32>
    %468 = arith.mulf %467, %351 : vector<32x128xf32>
    %469 = arith.addf %466, %468 : vector<32x128xf32>
    %cst_250 = arith.constant 0.000000e+00 : f32
    %470 = vector.broadcast %cst_250 : f32 to vector<32x128xf32>
    %471 = arith.maximumf %469, %470 : vector<32x128xf32>
    %472 = arith.maximumf %452, %471 : vector<32x128xf32>
    %c6_i32_251 = arith.constant 6 : i32
    %c0_252 = arith.constant 0 : index
    %c0_253 = arith.constant 0 : index
    %473 = arith.index_cast %c6_i32_251 : i32 to index
    %c0_254 = arith.constant 0 : index
    %474 = vector.load %arg2[%c0_252, %c0_253, %473, %c0_254] : memref<1x3x8x128xf32, #tpu.memory_space<vmem>>, vector<1x1x1x128xf32>
    %475 = vector.shape_cast %474 : vector<1x1x1x128xf32> to vector<1x128xf32>
    %c0_255 = arith.constant 0 : index
    %c1_256 = arith.constant 1 : index
    %476 = arith.index_cast %c6_i32_251 : i32 to index
    %c0_257 = arith.constant 0 : index
    %477 = vector.load %arg2[%c0_255, %c1_256, %476, %c0_257] : memref<1x3x8x128xf32, #tpu.memory_space<vmem>>, vector<1x1x1x128xf32>
    %478 = vector.shape_cast %477 : vector<1x1x1x128xf32> to vector<1x128xf32>
    %c0_258 = arith.constant 0 : index
    %c2_259 = arith.constant 2 : index
    %479 = arith.index_cast %c6_i32_251 : i32 to index
    %c0_260 = arith.constant 0 : index
    %480 = vector.load %arg2[%c0_258, %c2_259, %479, %c0_260] : memref<1x3x8x128xf32, #tpu.memory_space<vmem>>, vector<1x1x1x128xf32>
    %481 = vector.shape_cast %480 : vector<1x1x1x128xf32> to vector<1x128xf32>
    %482 = vector.broadcast %475 : vector<1x128xf32> to vector<32x128xf32>
    %483 = arith.mulf %482, %345 : vector<32x128xf32>
    %484 = vector.broadcast %478 : vector<1x128xf32> to vector<32x128xf32>
    %485 = arith.mulf %484, %348 : vector<32x128xf32>
    %486 = arith.addf %483, %485 : vector<32x128xf32>
    %487 = vector.broadcast %481 : vector<1x128xf32> to vector<32x128xf32>
    %488 = arith.mulf %487, %351 : vector<32x128xf32>
    %489 = arith.addf %486, %488 : vector<32x128xf32>
    %cst_261 = arith.constant 0.000000e+00 : f32
    %490 = vector.broadcast %cst_261 : f32 to vector<32x128xf32>
    %491 = arith.maximumf %489, %490 : vector<32x128xf32>
    %492 = arith.maximumf %472, %491 : vector<32x128xf32>
    %c7_i32_262 = arith.constant 7 : i32
    %c0_263 = arith.constant 0 : index
    %c0_264 = arith.constant 0 : index
    %493 = arith.index_cast %c7_i32_262 : i32 to index
    %c0_265 = arith.constant 0 : index
    %494 = vector.load %arg2[%c0_263, %c0_264, %493, %c0_265] : memref<1x3x8x128xf32, #tpu.memory_space<vmem>>, vector<1x1x1x128xf32>
    %495 = vector.shape_cast %494 : vector<1x1x1x128xf32> to vector<1x128xf32>
    %c0_266 = arith.constant 0 : index
    %c1_267 = arith.constant 1 : index
    %496 = arith.index_cast %c7_i32_262 : i32 to index
    %c0_268 = arith.constant 0 : index
    %497 = vector.load %arg2[%c0_266, %c1_267, %496, %c0_268] : memref<1x3x8x128xf32, #tpu.memory_space<vmem>>, vector<1x1x1x128xf32>
    %498 = vector.shape_cast %497 : vector<1x1x1x128xf32> to vector<1x128xf32>
    %c0_269 = arith.constant 0 : index
    %c2_270 = arith.constant 2 : index
    %499 = arith.index_cast %c7_i32_262 : i32 to index
    %c0_271 = arith.constant 0 : index
    %500 = vector.load %arg2[%c0_269, %c2_270, %499, %c0_271] : memref<1x3x8x128xf32, #tpu.memory_space<vmem>>, vector<1x1x1x128xf32>
    %501 = vector.shape_cast %500 : vector<1x1x1x128xf32> to vector<1x128xf32>
    %502 = vector.broadcast %495 : vector<1x128xf32> to vector<32x128xf32>
    %503 = arith.mulf %502, %345 : vector<32x128xf32>
    %504 = vector.broadcast %498 : vector<1x128xf32> to vector<32x128xf32>
    %505 = arith.mulf %504, %348 : vector<32x128xf32>
    %506 = arith.addf %503, %505 : vector<32x128xf32>
    %507 = vector.broadcast %501 : vector<1x128xf32> to vector<32x128xf32>
    %508 = arith.mulf %507, %351 : vector<32x128xf32>
    %509 = arith.addf %506, %508 : vector<32x128xf32>
    %cst_272 = arith.constant 0.000000e+00 : f32
    %510 = vector.broadcast %cst_272 : f32 to vector<32x128xf32>
    %511 = arith.maximumf %509, %510 : vector<32x128xf32>
    %512 = arith.maximumf %492, %511 : vector<32x128xf32>
    %c8_i32_273 = arith.constant 8 : i32
    %513 = arith.addf %342, %512 : vector<32x128xf32>
    %c96 = arith.constant 96 : index
    %c0_274 = arith.constant 0 : index
    %514 = vector.load %arg3[%c96, %c0_274] : memref<128x3xf32, #tpu.memory_space<vmem>>, vector<32x1xf32>
    %515 = vector.shape_cast %514 : vector<32x1xf32> to vector<32x1xf32>
    %516 = vector.broadcast %515 : vector<32x1xf32> to vector<32x128xf32>
    %c96_275 = arith.constant 96 : index
    %c1_276 = arith.constant 1 : index
    %517 = vector.load %arg3[%c96_275, %c1_276] : memref<128x3xf32, #tpu.memory_space<vmem>>, vector<32x1xf32>
    %518 = vector.shape_cast %517 : vector<32x1xf32> to vector<32x1xf32>
    %519 = vector.broadcast %518 : vector<32x1xf32> to vector<32x128xf32>
    %c96_277 = arith.constant 96 : index
    %c2_278 = arith.constant 2 : index
    %520 = vector.load %arg3[%c96_277, %c2_278] : memref<128x3xf32, #tpu.memory_space<vmem>>, vector<32x1xf32>
    %521 = vector.shape_cast %520 : vector<32x1xf32> to vector<32x1xf32>
    %522 = vector.broadcast %521 : vector<32x1xf32> to vector<32x128xf32>
    %cst_279 = arith.constant 0.000000e+00 : f32
    %523 = vector.broadcast %cst_279 : f32 to vector<32x128xf32>
    %c0_i32_280 = arith.constant 0 : i32
    %c0_281 = arith.constant 0 : index
    %c0_282 = arith.constant 0 : index
    %524 = arith.index_cast %c0_i32_280 : i32 to index
    %c0_283 = arith.constant 0 : index
    %525 = vector.load %arg2[%c0_281, %c0_282, %524, %c0_283] : memref<1x3x8x128xf32, #tpu.memory_space<vmem>>, vector<1x1x1x128xf32>
    %526 = vector.shape_cast %525 : vector<1x1x1x128xf32> to vector<1x128xf32>
    %c0_284 = arith.constant 0 : index
    %c1_285 = arith.constant 1 : index
    %527 = arith.index_cast %c0_i32_280 : i32 to index
    %c0_286 = arith.constant 0 : index
    %528 = vector.load %arg2[%c0_284, %c1_285, %527, %c0_286] : memref<1x3x8x128xf32, #tpu.memory_space<vmem>>, vector<1x1x1x128xf32>
    %529 = vector.shape_cast %528 : vector<1x1x1x128xf32> to vector<1x128xf32>
    %c0_287 = arith.constant 0 : index
    %c2_288 = arith.constant 2 : index
    %530 = arith.index_cast %c0_i32_280 : i32 to index
    %c0_289 = arith.constant 0 : index
    %531 = vector.load %arg2[%c0_287, %c2_288, %530, %c0_289] : memref<1x3x8x128xf32, #tpu.memory_space<vmem>>, vector<1x1x1x128xf32>
    %532 = vector.shape_cast %531 : vector<1x1x1x128xf32> to vector<1x128xf32>
    %533 = vector.broadcast %526 : vector<1x128xf32> to vector<32x128xf32>
    %534 = arith.mulf %533, %516 : vector<32x128xf32>
    %535 = vector.broadcast %529 : vector<1x128xf32> to vector<32x128xf32>
    %536 = arith.mulf %535, %519 : vector<32x128xf32>
    %537 = arith.addf %534, %536 : vector<32x128xf32>
    %538 = vector.broadcast %532 : vector<1x128xf32> to vector<32x128xf32>
    %539 = arith.mulf %538, %522 : vector<32x128xf32>
    %540 = arith.addf %537, %539 : vector<32x128xf32>
    %cst_290 = arith.constant 0.000000e+00 : f32
    %541 = vector.broadcast %cst_290 : f32 to vector<32x128xf32>
    %542 = arith.maximumf %540, %541 : vector<32x128xf32>
    %543 = arith.maximumf %523, %542 : vector<32x128xf32>
    %c1_i32_291 = arith.constant 1 : i32
    %c0_292 = arith.constant 0 : index
    %c0_293 = arith.constant 0 : index
    %544 = arith.index_cast %c1_i32_291 : i32 to index
    %c0_294 = arith.constant 0 : index
    %545 = vector.load %arg2[%c0_292, %c0_293, %544, %c0_294] : memref<1x3x8x128xf32, #tpu.memory_space<vmem>>, vector<1x1x1x128xf32>
    %546 = vector.shape_cast %545 : vector<1x1x1x128xf32> to vector<1x128xf32>
    %c0_295 = arith.constant 0 : index
    %c1_296 = arith.constant 1 : index
    %547 = arith.index_cast %c1_i32_291 : i32 to index
    %c0_297 = arith.constant 0 : index
    %548 = vector.load %arg2[%c0_295, %c1_296, %547, %c0_297] : memref<1x3x8x128xf32, #tpu.memory_space<vmem>>, vector<1x1x1x128xf32>
    %549 = vector.shape_cast %548 : vector<1x1x1x128xf32> to vector<1x128xf32>
    %c0_298 = arith.constant 0 : index
    %c2_299 = arith.constant 2 : index
    %550 = arith.index_cast %c1_i32_291 : i32 to index
    %c0_300 = arith.constant 0 : index
    %551 = vector.load %arg2[%c0_298, %c2_299, %550, %c0_300] : memref<1x3x8x128xf32, #tpu.memory_space<vmem>>, vector<1x1x1x128xf32>
    %552 = vector.shape_cast %551 : vector<1x1x1x128xf32> to vector<1x128xf32>
    %553 = vector.broadcast %546 : vector<1x128xf32> to vector<32x128xf32>
    %554 = arith.mulf %553, %516 : vector<32x128xf32>
    %555 = vector.broadcast %549 : vector<1x128xf32> to vector<32x128xf32>
    %556 = arith.mulf %555, %519 : vector<32x128xf32>
    %557 = arith.addf %554, %556 : vector<32x128xf32>
    %558 = vector.broadcast %552 : vector<1x128xf32> to vector<32x128xf32>
    %559 = arith.mulf %558, %522 : vector<32x128xf32>
    %560 = arith.addf %557, %559 : vector<32x128xf32>
    %cst_301 = arith.constant 0.000000e+00 : f32
    %561 = vector.broadcast %cst_301 : f32 to vector<32x128xf32>
    %562 = arith.maximumf %560, %561 : vector<32x128xf32>
    %563 = arith.maximumf %543, %562 : vector<32x128xf32>
    %c2_i32_302 = arith.constant 2 : i32
    %c0_303 = arith.constant 0 : index
    %c0_304 = arith.constant 0 : index
    %564 = arith.index_cast %c2_i32_302 : i32 to index
    %c0_305 = arith.constant 0 : index
    %565 = vector.load %arg2[%c0_303, %c0_304, %564, %c0_305] : memref<1x3x8x128xf32, #tpu.memory_space<vmem>>, vector<1x1x1x128xf32>
    %566 = vector.shape_cast %565 : vector<1x1x1x128xf32> to vector<1x128xf32>
    %c0_306 = arith.constant 0 : index
    %c1_307 = arith.constant 1 : index
    %567 = arith.index_cast %c2_i32_302 : i32 to index
    %c0_308 = arith.constant 0 : index
    %568 = vector.load %arg2[%c0_306, %c1_307, %567, %c0_308] : memref<1x3x8x128xf32, #tpu.memory_space<vmem>>, vector<1x1x1x128xf32>
    %569 = vector.shape_cast %568 : vector<1x1x1x128xf32> to vector<1x128xf32>
    %c0_309 = arith.constant 0 : index
    %c2_310 = arith.constant 2 : index
    %570 = arith.index_cast %c2_i32_302 : i32 to index
    %c0_311 = arith.constant 0 : index
    %571 = vector.load %arg2[%c0_309, %c2_310, %570, %c0_311] : memref<1x3x8x128xf32, #tpu.memory_space<vmem>>, vector<1x1x1x128xf32>
    %572 = vector.shape_cast %571 : vector<1x1x1x128xf32> to vector<1x128xf32>
    %573 = vector.broadcast %566 : vector<1x128xf32> to vector<32x128xf32>
    %574 = arith.mulf %573, %516 : vector<32x128xf32>
    %575 = vector.broadcast %569 : vector<1x128xf32> to vector<32x128xf32>
    %576 = arith.mulf %575, %519 : vector<32x128xf32>
    %577 = arith.addf %574, %576 : vector<32x128xf32>
    %578 = vector.broadcast %572 : vector<1x128xf32> to vector<32x128xf32>
    %579 = arith.mulf %578, %522 : vector<32x128xf32>
    %580 = arith.addf %577, %579 : vector<32x128xf32>
    %cst_312 = arith.constant 0.000000e+00 : f32
    %581 = vector.broadcast %cst_312 : f32 to vector<32x128xf32>
    %582 = arith.maximumf %580, %581 : vector<32x128xf32>
    %583 = arith.maximumf %563, %582 : vector<32x128xf32>
    %c3_i32_313 = arith.constant 3 : i32
    %c0_314 = arith.constant 0 : index
    %c0_315 = arith.constant 0 : index
    %584 = arith.index_cast %c3_i32_313 : i32 to index
    %c0_316 = arith.constant 0 : index
    %585 = vector.load %arg2[%c0_314, %c0_315, %584, %c0_316] : memref<1x3x8x128xf32, #tpu.memory_space<vmem>>, vector<1x1x1x128xf32>
    %586 = vector.shape_cast %585 : vector<1x1x1x128xf32> to vector<1x128xf32>
    %c0_317 = arith.constant 0 : index
    %c1_318 = arith.constant 1 : index
    %587 = arith.index_cast %c3_i32_313 : i32 to index
    %c0_319 = arith.constant 0 : index
    %588 = vector.load %arg2[%c0_317, %c1_318, %587, %c0_319] : memref<1x3x8x128xf32, #tpu.memory_space<vmem>>, vector<1x1x1x128xf32>
    %589 = vector.shape_cast %588 : vector<1x1x1x128xf32> to vector<1x128xf32>
    %c0_320 = arith.constant 0 : index
    %c2_321 = arith.constant 2 : index
    %590 = arith.index_cast %c3_i32_313 : i32 to index
    %c0_322 = arith.constant 0 : index
    %591 = vector.load %arg2[%c0_320, %c2_321, %590, %c0_322] : memref<1x3x8x128xf32, #tpu.memory_space<vmem>>, vector<1x1x1x128xf32>
    %592 = vector.shape_cast %591 : vector<1x1x1x128xf32> to vector<1x128xf32>
    %593 = vector.broadcast %586 : vector<1x128xf32> to vector<32x128xf32>
    %594 = arith.mulf %593, %516 : vector<32x128xf32>
    %595 = vector.broadcast %589 : vector<1x128xf32> to vector<32x128xf32>
    %596 = arith.mulf %595, %519 : vector<32x128xf32>
    %597 = arith.addf %594, %596 : vector<32x128xf32>
    %598 = vector.broadcast %592 : vector<1x128xf32> to vector<32x128xf32>
    %599 = arith.mulf %598, %522 : vector<32x128xf32>
    %600 = arith.addf %597, %599 : vector<32x128xf32>
    %cst_323 = arith.constant 0.000000e+00 : f32
    %601 = vector.broadcast %cst_323 : f32 to vector<32x128xf32>
    %602 = arith.maximumf %600, %601 : vector<32x128xf32>
    %603 = arith.maximumf %583, %602 : vector<32x128xf32>
    %c4_i32_324 = arith.constant 4 : i32
    %c0_325 = arith.constant 0 : index
    %c0_326 = arith.constant 0 : index
    %604 = arith.index_cast %c4_i32_324 : i32 to index
    %c0_327 = arith.constant 0 : index
    %605 = vector.load %arg2[%c0_325, %c0_326, %604, %c0_327] : memref<1x3x8x128xf32, #tpu.memory_space<vmem>>, vector<1x1x1x128xf32>
    %606 = vector.shape_cast %605 : vector<1x1x1x128xf32> to vector<1x128xf32>
    %c0_328 = arith.constant 0 : index
    %c1_329 = arith.constant 1 : index
    %607 = arith.index_cast %c4_i32_324 : i32 to index
    %c0_330 = arith.constant 0 : index
    %608 = vector.load %arg2[%c0_328, %c1_329, %607, %c0_330] : memref<1x3x8x128xf32, #tpu.memory_space<vmem>>, vector<1x1x1x128xf32>
    %609 = vector.shape_cast %608 : vector<1x1x1x128xf32> to vector<1x128xf32>
    %c0_331 = arith.constant 0 : index
    %c2_332 = arith.constant 2 : index
    %610 = arith.index_cast %c4_i32_324 : i32 to index
    %c0_333 = arith.constant 0 : index
    %611 = vector.load %arg2[%c0_331, %c2_332, %610, %c0_333] : memref<1x3x8x128xf32, #tpu.memory_space<vmem>>, vector<1x1x1x128xf32>
    %612 = vector.shape_cast %611 : vector<1x1x1x128xf32> to vector<1x128xf32>
    %613 = vector.broadcast %606 : vector<1x128xf32> to vector<32x128xf32>
    %614 = arith.mulf %613, %516 : vector<32x128xf32>
    %615 = vector.broadcast %609 : vector<1x128xf32> to vector<32x128xf32>
    %616 = arith.mulf %615, %519 : vector<32x128xf32>
    %617 = arith.addf %614, %616 : vector<32x128xf32>
    %618 = vector.broadcast %612 : vector<1x128xf32> to vector<32x128xf32>
    %619 = arith.mulf %618, %522 : vector<32x128xf32>
    %620 = arith.addf %617, %619 : vector<32x128xf32>
    %cst_334 = arith.constant 0.000000e+00 : f32
    %621 = vector.broadcast %cst_334 : f32 to vector<32x128xf32>
    %622 = arith.maximumf %620, %621 : vector<32x128xf32>
    %623 = arith.maximumf %603, %622 : vector<32x128xf32>
    %c5_i32_335 = arith.constant 5 : i32
    %c0_336 = arith.constant 0 : index
    %c0_337 = arith.constant 0 : index
    %624 = arith.index_cast %c5_i32_335 : i32 to index
    %c0_338 = arith.constant 0 : index
    %625 = vector.load %arg2[%c0_336, %c0_337, %624, %c0_338] : memref<1x3x8x128xf32, #tpu.memory_space<vmem>>, vector<1x1x1x128xf32>
    %626 = vector.shape_cast %625 : vector<1x1x1x128xf32> to vector<1x128xf32>
    %c0_339 = arith.constant 0 : index
    %c1_340 = arith.constant 1 : index
    %627 = arith.index_cast %c5_i32_335 : i32 to index
    %c0_341 = arith.constant 0 : index
    %628 = vector.load %arg2[%c0_339, %c1_340, %627, %c0_341] : memref<1x3x8x128xf32, #tpu.memory_space<vmem>>, vector<1x1x1x128xf32>
    %629 = vector.shape_cast %628 : vector<1x1x1x128xf32> to vector<1x128xf32>
    %c0_342 = arith.constant 0 : index
    %c2_343 = arith.constant 2 : index
    %630 = arith.index_cast %c5_i32_335 : i32 to index
    %c0_344 = arith.constant 0 : index
    %631 = vector.load %arg2[%c0_342, %c2_343, %630, %c0_344] : memref<1x3x8x128xf32, #tpu.memory_space<vmem>>, vector<1x1x1x128xf32>
    %632 = vector.shape_cast %631 : vector<1x1x1x128xf32> to vector<1x128xf32>
    %633 = vector.broadcast %626 : vector<1x128xf32> to vector<32x128xf32>
    %634 = arith.mulf %633, %516 : vector<32x128xf32>
    %635 = vector.broadcast %629 : vector<1x128xf32> to vector<32x128xf32>
    %636 = arith.mulf %635, %519 : vector<32x128xf32>
    %637 = arith.addf %634, %636 : vector<32x128xf32>
    %638 = vector.broadcast %632 : vector<1x128xf32> to vector<32x128xf32>
    %639 = arith.mulf %638, %522 : vector<32x128xf32>
    %640 = arith.addf %637, %639 : vector<32x128xf32>
    %cst_345 = arith.constant 0.000000e+00 : f32
    %641 = vector.broadcast %cst_345 : f32 to vector<32x128xf32>
    %642 = arith.maximumf %640, %641 : vector<32x128xf32>
    %643 = arith.maximumf %623, %642 : vector<32x128xf32>
    %c6_i32_346 = arith.constant 6 : i32
    %c0_347 = arith.constant 0 : index
    %c0_348 = arith.constant 0 : index
    %644 = arith.index_cast %c6_i32_346 : i32 to index
    %c0_349 = arith.constant 0 : index
    %645 = vector.load %arg2[%c0_347, %c0_348, %644, %c0_349] : memref<1x3x8x128xf32, #tpu.memory_space<vmem>>, vector<1x1x1x128xf32>
    %646 = vector.shape_cast %645 : vector<1x1x1x128xf32> to vector<1x128xf32>
    %c0_350 = arith.constant 0 : index
    %c1_351 = arith.constant 1 : index
    %647 = arith.index_cast %c6_i32_346 : i32 to index
    %c0_352 = arith.constant 0 : index
    %648 = vector.load %arg2[%c0_350, %c1_351, %647, %c0_352] : memref<1x3x8x128xf32, #tpu.memory_space<vmem>>, vector<1x1x1x128xf32>
    %649 = vector.shape_cast %648 : vector<1x1x1x128xf32> to vector<1x128xf32>
    %c0_353 = arith.constant 0 : index
    %c2_354 = arith.constant 2 : index
    %650 = arith.index_cast %c6_i32_346 : i32 to index
    %c0_355 = arith.constant 0 : index
    %651 = vector.load %arg2[%c0_353, %c2_354, %650, %c0_355] : memref<1x3x8x128xf32, #tpu.memory_space<vmem>>, vector<1x1x1x128xf32>
    %652 = vector.shape_cast %651 : vector<1x1x1x128xf32> to vector<1x128xf32>
    %653 = vector.broadcast %646 : vector<1x128xf32> to vector<32x128xf32>
    %654 = arith.mulf %653, %516 : vector<32x128xf32>
    %655 = vector.broadcast %649 : vector<1x128xf32> to vector<32x128xf32>
    %656 = arith.mulf %655, %519 : vector<32x128xf32>
    %657 = arith.addf %654, %656 : vector<32x128xf32>
    %658 = vector.broadcast %652 : vector<1x128xf32> to vector<32x128xf32>
    %659 = arith.mulf %658, %522 : vector<32x128xf32>
    %660 = arith.addf %657, %659 : vector<32x128xf32>
    %cst_356 = arith.constant 0.000000e+00 : f32
    %661 = vector.broadcast %cst_356 : f32 to vector<32x128xf32>
    %662 = arith.maximumf %660, %661 : vector<32x128xf32>
    %663 = arith.maximumf %643, %662 : vector<32x128xf32>
    %c7_i32_357 = arith.constant 7 : i32
    %c0_358 = arith.constant 0 : index
    %c0_359 = arith.constant 0 : index
    %664 = arith.index_cast %c7_i32_357 : i32 to index
    %c0_360 = arith.constant 0 : index
    %665 = vector.load %arg2[%c0_358, %c0_359, %664, %c0_360] : memref<1x3x8x128xf32, #tpu.memory_space<vmem>>, vector<1x1x1x128xf32>
    %666 = vector.shape_cast %665 : vector<1x1x1x128xf32> to vector<1x128xf32>
    %c0_361 = arith.constant 0 : index
    %c1_362 = arith.constant 1 : index
    %667 = arith.index_cast %c7_i32_357 : i32 to index
    %c0_363 = arith.constant 0 : index
    %668 = vector.load %arg2[%c0_361, %c1_362, %667, %c0_363] : memref<1x3x8x128xf32, #tpu.memory_space<vmem>>, vector<1x1x1x128xf32>
    %669 = vector.shape_cast %668 : vector<1x1x1x128xf32> to vector<1x128xf32>
    %c0_364 = arith.constant 0 : index
    %c2_365 = arith.constant 2 : index
    %670 = arith.index_cast %c7_i32_357 : i32 to index
    %c0_366 = arith.constant 0 : index
    %671 = vector.load %arg2[%c0_364, %c2_365, %670, %c0_366] : memref<1x3x8x128xf32, #tpu.memory_space<vmem>>, vector<1x1x1x128xf32>
    %672 = vector.shape_cast %671 : vector<1x1x1x128xf32> to vector<1x128xf32>
    %673 = vector.broadcast %666 : vector<1x128xf32> to vector<32x128xf32>
    %674 = arith.mulf %673, %516 : vector<32x128xf32>
    %675 = vector.broadcast %669 : vector<1x128xf32> to vector<32x128xf32>
    %676 = arith.mulf %675, %519 : vector<32x128xf32>
    %677 = arith.addf %674, %676 : vector<32x128xf32>
    %678 = vector.broadcast %672 : vector<1x128xf32> to vector<32x128xf32>
    %679 = arith.mulf %678, %522 : vector<32x128xf32>
    %680 = arith.addf %677, %679 : vector<32x128xf32>
    %cst_367 = arith.constant 0.000000e+00 : f32
    %681 = vector.broadcast %cst_367 : f32 to vector<32x128xf32>
    %682 = arith.maximumf %680, %681 : vector<32x128xf32>
    %683 = arith.maximumf %663, %682 : vector<32x128xf32>
    %c8_i32_368 = arith.constant 8 : i32
    %684 = arith.addf %513, %683 : vector<32x128xf32>
    %c0_369 = arith.constant 0 : index
    %c0_370 = arith.constant 0 : index
    %c0_371 = arith.constant 0 : index
    %685 = vector.load %arg4[%c0_369, %c0_370, %c0_371] : memref<1x32x128xf32, #tpu.memory_space<vmem>>, vector<1x32x128xf32>
    %686 = vector.shape_cast %685 : vector<1x32x128xf32> to vector<32x128xf32>
    %687 = vector.shape_cast %684 : vector<32x128xf32> to vector<1x32x128xf32>
    tpu.vector_store %arg4[%c0_369, %c0_370, %c0_371], %687 {strides = array<i32>} : memref<1x32x128xf32, #tpu.memory_space<vmem>>, vector<1x32x128xf32>,
    return
  }
  func.func @transform_0(%arg0: i32, %arg1: i32) -> (i32, i32, i32, i32) {
    %c0_i32 = arith.constant 0 : i32
    %c0_i32_0 = arith.constant 0 : i32
    %c0_i32_1 = arith.constant 0 : i32
    return %arg0, %c0_i32, %c0_i32_0, %arg1 : i32, i32, i32, i32
  }
  func.func @transform_1(%arg0: i32, %arg1: i32) -> (i32, i32) {
    %c0_i32 = arith.constant 0 : i32
    %c0_i32_0 = arith.constant 0 : i32
    %c0_i32_1 = arith.constant 0 : i32
    return %c0_i32, %c0_i32_0 : i32, i32
  }
  func.func @transform_2(%arg0: i32, %arg1: i32) -> (i32, i32, i32) {
    %c0_i32 = arith.constant 0 : i32
    %c0_i32_0 = arith.constant 0 : i32
    return %arg0, %c0_i32, %arg1 : i32, i32, i32
  }
}

</mosaic_0001>

<bundles_post_ra>
// kernel: tpu_custom_call.1
= control target key start
LH: loop header
LB: loop body
LE: loop exit
PB: predicated region body
PF: predicated region fallthrough
CT: control target
= control target key end

     0   :  { %7 = vsyncpa [#allocation3], 0  ;;  %s3166_s0 = inlined_call_operand.vmem [shape: f32[2,3,8,128], index: 0, kind: input, shape index: {}]   ;;  %s3167_s1 = inlined_call_operand.vmem [shape: f32[128,3], index: 1, kind: input, shape index: {}]   ;;  %s3168_s2 = inlined_call_operand.hbm [shape: f32[2,32,128], index: 2, kind: output, shape index: {}]  }
   0x1   :  { %9 = vsyncpa [#allocation3 + $0x1], 0  ;;  %s1776_s9 = smov 0   ;;  %s1778_s10 = smov 0  }
   0x2   :  { %s1780_s11 = smov 0   ;;  %s1782_s12 = smov 0  }
   0x3   :  { %s1784_s13 = smov 0   ;;  %s1786_s14 = smov 0  }
   0x4 LB: > { %s1522_s15 = sadd.s32 4294967295, %s1753_s14   ;;  %s1523_s16 = sadd.s32 4294967294, %s1753_s14   ;;  %s1753_s14 = sphi %s1786_s14, %s15_s14   ;;  %s1749_s13 = sphi %s1784_s13, %s3463_s13   ;;  %s1745_s12 = sphi %s1782_s12, %s3462_s12   ;;  %s1741_s11 = sphi %s1780_s11, %s3461_s11   ;;  %s1737_s10 = sphi %s1778_s10, %s3460_s10   ;;  %s1733_s9 = sphi %s1776_s9, %s3459_s9  }
   0x5   : > { %s27_s17 = sadd.s32 1, %s1749_s13  ;;  %s85_s18 = sadd.s32 1, %s1741_s11 }
   0x6   : > { %p29_p0 = scmp.ge.s32.totalorder %s27_s17, 2  ;;  %p95_p1 = scmp.ne.s32.totalorder %s1741_s11, %s1737_s10 }
   0x7   : > { %p96_p2 = scmp.eq.s32.totalorder %s1522_s15, 1  ;;  %p101_p3 = scmp.ne.s32.totalorder %s1737_s10, %s1733_s9 }
   0x8   : > { %s3465_s17 = smov (%p29_p0, %s27_s17), 0  ;;  %p102_p5 = scmp.eq.s32.totalorder %s1523_s16, 1 }
   0x9   : > { %p1816_p4 = por %p96_p2, %p95_p1  ;;  %s80_s20 = ssub.s32 %s1749_s13, %s3465_s17 }
   0xa   : > { %p1526_p6 = scmp.ge.s32.totalorder %s1753_s14, 1  ;;  %p83_p7 = scmp.eq.s32.totalorder %s80_s20, 0 }
   0xb   : > { %p1823_p8 = por %p102_p5, %p101_p3  ;;  %p134_p9 = scmp.lt.s32.totalorder %s1753_s14, 3 }
   0xc   : > { %s1829_s22 = scalar_select %p83_p7, %s1741_s11, %s85_s18  }
   0xd   : > { %p135_p10 = pnand %p1526_p6, %p134_p9 }
   0xf   : > { %138 = sbr.rel (%p135_p10) target bundleno = 412 (0x19c), region = 28 }
  0x16   : > { %v169_v0 = vld [vmem:[%s3167_s1 + $0x10] sm:$0xff]  ;;  %v167_v1 = vld [vmem:[%s3167_s1] sm:$0xff]  ;;  %v1755_v2 = vmov 0   ;;  %v170_v3 = vld [vmem:[%s3167_s1 + $0x18] sm:$0xff]  ;;  %v1756_v6 = vmov 1   ;;  %v1757_v9 = vmov 2  }
  0x17   : > { %1637 = vset.pattern.permute.xlu1 %v1755_v2  ;;  %1636 = vset.pattern.permute.xlu0 %v1755_v2  ;;  %v168_v4 = vld [vmem:[%s3167_s1 + $0x8] sm:$0xff]  ;;  %v573_v5 = vld [vmem:[%s3167_s1 + $0x20] sm:$0xff]  ;;  %v576_v7 = vld [vmem:[%s3167_s1 + $0x38] sm:$0xff]  ;;  %p159_p11 = scmp.lt.s32.totalorder %s1745_s12, 1  ;;  %s156_s24 = sand.u32 1, %s1737_s10  }
  0x18   : > { %183 = vperm.xlu1 %1637, %v169_v0   ;;  %173 = vperm.xlu0 %1636, %v167_v1   ;;  %v858_v8 = vld [vmem:[%s3167_s1 + $0x48] sm:$0xff]  ;;  %v1141_v10 = vld [vmem:[%s3167_s1 + $0x60] sm:$0xff]  ;;  %v1144_v11 = vld [vmem:[%s3167_s1 + $0x78] sm:$0xff]  ;;  %s1527_s25 = sshll.u32 %s156_s24, 5  ;;  %s1574_s27 = sshll.u32 %s1745_s12, 9 }
  0x19   : > { %v574_v12 = vld [vmem:[%s3167_s1 + $0x28] sm:$0xff]  ;;  %v575_v13 = vld [vmem:[%s3167_s1 + $0x30] sm:$0xff]  ;;  %v857_v14 = vld [vmem:[%s3167_s1 + $0x40] sm:$0xff]  ;;  %s160_s15 = scalar_select %p159_p11, %s1745_s12, 1 }
  0x1a   : > { %v860_v15 = vld [vmem:[%s3167_s1 + $0x58] sm:$0xff]  ;;  %v1142_v16 = vld [vmem:[%s3167_s1 + $0x68] sm:$0xff]  ;;  %v859_v17 = vld [vmem:[%s3167_s1 + $0x50] sm:$0xff]  ;;  %s158_s26 = scalar_lea.vmem [#allocation2], %s1527_s25  ;;  %s3114_s3 = scalar_lea.hbm %s3168_s2, %s1574_s27 }
  0x1b   : > { %v1143_v18 = vld [vmem:[%s3167_s1 + $0x70] sm:$0xff]  ;;  %s1575_s16 = smul.u32 24, %s160_s15  ;;  %s1444_s28 = sshll.u32 %s158_s26, 4  ;;  %s3116_s28 = int_to_ptr.vmem [resolvable:$true] %s1444_s28 }
  0x1c   : > { %188 = vperm.xlu1 %1637, %v170_v3   ;;  %178 = vperm.xlu0 %1636, %v168_v4   ;;  %s3120_s4 = scalar_lea.sflag [#allocation3], %s156_s24  ;;  %s1675_s12 = scalar_lea.vmem %s3116_s28, 512 }
  0x1d   : > { %s1889_s23 = scalar_lea.vmem %s3166_s0, %s1575_s16  ;;  %p1676_p12 = scmp.ne.s32.totalorder %s3116_s28, %s1675_s12 }
  0x1e   : > { %v1892_v19 = vld [vmem:[%s1889_s23] ss:$0 sm:$0xff]  ;;  %v1895_v20 = vld [vmem:[%s1889_s23 + $0x1] ss:$0 sm:$0xff]  ;;  %v1898_v21 = vld [vmem:[%s1889_s23 + $0x2] ss:$0 sm:$0xff] }
  0x1f   : > { %3199 = vst [vmem:[#allocation5_spill] sm:$0xff] %v1898_v21  ;;  %v1901_v22 = vld [vmem:[%s1889_s23 + $0x3] ss:$0 sm:$0xff]  ;;  %v1904_v24 = vld [vmem:[%s1889_s23 + $0x4] ss:$0 sm:$0xff]  ;;  %p1677_p13 = pnand %p1676_p12, %p1816_p4  ;;  %s1758_s5 = smov [#allocation2]  }
  0x20   : > { %1638 = vset.pattern.permute.xlu1 %v1756_v6  ;;  %579 = vperm.xlu0 %1636, %v573_v5   ;;  %v1907_v25 = vld [vmem:[%s1889_s23 + $0x5] ss:$0 sm:$0xff]  ;;  %v1910_v26 = vld [vmem:[%s1889_s23 + $0x6] ss:$0 sm:$0xff]  ;;  %v1913_v28 = vld [vmem:[%s1889_s23 + $0x7] ss:$0 sm:$0xff] }
  0x21   : > { %196 = vperm.xlu1 %1638, %v168_v4   ;;  %v1973_v50 = vld [vmem:[%s1889_s23 + $0x8] ss:$0 sm:$0xff]  ;;  %v1988_v55 = vld [vmem:[%s1889_s23 + $0xa] ss:$0 sm:$0xff]  ;;  %v1991_v56 = vld [vmem:[%s1889_s23 + $0xb] ss:$0 sm:$0xff]  ;;  %p1678_p0 = pneg %p1677_p13 }
  0x22   : > { %v1994_v57 = vld [vmem:[%s1889_s23 + $0xc] ss:$0 sm:$0xff]  ;;  %v2003_v62 = vld [vmem:[%s1889_s23 + $0xd] ss:$0 sm:$0xff]  ;;  %v2006_v63 = vld [vmem:[%s1889_s23 + $0xe] ss:$0 sm:$0xff] }
  0x23   : > { %s1679_s6 = sshll.u32 %s1758_s5, 4  ;;  %s1680_s6 = int_to_ptr.vmem [resolvable:$false] %s1679_s6 }
  0x24   : > { %594 = vperm.xlu0 %1636, %v576_v7   ;;  %s1681_s7 = scalar_lea.vmem %s1680_s6, 1024  ;;  %p1682_p1 = scmp.lt.s32.totalorder %s3116_s28, %s1680_s6 }
  0x25   : > { %200 = vperm.xlu1 %1638, %v169_v0   ;;  %p1683_p2 = scmp.lt.s32.totalorder %s1681_s7, %s1675_s12 }
  0x27   : > { %p1684_p3 = por %p1683_p2, %p1682_p1 }
  0x28   : > { %868 = vperm.xlu0 %1636, %v858_v8  }
  0x29   : > { %1639 = vset.pattern.permute.xlu1 %v1757_v9  ;;  %p1685_p5 = pnand %p1684_p3, %p1678_p0 }
  0x2a   : > { %208 = vperm.xlu1 %1639, %v167_v1  }
  0x2c   : > { %1147 = vperm.xlu0 %1636, %v1141_v10  }
  0x2e   : > { %216 = vperm.xlu1 %1639, %v169_v0   ;;  %v2009_v0 = vld [vmem:[%s1889_s23 + $0xf] ss:$0 sm:$0xff] }
  0x2f   : > { %3209 = vst [vmem:[#allocation15_spill] sm:$0xff] %v2009_v0 }
  0x30   : > { %1162 = vperm.xlu0 %1636, %v1144_v11  }
  0x32   : > { %220 = vperm.xlu1 %1639, %v170_v3  }
  0x34   : > { %1647 = vset.pattern.permute.xlu0 %v1756_v6 }
  0x35   : > { %192 = vperm.xlu0 %1647, %v167_v1  }
  0x36   : > { %1640 = vset.pattern.permute.xlu1 %v1755_v2 }
  0x37   : > { %584 = vperm.xlu1 %1640, %v574_v12  }
  0x39   : > { %204 = vperm.xlu0 %1647, %v170_v3  }
  0x3b   : > { %589 = vperm.xlu1 %1640, %v575_v13  }
  0x3d   : > { %602 = vperm.xlu0 %1647, %v574_v12  }
  0x3f   : > { %1641 = vset.pattern.permute.xlu1 %v1756_v6 }
  0x40   : > { %598 = vperm.xlu1 %1641, %v573_v5  }
  0x41   : > { %882 = vperm.xlu0 %1647, %v857_v14  }
  0x44   : > { %606 = vperm.xlu1 %1641, %v575_v13  }
  0x45   : > { %894 = vperm.xlu0 %1647, %v860_v15  }
  0x48   : > { %610 = vperm.xlu1 %1641, %v576_v7  }
  0x49   : > { %1170 = vperm.xlu0 %1647, %v1142_v16  }
  0x4c   : > { %1642 = vset.pattern.permute.xlu1 %v1757_v9 }
  0x4d   : > { %618 = vperm.xlu1 %1642, %v574_v12   ;;  %1649 = vset.pattern.permute.xlu0 %v1757_v9 }
  0x4e   : > { %212 = vperm.xlu0 %1649, %v168_v4  }
  0x51   : > { %622 = vperm.xlu1 %1642, %v575_v13  }
  0x52   : > { %614 = vperm.xlu0 %1649, %v573_v5  }
  0x55   : > { %1643 = vset.pattern.permute.xlu1 %v1755_v2 }
  0x56   : > { %863 = vperm.xlu1 %1643, %v857_v14   ;;  %626 = vperm.xlu0 %1649, %v576_v7  }
  0x5a   : > { %873 = vperm.xlu1 %1643, %v859_v17   ;;  %902 = vperm.xlu0 %1649, %v858_v8  }
  0x5e   : > { %878 = vperm.xlu1 %1643, %v860_v15   ;;  %1182 = vperm.xlu0 %1649, %v1141_v10  }
  0x62   : > { %1644 = vset.pattern.permute.xlu1 %v1756_v6  ;;  %1194 = vperm.xlu0 %1649, %v1144_v11  }
  0x63   : > { %886 = vperm.xlu1 %1644, %v858_v8  }
  0x67   : > { %890 = vperm.xlu1 %1644, %v859_v17  }
  0x6b   : > { %1645 = vset.pattern.permute.xlu1 %v1757_v9 }
  0x6c   : > { %898 = vperm.xlu1 %1645, %v857_v14  }
  0x70   : > { %906 = vperm.xlu1 %1645, %v859_v17  }
  0x74   : > { %910 = vperm.xlu1 %1645, %v860_v15  }
  0x78   : > { %1646 = vset.pattern.permute.xlu1 %v1755_v2 }
  0x79   : > { %1152 = vperm.xlu1 %1646, %v1142_v16  }
  0x7d   : > { %1157 = vperm.xlu1 %1646, %v1143_v18  }
  0x81   : > { %1648 = vset.pattern.permute.xlu1 %v1756_v6 }
  0x82   : > { %1166 = vperm.xlu1 %1648, %v1141_v10  }
  0x86   : > { %1174 = vperm.xlu1 %1648, %v1143_v18  }
  0x8a   : > { %1178 = vperm.xlu1 %1648, %v1144_v11   ;;  %v2020_v11 = vld [vmem:[%s1889_s23 + $0x9] ss:$0 sm:$0xff] }
  0x8e   : > { %1650 = vset.pattern.permute.xlu1 %v1757_v9 }
  0x8f   : > { %1186 = vperm.xlu1 %1650, %v1142_v16  }
  0x93   : > { %1190 = vperm.xlu1 %1650, %v1143_v18  }
  0x97   : > { %v184_v23 = vpop.permute.xlu1 %183  ;;  %v174_v27 = vpop.permute.xlu0 %173 }
  0x98   : > { %v1916_v29 = vmul.f32 %v1892_v19, %v184_v23  ;;  %v1919_v30 = vmul.f32 %v1895_v20, %v184_v23  ;;  %v1922_v31 = vmul.f32 %v1898_v21, %v184_v23  ;;  %v1925_v32 = vmul.f32 %v1901_v22, %v184_v23 }
  0x99   : > { %v1928_v33 = vmul.f32 %v1904_v24, %v184_v23  ;;  %v1931_v34 = vmul.f32 %v1907_v25, %v184_v23  ;;  %v1934_v35 = vmul.f32 %v1910_v26, %v184_v23  ;;  %v1937_v36 = vmul.f32 %v1913_v28, %v184_v23 }
  0x9a   : > { %v1940_v37 = vmul.f32 %v1892_v19, %v174_v27  ;;  %v1943_v38 = vmul.f32 %v1895_v20, %v174_v27  ;;  %v1946_v39 = vmul.f32 %v1898_v21, %v174_v27  ;;  %v1949_v42 = vmul.f32 %v1901_v22, %v174_v27 }
  0x9b   : > { %v189_v40 = vpop.permute.xlu1 %188  ;;  %v179_v41 = vpop.permute.xlu0 %178  ;;  %v1952_v43 = vmul.f32 %v1904_v24, %v174_v27  ;;  %v1955_v44 = vmul.f32 %v1907_v25, %v174_v27  ;;  %v1958_v45 = vmul.f32 %v1910_v26, %v174_v27  ;;  %v1961_v46 = vmul.f32 %v1913_v28, %v174_v27 }
  0x9c   : > { %v1964_v47 = vmul.f32 %v1892_v19, %v189_v40  ;;  %v1967_v48 = vmul.f32 %v1895_v20, %v189_v40  ;;  %v1970_v49 = vmul.f32 %v1898_v21, %v189_v40  ;;  %v1976_v51 = vmul.f32 %v1901_v22, %v189_v40 }
  0x9d   : > { %3200 = vst [vmem:[#allocation6_spill] sm:$0xff] %v1961_v46  ;;  %v1979_v52 = vmul.f32 %v1904_v24, %v189_v40  ;;  %v1982_v53 = vmul.f32 %v1907_v25, %v189_v40  ;;  %v1985_v54 = vmul.f32 %v1910_v26, %v189_v40  ;;  %v1997_v58 = vmul.f32 %v1913_v28, %v189_v40 }
  0x9e   : > { %3201 = vst [vmem:[#allocation7_spill] sm:$0xff] %v1964_v47  ;;  %3202 = vst [vmem:[#allocation8_spill] sm:$0xff] %v1967_v48  ;;  %v233_v59 = vmul.f32 %v1892_v19, %v179_v41  ;;  %v319_v60 = vmul.f32 %v1898_v21, %v179_v41  ;;  %v362_v61 = vmul.f32 %v1901_v22, %v179_v41 }
  0x9f   : > { %3203 = vst [vmem:[#allocation9_spill] sm:$0xff] %v1970_v49  ;;  %3204 = vst [vmem:[#allocation10_spill] sm:$0xff] %v1976_v51  ;;  %v580_v1 = vpop.permute.xlu0 %579  ;;  %v405_v2 = vmul.f32 %v1904_v24, %v179_v41  ;;  %v448_v3 = vmul.f32 %v1907_v25, %v179_v41  ;;  %v491_v4 = vmul.f32 %v1910_v26, %v179_v41 }
  0xa0   : > { %3205 = vst [vmem:[#allocation11_spill] sm:$0xff] %v1979_v52  ;;  %3206 = vst [vmem:[#allocation12_spill] sm:$0xff] %v1982_v53  ;;  %v534_v5 = vmul.f32 %v1913_v28, %v179_v41  ;;  %v197_v6 = vpop.permute.xlu1 %196  ;;  %v276_v7 = vmul.f32 %v1895_v20, %v179_v41  ;;  %v2031_v18 = vmul.f32 %v1892_v19, %v580_v1 }
  0xa1   : > { %3207 = vst [vmem:[#allocation13_spill] sm:$0xff] %v1985_v54  ;;  %3208 = vst [vmem:[#allocation14_spill] sm:$0xff] %v1997_v58  ;;  %v241_v8 = vmul.f32 %v1973_v50, %v197_v6  ;;  %v327_v9 = vmul.f32 %v1988_v55, %v197_v6  ;;  %v370_v10 = vmul.f32 %v1991_v56, %v197_v6 }
  0xa2   : > { %v413_v12 = vmul.f32 %v1994_v57, %v197_v6  ;;  %v456_v13 = vmul.f32 %v2003_v62, %v197_v6  ;;  %v499_v14 = vmul.f32 %v2006_v63, %v197_v6  ;;  %v542_v15 = vmul.f32 %v2009_v0, %v197_v6  ;;  %3212 = vst [vmem:[#allocation18_spill] sm:$0xff] %v2031_v18 }
  0xa3   : > { %v2026_v16 = vadd.f32 %v327_v9, %v319_v60  ;;  %v2028_v17 = vadd.f32 %v370_v10, %v362_v61  ;;  %v2034_v23 = vmul.f32 %v1895_v20, %v580_v1  ;;  %v595_v27 = vpop.permute.xlu0 %594  ;;  %v2044_v60 = vadd.f32 %v241_v8, %v233_v59 }
  0xa4   : > { %v2036_v40 = vadd.f32 %v413_v12, %v405_v2  ;;  %v2038_v41 = vadd.f32 %v456_v13, %v448_v3  ;;  %v2040_v58 = vadd.f32 %v499_v14, %v491_v4  ;;  %v2042_v54 = vadd.f32 %v542_v15, %v534_v5  ;;  %v201_v53 = vpop.permute.xlu1 %200 }
  0xa5   : > { %3210 = vst [vmem:[#allocation16_spill] sm:$0xff] %v2026_v16  ;;  %3211 = vst [vmem:[#allocation17_spill] sm:$0xff] %v2028_v17  ;;  %v284_v61 = vmul.f32 %v2020_v11, %v197_v6  ;;  %v2048_v9 = vmul.f32 %v1898_v21, %v580_v1  ;;  %v2051_v10 = vmul.f32 %v1901_v22, %v580_v1 }
  0xa6   : > { %3213 = vst [vmem:[#allocation19_spill] sm:$0xff] %v2034_v23  ;;  %3214 = vst [vmem:[#allocation20_spill] sm:$0xff] %v2036_v40  ;;  %v242_v2 = vmul.f32 %v1973_v50, %v201_v53  ;;  %v285_v3 = vmul.f32 %v2020_v11, %v201_v53  ;;  %v328_v4 = vmul.f32 %v1988_v55, %v201_v53 }
  0xa7   : > { %3215 = vst [vmem:[#allocation21_spill] sm:$0xff] %v2038_v41  ;;  %3216 = vst [vmem:[#allocation22_spill] sm:$0xff] %v2040_v58  ;;  %v371_v5 = vmul.f32 %v1991_v56, %v201_v53  ;;  %v414_v12 = vmul.f32 %v1994_v57, %v201_v53  ;;  %v457_v59 = vmul.f32 %v2003_v62, %v201_v53  ;;  %v869_v13 = vpop.permute.xlu0 %868 }
  0xa8   : > { %3217 = vst [vmem:[#allocation23_spill] sm:$0xff] %v2042_v54  ;;  %3218 = vst [vmem:[#allocation24_spill] sm:$0xff] %v2044_v60  ;;  %v500_v6 = vmul.f32 %v2006_v63, %v201_v53  ;;  %v543_v8 = vmul.f32 %v2009_v0, %v201_v53  ;;  %v246_v14 = vadd.f32 %v242_v2, %v1916_v29  ;;  %v2129_v60 = vld [vmem:[%s1889_s23 + $0x14] ss:$0 sm:$0xff] }
  0xa9   : > { %3219 = vst [vmem:[#allocation25_spill] sm:$0xff] %v2048_v9  ;;  %3220 = vst [vmem:[#allocation26_spill] sm:$0xff] %v2051_v10  ;;  %v289_v15 = vadd.f32 %v285_v3, %v1919_v30  ;;  %v332_v54 = vadd.f32 %v328_v4, %v1922_v31  ;;  %v375_v58 = vadd.f32 %v371_v5, %v1925_v32  ;;  %v209_v53 = vpop.permute.xlu1 %208  ;;  %v2108_v4 = vld [vmem:[%s1889_s23 + $0x11] ss:$0 sm:$0xff]  ;;  %v2111_v5 = vld [vmem:[%s1889_s23 + $0x12] ss:$0 sm:$0xff] }
  0xaa   : > { %v418_v41 = vadd.f32 %v414_v12, %v1928_v33  ;;  %v461_v40 = vadd.f32 %v457_v59, %v1931_v34  ;;  %v504_v17 = vadd.f32 %v500_v6, %v1934_v35  ;;  %v547_v16 = vadd.f32 %v543_v8, %v1937_v36  ;;  %v2114_v12 = vld [vmem:[%s1889_s23 + $0x13] ss:$0 sm:$0xff]  ;;  %3238 = vst [vmem:[#allocation44_spill] sm:$0xff] %v2129_v60 }
  0xab   : > { %v2069_v29 = vadd.f32 %v284_v61, %v276_v7  ;;  %v2072_v30 = vmul.f32 %v1904_v24, %v580_v1  ;;  %v2075_v31 = vmul.f32 %v1907_v25, %v580_v1  ;;  %v2078_v32 = vmul.f32 %v1910_v26, %v580_v1  ;;  %v2093_v7 = vld [vmem:[%s1889_s23 + $0x10] ss:$0 sm:$0xff]  ;;  %3233 = vst [vmem:[#allocation39_spill] sm:$0xff] %v2114_v12 }
  0xac   : > { %v2081_v33 = vmul.f32 %v1913_v28, %v580_v1  ;;  %v2084_v34 = vmul.f32 %v1892_v19, %v595_v27  ;;  %v2087_v35 = vmul.f32 %v1895_v20, %v595_v27  ;;  %v2090_v36 = vmul.f32 %v1898_v21, %v595_v27 }
  0xad   : > { %3221 = vst [vmem:[#allocation27_spill] sm:$0xff] %v2069_v29  ;;  %3222 = vst [vmem:[#allocation28_spill] sm:$0xff] %v2072_v30  ;;  %v2096_v61 = vmul.f32 %v1901_v22, %v595_v27  ;;  %v2099_v1 = vmul.f32 %v1904_v24, %v595_v27  ;;  %v2102_v2 = vmul.f32 %v1907_v25, %v595_v27 }
  0xae   : > { %3223 = vst [vmem:[#allocation29_spill] sm:$0xff] %v2075_v31  ;;  %3224 = vst [vmem:[#allocation30_spill] sm:$0xff] %v2078_v32  ;;  %v2105_v3 = vmul.f32 %v1910_v26, %v595_v27  ;;  %v2117_v59 = vmul.f32 %v1913_v28, %v595_v27  ;;  %v2120_v6 = vmul.f32 %v1892_v19, %v869_v13 }
  0xaf   : > { %3225 = vst [vmem:[#allocation31_spill] sm:$0xff] %v2081_v33  ;;  %3226 = vst [vmem:[#allocation32_spill] sm:$0xff] %v2084_v34  ;;  %v2123_v8 = vmul.f32 %v1895_v20, %v869_v13  ;;  %v2126_v29 = vmul.f32 %v1898_v21, %v869_v13  ;;  %v2141_v27 = vmul.f32 %v1904_v24, %v869_v13 }
  0xb0   : > { %3227 = vst [vmem:[#allocation33_spill] sm:$0xff] %v2087_v35  ;;  %3228 = vst [vmem:[#allocation34_spill] sm:$0xff] %v2090_v36  ;;  %v1148_v36 = vpop.permute.xlu0 %1147  ;;  %v2138_v35 = vmul.f32 %v1901_v22, %v869_v13  ;;  %v2153_v34 = vmul.f32 %v1913_v28, %v869_v13 }
  0xb1   : > { %3229 = vst [vmem:[#allocation35_spill] sm:$0xff] %v2096_v61  ;;  %3230 = vst [vmem:[#allocation36_spill] sm:$0xff] %v2099_v1  ;;  %v2132_v1 = vld [vmem:[%s1889_s23 + $0x15] ss:$0 sm:$0xff]  ;;  %v2135_v61 = vld [vmem:[%s1889_s23 + $0x16] ss:$0 sm:$0xff]  ;;  %v2180_v9 = vmul.f32 %v1892_v19, %v1148_v36  ;;  %v2183_v33 = vmul.f32 %v1895_v20, %v1148_v36  ;;  %v2186_v32 = vmul.f32 %v1898_v21, %v1148_v36 }
  0xb2   : > { %3231 = vst [vmem:[#allocation37_spill] sm:$0xff] %v2102_v2  ;;  %3232 = vst [vmem:[#allocation38_spill] sm:$0xff] %v2105_v3  ;;  %v2159_v3 = vmul.f32 %v2108_v4, %v209_v53  ;;  %v2171_v2 = vmul.f32 %v2132_v1, %v209_v53 }
  0xb3   : > { %3234 = vst [vmem:[#allocation40_spill] sm:$0xff] %v2117_v59  ;;  %3235 = vst [vmem:[#allocation41_spill] sm:$0xff] %v2120_v6  ;;  %v2144_v6 = vmul.f32 %v1907_v25, %v869_v13  ;;  %v2156_v59 = vmul.f32 %v2093_v7, %v209_v53 }
  0xb4   : > { %3236 = vst [vmem:[#allocation42_spill] sm:$0xff] %v2123_v8  ;;  %3237 = vst [vmem:[#allocation43_spill] sm:$0xff] %v2126_v29  ;;  %v2147_v8 = vmul.f32 %v1910_v26, %v869_v13  ;;  %v2150_v29 = vld [vmem:[%s1889_s23 + $0x17] ss:$0 sm:$0xff]  ;;  %v2174_v13 = vmul.f32 %v2135_v61, %v209_v53 }
  0xb5   : > { %3239 = vst [vmem:[#allocation45_spill] sm:$0xff] %v2135_v61  ;;  %3240 = vst [vmem:[#allocation46_spill] sm:$0xff] %v2138_v35  ;;  %v2162_v35 = vmul.f32 %v2111_v5, %v209_v53 }
  0xb6   : > { %3241 = vst [vmem:[#allocation47_spill] sm:$0xff] %v2141_v27  ;;  %3242 = vst [vmem:[#allocation48_spill] sm:$0xff] %v2144_v6  ;;  %v217_v27 = vpop.permute.xlu1 %216  ;;  %v2165_v6 = vmul.f32 %v2114_v12, %v209_v53 }
  0xb7   : > { %3243 = vst [vmem:[#allocation49_spill] sm:$0xff] %v2147_v8  ;;  %3244 = vst [vmem:[#allocation50_spill] sm:$0xff] %v2150_v29  ;;  %v2168_v8 = vmul.f32 %v2129_v60, %v209_v53  ;;  %v254_v31 = vmul.f32 %v2093_v7, %v217_v27  ;;  %v297_v23 = vmul.f32 %v2108_v4, %v217_v27 }
  0xb8   : > { %3245 = vst [vmem:[#allocation51_spill] sm:$0xff] %v2153_v34  ;;  %v2177_v34 = vmul.f32 %v2150_v29, %v209_v53  ;;  %3247 = vst [vmem:[#allocation53_spill] sm:$0xff] %v2180_v9  ;;  %v340_v18 = vmul.f32 %v2111_v5, %v217_v27  ;;  %v383_v30 = vmul.f32 %v2114_v12, %v217_v27 }
  0xb9   : > { %3248 = vst [vmem:[#allocation54_spill] sm:$0xff] %v2183_v33  ;;  %3249 = vst [vmem:[#allocation55_spill] sm:$0xff] %v2186_v32  ;;  %v426_v53 = vmul.f32 %v2129_v60, %v217_v27  ;;  %v469_v10 = vmul.f32 %v2132_v1, %v217_v27  ;;  %v512_v9 = vmul.f32 %v2135_v61, %v217_v27  ;;  %v1163_v33 = vpop.permute.xlu0 %1162 }
  0xba   : > { %3246 = vst [vmem:[#allocation52_spill] sm:$0xff] %v2177_v34  ;;  %v555_v52 = vmul.f32 %v2150_v29, %v217_v27  ;;  %v258_v51 = vadd.f32 %v254_v31, %v246_v14  ;;  %v301_v49 = vadd.f32 %v297_v23, %v289_v15  ;;  %v344_v32 = vadd.f32 %v340_v18, %v332_v54 }
  0xbb   : > { %v387_v48 = vadd.f32 %v383_v30, %v375_v58  ;;  %v430_v47 = vadd.f32 %v426_v53, %v418_v41  ;;  %v473_v34 = vadd.f32 %v469_v10, %v461_v40  ;;  %v516_v46 = vadd.f32 %v512_v9, %v504_v17  ;;  %v221_v40 = vpop.permute.xlu1 %220 }
  0xbc   : > { %v2196_v0 = vadd.f32 %v555_v52, %v547_v16  ;;  %v2199_v12 = vmul.f32 %v1901_v22, %v1148_v36  ;;  %v2202_v60 = vmul.f32 %v1904_v24, %v1148_v36  ;;  %v2205_v61 = vmul.f32 %v1907_v25, %v1148_v36 }
  0xbd   : > { %v262_v27 = vmax.f32 %v258_v51, 0.0  ;;  %v2208_v14 = vmul.f32 %v1910_v26, %v1148_v36  ;;  %v2211_v54 = vmul.f32 %v1913_v28, %v1148_v36  ;;  %v305_v58 = vmax.f32 %v301_v49, 0.0  ;;  %v193_v15 = vpop.permute.xlu0 %192 }
  0xbe   : > { %3250 = vst [vmem:[#allocation56_spill] sm:$0xff] %v2199_v12  ;;  %3251 = vst [vmem:[#allocation57_spill] sm:$0xff] %v2202_v60  ;;  %v348_v17 = vmax.f32 %v344_v32, 0.0  ;;  %v391_v16 = vmax.f32 %v387_v48, 0.0  ;;  %v434_v18 = vmax.f32 %v430_v47, 0.0  ;;  %v477_v23 = vmax.f32 %v473_v34, 0.0 }
  0xbf   : > { %3252 = vst [vmem:[#allocation58_spill] sm:$0xff] %v2205_v61  ;;  %3253 = vst [vmem:[#allocation59_spill] sm:$0xff] %v2208_v14  ;;  %v266_v52 = vmax.f32 %v262_v27, 0.0  ;;  %v520_v41 = vmax.f32 %v516_v46, 0.0  ;;  %v563_v9 = vmax.f32 %v2196_v0, 0.0  ;;  %v2215_v10 = vmul.f32 %v1892_v19, %v1163_v33  ;;  %v3274_v61 = vld [vmem:[#allocation11_spill] sm:$0xff] }
  0xc0   : > { %3254 = vst [vmem:[#allocation60_spill] sm:$0xff] %v2211_v54  ;;  %v2218_v51 = vmul.f32 %v1895_v20, %v1163_v33  ;;  %v2221_v31 = vmul.f32 %v1898_v21, %v1163_v33  ;;  %v2224_v49 = vmul.f32 %v1901_v22, %v1163_v33  ;;  %v2227_v47 = vmul.f32 %v1904_v24, %v1163_v33 }
  0xc1   : > { %3255 = vst [vmem:[#allocation61_spill] sm:$0xff] %v2215_v10  ;;  %v309_v30 = vmax.f32 %v266_v52, %v305_v58  ;;  %v2230_v46 = vmul.f32 %v1907_v25, %v1163_v33  ;;  %v2233_v48 = vmul.f32 %v1910_v26, %v1163_v33  ;;  %v2236_v0 = vmul.f32 %v1913_v28, %v1163_v33 }
  0xc2   : > { %3256 = vst [vmem:[#allocation62_spill] sm:$0xff] %v2218_v51  ;;  %3257 = vst [vmem:[#allocation63_spill] sm:$0xff] %v2221_v31  ;;  %v2239_v32 = vmul.f32 %v2093_v7, %v221_v40  ;;  %v2242_v36 = vmul.f32 %v2108_v4, %v221_v40  ;;  %v2245_v53 = vmul.f32 %v2111_v5, %v221_v40 }
  0xc3   : > { %3258 = vst [vmem:[#allocation64_spill] sm:$0xff] %v2224_v49  ;;  %3259 = vst [vmem:[#allocation65_spill] sm:$0xff] %v2227_v47  ;;  %v352_v34 = vmax.f32 %v309_v30, %v348_v17  ;;  %v240_v27 = vmul.f32 %v1973_v50, %v193_v15  ;;  %v283_v58 = vmul.f32 %v2020_v11, %v193_v15 }
  0xc4   : > { %3260 = vst [vmem:[#allocation66_spill] sm:$0xff] %v2230_v46  ;;  %3261 = vst [vmem:[#allocation67_spill] sm:$0xff] %v2233_v48  ;;  %v326_v52 = vmul.f32 %v1988_v55, %v193_v15  ;;  %v369_v48 = vmul.f32 %v1991_v56, %v193_v15  ;;  %v412_v33 = vmul.f32 %v1994_v57, %v193_v15 }
  0xc5   : > { %3262 = vst [vmem:[#allocation68_spill] sm:$0xff] %v2236_v0  ;;  %v395_v0 = vmax.f32 %v352_v34, %v391_v16  ;;  %v244_v46 = vadd.f32 %v240_v27, %v1940_v37  ;;  %v455_v17 = vmul.f32 %v2003_v62, %v193_v15  ;;  %v498_v30 = vmul.f32 %v2006_v63, %v193_v15 }
  0xc6   : > { %v287_v47 = vadd.f32 %v283_v58, %v1943_v38  ;;  %v330_v49 = vadd.f32 %v326_v52, %v1946_v39  ;;  %v373_v31 = vadd.f32 %v369_v48, %v1949_v42  ;;  %v416_v51 = vadd.f32 %v412_v33, %v1952_v43  ;;  %v3265_v48 = vld [vmem:[#allocation45_spill] sm:$0xff]  ;;  %v3268_v33 = vld [vmem:[#allocation6_spill] sm:$0xff] }
  0xc7   : > { %v438_v10 = vmax.f32 %v395_v0, %v434_v18  ;;  %v256_v54 = vadd.f32 %v2156_v59, %v244_v46  ;;  %v459_v14 = vadd.f32 %v455_v17, %v1955_v44  ;;  %v502_v16 = vadd.f32 %v498_v30, %v1958_v45  ;;  %v3263_v18 = vld [vmem:[#allocation39_spill] sm:$0xff]  ;;  %v3264_v46 = vld [vmem:[#allocation44_spill] sm:$0xff] }
  0xc8   : > { %v299_v37 = vadd.f32 %v2159_v3, %v287_v47  ;;  %v342_v34 = vadd.f32 %v2162_v35, %v330_v49  ;;  %v385_v27 = vadd.f32 %v2165_v6, %v373_v31  ;;  %v428_v38 = vadd.f32 %v2168_v8, %v416_v51  ;;  %v205_v51 = vpop.permute.xlu0 %204 }
  0xc9   : > { %v481_v39 = vmax.f32 %v438_v10, %v477_v23  ;;  %v260_v58 = vmax.f32 %v256_v54, 0.0  ;;  %v471_v42 = vadd.f32 %v2171_v2, %v459_v14  ;;  %v514_v43 = vadd.f32 %v2174_v13, %v502_v16  ;;  %v585_v23 = vpop.permute.xlu1 %584  ;;  %v3266_v14 = vld [vmem:[#allocation15_spill] sm:$0xff] }
  0xca   : > { %v384_v59 = vmul.f32 %v3263_v18, %v221_v40  ;;  %v427_v44 = vmul.f32 %v3264_v46, %v221_v40  ;;  %v470_v45 = vmul.f32 %v2132_v1, %v221_v40  ;;  %v513_v3 = vmul.f32 %v3265_v48, %v221_v40 }
  0xcb   : > { %v524_v47 = vmax.f32 %v481_v39, %v520_v41  ;;  %v2273_v35 = vmul.f32 %v2150_v29, %v221_v40  ;;  %v264_v6 = vmax.f32 %v260_v58, 0.0  ;;  %v303_v8 = vmax.f32 %v299_v37, 0.0 }
  0xcc   : > { %v346_v54 = vmax.f32 %v342_v34, 0.0  ;;  %v389_v10 = vmax.f32 %v385_v27, 0.0  ;;  %v432_v2 = vmax.f32 %v428_v38, 0.0  ;;  %v541_v13 = vmul.f32 %v3266_v14, %v193_v15  ;;  %v3269_v34 = vld [vmem:[#allocation52_spill] sm:$0xff] }
  0xcd   : > { %v2276_v31 = vmax.f32 %v524_v47, %v563_v9  ;;  %v307_v49 = vmax.f32 %v264_v6, %v303_v8  ;;  %v475_v0 = vmax.f32 %v471_v42, 0.0  ;;  %v518_v52 = vmax.f32 %v514_v43, 0.0  ;;  %v3270_v43 = vld [vmem:[#allocation7_spill] sm:$0xff]  ;;  %v3271_v6 = vld [vmem:[#allocation8_spill] sm:$0xff] }
  0xce   : > { %v545_v17 = vadd.f32 %v541_v13, %v3268_v33  ;;  %v2280_v41 = vmul.f32 %v1892_v19, %v585_v23  ;;  %v2283_v40 = vmul.f32 %v1895_v20, %v585_v23  ;;  %v2286_v30 = vmul.f32 %v1898_v21, %v585_v23  ;;  %v3273_v33 = vld [vmem:[#allocation10_spill] sm:$0xff] }
  0xcf   : > { %3267 = vst [vmem:[#allocation39_spill] sm:$0xff] %v2276_v31  ;;  %v350_v16 = vmax.f32 %v307_v49, %v346_v54  ;;  %v243_v15 = vmul.f32 %v1973_v50, %v205_v51  ;;  %v286_v9 = vmul.f32 %v2020_v11, %v205_v51  ;;  %v329_v37 = vmul.f32 %v1988_v55, %v205_v51  ;;  %v3272_v54 = vld [vmem:[#allocation9_spill] sm:$0xff] }
  0xd0   : > { %v557_v27 = vadd.f32 %v3269_v34, %v545_v17  ;;  %v372_v38 = vmul.f32 %v1991_v56, %v205_v51  ;;  %v415_v39 = vmul.f32 %v1994_v57, %v205_v51  ;;  %v458_v58 = vmul.f32 %v2003_v62, %v205_v51  ;;  %v3275_v34 = vld [vmem:[#allocation12_spill] sm:$0xff] }
  0xd1   : > { %v393_v42 = vmax.f32 %v350_v16, %v389_v10  ;;  %v247_v47 = vadd.f32 %v243_v15, %v3270_v43  ;;  %v290_v8 = vadd.f32 %v286_v9, %v3271_v6  ;;  %v333_v13 = vadd.f32 %v329_v37, %v3272_v54 }
  0xd2   : > { %v2299_v49 = vmul.f32 %v1901_v22, %v585_v23  ;;  %v376_v31 = vadd.f32 %v372_v38, %v3273_v33  ;;  %v419_v17 = vadd.f32 %v415_v39, %v3274_v61  ;;  %v462_v60 = vadd.f32 %v458_v58, %v3275_v34  ;;  %v3276_v58 = vld [vmem:[#allocation13_spill] sm:$0xff] }
  0xd3   : > { %v436_v12 = vmax.f32 %v393_v42, %v432_v2  ;;  %v259_v29 = vadd.f32 %v2239_v32, %v247_v47  ;;  %v302_v10 = vadd.f32 %v2242_v36, %v290_v8  ;;  %v345_v16 = vadd.f32 %v2245_v53, %v333_v13  ;;  %v603_v47 = vpop.permute.xlu0 %602  ;;  %v3278_v13 = vld [vmem:[#allocation14_spill] sm:$0xff] }
  0xd4   : > { %v388_v15 = vadd.f32 %v384_v59, %v376_v31  ;;  %v431_v9 = vadd.f32 %v427_v44, %v419_v17  ;;  %v474_v43 = vadd.f32 %v470_v45, %v462_v60  ;;  %v501_v37 = vmul.f32 %v2006_v63, %v205_v51  ;;  %v590_v44 = vpop.permute.xlu1 %589 }
  0xd5   : > { %v479_v6 = vmax.f32 %v436_v12, %v475_v0  ;;  %v742_v54 = vmul.f32 %v1904_v24, %v585_v23  ;;  %v770_v38 = vmul.f32 %v1907_v25, %v585_v23  ;;  %v263_v61 = vmax.f32 %v259_v29, 0.0 }
  0xd6   : > { %v561_v39 = vmax.f32 %v557_v27, 0.0  ;;  %v798_v2 = vmul.f32 %v1910_v26, %v585_v23  ;;  %v826_v32 = vmul.f32 %v1913_v28, %v585_v23  ;;  %v505_v36 = vadd.f32 %v501_v37, %v3276_v58 }
  0xd7   : > { %v522_v42 = vmax.f32 %v479_v6, %v518_v52  ;;  %v267_v53 = vmax.f32 %v263_v61, 0.0  ;;  %v306_v59 = vmax.f32 %v302_v10, 0.0  ;;  %v544_v60 = vmul.f32 %v3266_v14, %v205_v51 }
  0xd8   : > { %v349_v45 = vmax.f32 %v345_v16, 0.0  ;;  %v392_v12 = vmax.f32 %v388_v15, 0.0  ;;  %v435_v31 = vmax.f32 %v431_v9, 0.0  ;;  %v517_v0 = vadd.f32 %v513_v3, %v505_v36  ;;  %v599_v58 = vpop.permute.xlu1 %598 }
  0xd9   : > { %v2314_v8 = vmax.f32 %v522_v42, %v561_v39  ;;  %v310_v29 = vmax.f32 %v267_v53, %v306_v59  ;;  %v478_v27 = vmax.f32 %v474_v43, 0.0  ;;  %v548_v33 = vadd.f32 %v544_v60, %v3278_v13 }
  0xda   : > { %v2318_v23 = vmul.f32 %v1892_v19, %v590_v44  ;;  %v2321_v52 = vmul.f32 %v1895_v20, %v590_v44  ;;  %v2324_v51 = vmul.f32 %v1898_v21, %v590_v44  ;;  %v2327_v17 = vmul.f32 %v1901_v22, %v590_v44 }
  0xdb   : > { %3277 = vst [vmem:[#allocation44_spill] sm:$0xff] %v2314_v8  ;;  %v353_v3 = vmax.f32 %v310_v29, %v349_v45  ;;  %v560_v34 = vadd.f32 %v2273_v35, %v548_v33  ;;  %v634_v10 = vmul.f32 %v1973_v50, %v603_v47  ;;  %v662_v16 = vmul.f32 %v2020_v11, %v603_v47  ;;  %v3279_v29 = vld [vmem:[#allocation26_spill] sm:$0xff]  ;;  %v3280_v33 = vld [vmem:[#allocation28_spill] sm:$0xff] }
  0xdc   : > { %v521_v15 = vmax.f32 %v517_v0, 0.0  ;;  %v743_v9 = vmul.f32 %v1904_v24, %v590_v44  ;;  %v771_v43 = vmul.f32 %v1907_v25, %v590_v44  ;;  %v799_v37 = vmul.f32 %v1910_v26, %v590_v44 }
  0xdd   : > { %v396_v6 = vmax.f32 %v353_v3, %v392_v12  ;;  %v690_v61 = vmul.f32 %v1988_v55, %v603_v47  ;;  %v718_v22 = vmul.f32 %v1991_v56, %v603_v47  ;;  %v746_v39 = vmul.f32 %v1994_v57, %v603_v47 }
  0xde   : > { %v564_v35 = vmax.f32 %v560_v34, 0.0  ;;  %v827_v36 = vmul.f32 %v1913_v28, %v590_v44  ;;  %v2340_v42 = vadd.f32 %v634_v10, %v2280_v41  ;;  %v774_v24 = vmul.f32 %v2003_v62, %v603_v47 }
  0xdf   : > { %v439_v53 = vmax.f32 %v396_v6, %v435_v31  ;;  %v2344_v25 = vadd.f32 %v662_v16, %v2283_v40  ;;  %v802_v26 = vmul.f32 %v2006_v63, %v603_v47  ;;  %v830_v59 = vmul.f32 %v3266_v14, %v603_v47  ;;  %v3282_v6 = vld [vmem:[#allocation19_spill] sm:$0xff] }
  0xe0   : > { %v633_v60 = vmul.f32 %v1973_v50, %v599_v58  ;;  %v661_v45 = vmul.f32 %v2020_v11, %v599_v58  ;;  %v717_v12 = vmul.f32 %v1991_v56, %v599_v58  ;;  %v745_v28 = vmul.f32 %v1994_v57, %v599_v58 }
  0xe1   : > { %v482_v41 = vmax.f32 %v439_v53, %v478_v27  ;;  %v2353_v44 = vadd.f32 %v690_v61, %v2286_v30  ;;  %v2356_v31 = vadd.f32 %v718_v22, %v2299_v49  ;;  %v2358_v40 = vadd.f32 %v746_v39, %v742_v54  ;;  %v883_v22 = vpop.permute.xlu0 %882  ;;  %v607_v39 = vpop.permute.xlu1 %606 }
  0xe2   : > { %v2360_v0 = vadd.f32 %v774_v24, %v770_v38  ;;  %v689_v47 = vmul.f32 %v1988_v55, %v599_v58  ;;  %v2364_v13 = vadd.f32 %v717_v12, %v3279_v29  ;;  %v2367_v3 = vadd.f32 %v745_v28, %v3280_v33  ;;  %v3281_v38 = vld [vmem:[#allocation18_spill] sm:$0xff] }
  0xe3   : > { %v525_v34 = vmax.f32 %v482_v41, %v521_v15  ;;  %v773_v27 = vmul.f32 %v2003_v62, %v599_v58  ;;  %v801_v30 = vmul.f32 %v2006_v63, %v599_v58  ;;  %v829_v49 = vmul.f32 %v3266_v14, %v599_v58  ;;  %v3284_v15 = vld [vmem:[#allocation29_spill] sm:$0xff]  ;;  %v3285_v12 = vld [vmem:[#allocation30_spill] sm:$0xff] }
  0xe4   : > { %v2372_v10 = vadd.f32 %v802_v26, %v798_v2  ;;  %v2374_v54 = vadd.f32 %v830_v59, %v826_v32  ;;  %v2377_v16 = vadd.f32 %v633_v60, %v3281_v38  ;;  %v2380_v61 = vadd.f32 %v661_v45, %v3282_v6  ;;  %v3286_v2 = vld [vmem:[#allocation31_spill] sm:$0xff]  ;;  %v3287_v32 = vld [vmem:[#allocation25_spill] sm:$0xff] }
  0xe5   : > { %v2382_v24 = vmax.f32 %v525_v34, %v564_v35  ;;  %v2385_v53 = vadd.f32 %v773_v27, %v3284_v15  ;;  %v2388_v28 = vadd.f32 %v801_v30, %v3285_v12  ;;  %v2391_v58 = vadd.f32 %v829_v49, %v3286_v2 }
  0xe6   : > { %v2394_v26 = vadd.f32 %v689_v47, %v3287_v32  ;;  %v2397_v59 = vmul.f32 %v1973_v50, %v883_v22  ;;  %v2400_v60 = vmul.f32 %v2020_v11, %v883_v22  ;;  %v2403_v35 = vmul.f32 %v1988_v55, %v883_v22 }
  0xe7   : > { %3283 = vst [vmem:[#allocation45_spill] sm:$0xff] %v2382_v24  ;;  %v635_v45 = vmul.f32 %v1973_v50, %v607_v39  ;;  %v663_v41 = vmul.f32 %v2020_v11, %v607_v39  ;;  %v691_v29 = vmul.f32 %v1988_v55, %v607_v39  ;;  %v719_v33 = vmul.f32 %v1991_v56, %v607_v39 }
  0xe8   : > { %3288 = vst [vmem:[#allocation6_spill] sm:$0xff] %v2397_v59  ;;  %3289 = vst [vmem:[#allocation52_spill] sm:$0xff] %v2400_v60  ;;  %v747_v47 = vmul.f32 %v1994_v57, %v607_v39  ;;  %v775_v34 = vmul.f32 %v2003_v62, %v607_v39  ;;  %v803_v27 = vmul.f32 %v2006_v63, %v607_v39  ;;  %v3310_v60 = vld [vmem:[#allocation32_spill] sm:$0xff]  ;;  %v3312_v59 = vld [vmem:[#allocation33_spill] sm:$0xff] }
  0xe9   : > { %3290 = vst [vmem:[#allocation7_spill] sm:$0xff] %v2403_v35  ;;  %v831_v30 = vmul.f32 %v3266_v14, %v607_v39  ;;  %v2414_v49 = vadd.f32 %v635_v45, %v2318_v23  ;;  %v2417_v38 = vadd.f32 %v663_v41, %v2321_v52  ;;  %v2420_v6 = vadd.f32 %v691_v29, %v2324_v51  ;;  %v895_v39 = vpop.permute.xlu0 %894  ;;  %v611_v23 = vpop.permute.xlu1 %610 }
  0xea   : > { %v2423_v15 = vadd.f32 %v719_v33, %v2327_v17  ;;  %v2425_v12 = vadd.f32 %v747_v47, %v743_v9  ;;  %v2427_v2 = vadd.f32 %v775_v34, %v771_v43  ;;  %v2429_v32 = vadd.f32 %v803_v27, %v799_v37 }
  0xeb   : > { %v2431_v24 = vadd.f32 %v831_v30, %v827_v36  ;;  %v2434_v45 = vmul.f32 %v1991_v56, %v883_v22  ;;  %v2437_v52 = vmul.f32 %v1994_v57, %v883_v22  ;;  %v2440_v51 = vmul.f32 %v2003_v62, %v883_v22 }
  0xec   : > { %v2443_v17 = vmul.f32 %v2006_v63, %v883_v22  ;;  %v2446_v9 = vmul.f32 %v3266_v14, %v883_v22  ;;  %v2449_v43 = vmul.f32 %v1973_v50, %v895_v39  ;;  %v2452_v37 = vmul.f32 %v2020_v11, %v895_v39 }
  0xed   : > { %3291 = vst [vmem:[#allocation8_spill] sm:$0xff] %v2434_v45  ;;  %3292 = vst [vmem:[#allocation9_spill] sm:$0xff] %v2437_v52  ;;  %v2455_v36 = vmul.f32 %v1988_v55, %v895_v39  ;;  %v636_v41 = vmul.f32 %v1973_v50, %v611_v23  ;;  %v664_v29 = vmul.f32 %v2020_v11, %v611_v23  ;;  %v3306_v52 = vld [vmem:[#allocation38_spill] sm:$0xff]  ;;  %v3308_v45 = vld [vmem:[#allocation40_spill] sm:$0xff]  ;;  %v2489_v35 = vpop.permute.xlu0 %1170 }
  0xee   : > { %3293 = vst [vmem:[#allocation10_spill] sm:$0xff] %v2440_v51  ;;  %3294 = vst [vmem:[#allocation11_spill] sm:$0xff] %v2443_v17  ;;  %v692_v33 = vmul.f32 %v1988_v55, %v611_v23  ;;  %v720_v47 = vmul.f32 %v1991_v56, %v611_v23  ;;  %v748_v22 = vmul.f32 %v1994_v57, %v611_v23  ;;  %v3304_v17 = vld [vmem:[#allocation37_spill] sm:$0xff] }
  0xef   : > { %3295 = vst [vmem:[#allocation12_spill] sm:$0xff] %v2446_v9  ;;  %3296 = vst [vmem:[#allocation13_spill] sm:$0xff] %v2449_v43  ;;  %v776_v34 = vmul.f32 %v2003_v62, %v611_v23  ;;  %v804_v27 = vmul.f32 %v2006_v63, %v611_v23  ;;  %v832_v30 = vmul.f32 %v3266_v14, %v611_v23 }
  0xf0   : > { %3297 = vst [vmem:[#allocation14_spill] sm:$0xff] %v2452_v37  ;;  %3298 = vst [vmem:[#allocation26_spill] sm:$0xff] %v2455_v36  ;;  %v2466_v8 = vmul.f32 %v1991_v56, %v895_v39  ;;  %v2469_v36 = vmul.f32 %v1994_v57, %v895_v39  ;;  %v2472_v37 = vmul.f32 %v2003_v62, %v895_v39 }
  0xf1   : > { %v2475_v43 = vmul.f32 %v2006_v63, %v895_v39  ;;  %v2478_v9 = vmul.f32 %v3266_v14, %v895_v39  ;;  %v2481_v51 = vadd.f32 %v776_v34, %v3304_v17  ;;  %v2484_v23 = vadd.f32 %v804_v27, %v3306_v52  ;;  %v3314_v39 = vld [vmem:[#allocation34_spill] sm:$0xff]  ;;  %v3316_v17 = vld [vmem:[#allocation35_spill] sm:$0xff]  ;;  %v3318_v52 = vld [vmem:[#allocation36_spill] sm:$0xff] }
  0xf2   : > { %3299 = vst [vmem:[#allocation28_spill] sm:$0xff] %v2466_v8  ;;  %3300 = vst [vmem:[#allocation18_spill] sm:$0xff] %v2469_v36  ;;  %v2487_v8 = vadd.f32 %v832_v30, %v3308_v45  ;;  %v619_v36 = vpop.permute.xlu1 %618  ;;  %v2501_v34 = vadd.f32 %v720_v47, %v3316_v17  ;;  %v2504_v27 = vadd.f32 %v748_v22, %v3318_v52  ;;  %v3332_v14 = vld [vmem:[#allocation22_spill] sm:$0xff] }
  0xf3   : > { %3301 = vst [vmem:[#allocation19_spill] sm:$0xff] %v2472_v37  ;;  %3302 = vst [vmem:[#allocation29_spill] sm:$0xff] %v2475_v43  ;;  %v2492_v37 = vadd.f32 %v636_v41, %v3310_v60  ;;  %v2495_v43 = vadd.f32 %v664_v29, %v3312_v59  ;;  %v2508_v45 = vmul.f32 %v1973_v50, %v2489_v35 }
  0xf4   : > { %3303 = vst [vmem:[#allocation30_spill] sm:$0xff] %v2478_v9  ;;  %3305 = vst [vmem:[#allocation31_spill] sm:$0xff] %v2481_v51  ;;  %v2498_v9 = vadd.f32 %v692_v33, %v3314_v39  ;;  %v2512_v60 = vmul.f32 %v2020_v11, %v2489_v35  ;;  %v2516_v59 = vmul.f32 %v1988_v55, %v2489_v35  ;;  %v3323_v11 = vld [vmem:[#allocation50_spill] sm:$0xff]  ;;  %v213_v51 = vpop.permute.xlu0 %212 }
  0xf5   : > { %3307 = vst [vmem:[#allocation25_spill] sm:$0xff] %v2484_v23  ;;  %3309 = vst [vmem:[#allocation37_spill] sm:$0xff] %v2487_v8  ;;  %v642_v41 = vmul.f32 %v2093_v7, %v619_v36  ;;  %v670_v29 = vmul.f32 %v2108_v4, %v619_v36  ;;  %v698_v33 = vmul.f32 %v2111_v5, %v619_v36 }
  0xf6   : > { %3311 = vst [vmem:[#allocation38_spill] sm:$0xff] %v2492_v37  ;;  %3313 = vst [vmem:[#allocation40_spill] sm:$0xff] %v2495_v43  ;;  %v726_v47 = vmul.f32 %v3263_v18, %v619_v36  ;;  %v754_v22 = vmul.f32 %v3264_v46, %v619_v36  ;;  %v782_v50 = vmul.f32 %v2132_v1, %v619_v36  ;;  %v3331_v37 = vld [vmem:[#allocation21_spill] sm:$0xff] }
  0xf7   : > { %3315 = vst [vmem:[#allocation32_spill] sm:$0xff] %v2498_v9  ;;  %3317 = vst [vmem:[#allocation33_spill] sm:$0xff] %v2501_v34  ;;  %v810_v30 = vmul.f32 %v3265_v48, %v619_v36  ;;  %v838_v39 = vmul.f32 %v3323_v11, %v619_v36  ;;  %v646_v17 = vadd.f32 %v642_v41, %v2340_v42  ;;  %v623_v34 = vpop.permute.xlu1 %622 }
  0xf8   : > { %3319 = vst [vmem:[#allocation34_spill] sm:$0xff] %v2504_v27  ;;  %3320 = vst [vmem:[#allocation35_spill] sm:$0xff] %v2508_v45  ;;  %v674_v55 = vadd.f32 %v670_v29, %v2344_v25  ;;  %v702_v52 = vadd.f32 %v698_v33, %v2353_v44  ;;  %v786_v45 = vadd.f32 %v782_v50, %v2360_v0 }
  0xf9   : > { %3321 = vst [vmem:[#allocation36_spill] sm:$0xff] %v2512_v60  ;;  %3322 = vst [vmem:[#allocation69_spill] sm:$0xff] %v2516_v59  ;;  %v730_v59 = vadd.f32 %v726_v47, %v2356_v31  ;;  %v758_v60 = vadd.f32 %v754_v22, %v2358_v40  ;;  %v814_v8 = vadd.f32 %v810_v30, %v2372_v10  ;;  %v650_v25 = vmax.f32 %v646_v17, 0.0  ;;  %v3326_v30 = vld [vmem:[#allocation24_spill] sm:$0xff] }
  0xfa   : > { %v2534_v23 = vadd.f32 %v838_v39, %v2374_v54  ;;  %v2538_v36 = vmul.f32 %v1991_v56, %v2489_v35  ;;  %v2542_v42 = vmul.f32 %v1994_v57, %v2489_v35  ;;  %v678_v44 = vmax.f32 %v674_v55, 0.0  ;;  %v3328_v39 = vld [vmem:[#allocation16_spill] sm:$0xff] }
  0xfb   : > { %v706_v31 = vmax.f32 %v702_v52, 0.0  ;;  %v734_v40 = vmax.f32 %v730_v59, 0.0  ;;  %v762_v41 = vmax.f32 %v758_v60, 0.0  ;;  %v790_v0 = vmax.f32 %v786_v45, 0.0  ;;  %v3327_v60 = vld [vmem:[#allocation27_spill] sm:$0xff] }
  0xfc   : > { %3324 = vst [vmem:[#allocation50_spill] sm:$0xff] %v2538_v36  ;;  %3325 = vst [vmem:[#allocation70_spill] sm:$0xff] %v2542_v42  ;;  %v654_v29 = vmax.f32 %v650_v25, 0.0  ;;  %v253_v10 = vmul.f32 %v2093_v7, %v213_v51  ;;  %v296_v54 = vmul.f32 %v2108_v4, %v213_v51  ;;  %v339_v33 = vmul.f32 %v2111_v5, %v213_v51  ;;  %v3329_v25 = vld [vmem:[#allocation17_spill] sm:$0xff]  ;;  %v3330_v36 = vld [vmem:[#allocation20_spill] sm:$0xff] }
  0xfd   : > { %v382_v56 = vmul.f32 %v3263_v18, %v213_v51  ;;  %v425_v47 = vmul.f32 %v3264_v46, %v213_v51  ;;  %v468_v57 = vmul.f32 %v2132_v1, %v213_v51  ;;  %v511_v22 = vmul.f32 %v3265_v48, %v213_v51 }
  0xfe   : > { %v682_v50 = vmax.f32 %v654_v29, %v678_v44  ;;  %v257_v59 = vadd.f32 %v253_v10, %v3326_v30  ;;  %v300_v45 = vadd.f32 %v296_v54, %v3327_v60  ;;  %v343_v17 = vadd.f32 %v339_v33, %v3328_v39  ;;  %v615_v39 = vpop.permute.xlu0 %614 }
  0xff   : > { %v818_v55 = vmax.f32 %v814_v8, 0.0  ;;  %v846_v52 = vmax.f32 %v2534_v23, 0.0  ;;  %v386_v42 = vadd.f32 %v382_v56, %v3329_v25  ;;  %v429_v27 = vadd.f32 %v425_v47, %v3330_v36 }
 0x100   : > { %v710_v9 = vmax.f32 %v682_v50, %v706_v31  ;;  %v261_v43 = vmax.f32 %v257_v59, 0.0  ;;  %v472_v21 = vadd.f32 %v468_v57, %v3331_v37  ;;  %v515_v44 = vadd.f32 %v511_v22, %v3332_v14  ;;  %v3333_v57 = vld [vmem:[#allocation23_spill] sm:$0xff] }
 0x101   : > { %v304_v29 = vmax.f32 %v300_v45, 0.0  ;;  %v347_v10 = vmax.f32 %v343_v17, 0.0  ;;  %v390_v30 = vmax.f32 %v386_v42, 0.0  ;;  %v433_v54 = vmax.f32 %v429_v27, 0.0 }
 0x102   : > { %v738_v60 = vmax.f32 %v710_v9, %v734_v40  ;;  %v265_v33 = vmax.f32 %v261_v43, 0.0  ;;  %v554_v8 = vmul.f32 %v3323_v11, %v213_v51  ;;  %v643_v23 = vmul.f32 %v2093_v7, %v623_v34 }
 0x103   : > { %v671_v56 = vmul.f32 %v2108_v4, %v623_v34  ;;  %v699_v36 = vmul.f32 %v2111_v5, %v623_v34  ;;  %v727_v31 = vmul.f32 %v3263_v18, %v623_v34  ;;  %v755_v37 = vmul.f32 %v3264_v46, %v623_v34 }
 0x104   : > { %v766_v47 = vmax.f32 %v738_v60, %v762_v41  ;;  %v308_v14 = vmax.f32 %v265_v33, %v304_v29  ;;  %v558_v22 = vadd.f32 %v554_v8, %v3333_v57  ;;  %v647_v27 = vadd.f32 %v643_v23, %v2414_v49 }
 0x105   : > { %v675_v9 = vadd.f32 %v671_v56, %v2417_v38  ;;  %v703_v51 = vadd.f32 %v699_v36, %v2420_v6  ;;  %v731_v43 = vadd.f32 %v727_v31, %v2423_v15  ;;  %v759_v42 = vadd.f32 %v755_v37, %v2425_v12 }
 0x106   : > { %v794_v40 = vmax.f32 %v766_v47, %v790_v0  ;;  %v351_v50 = vmax.f32 %v308_v14, %v347_v10  ;;  %v476_v59 = vmax.f32 %v472_v21, 0.0  ;;  %v651_v45 = vmax.f32 %v647_v27, 0.0 }
 0x107   : > { %v519_v17 = vmax.f32 %v515_v44, 0.0  ;;  %v562_v41 = vmax.f32 %v558_v22, 0.0  ;;  %v679_v25 = vmax.f32 %v675_v9, 0.0  ;;  %v707_v29 = vmax.f32 %v703_v51, 0.0  ;;  %v864_v9 = vpop.permute.xlu1 %863 }
 0x108   : > { %v822_v60 = vmax.f32 %v794_v40, %v818_v55  ;;  %v394_v33 = vmax.f32 %v351_v50, %v390_v30  ;;  %v655_v49 = vmax.f32 %v651_v45, 0.0  ;;  %v783_v38 = vmul.f32 %v2132_v1, %v623_v34 }
 0x109   : > { %v811_v6 = vmul.f32 %v3265_v48, %v623_v34  ;;  %v839_v15 = vmul.f32 %v3323_v11, %v623_v34  ;;  %v641_v12 = vmul.f32 %v2093_v7, %v615_v39  ;;  %v669_v0 = vmul.f32 %v2108_v4, %v615_v39 }
 0x10a   : > { %v2576_v21 = vmax.f32 %v822_v60, %v846_v52  ;;  %v437_v10 = vmax.f32 %v394_v33, %v433_v54  ;;  %v683_v44 = vmax.f32 %v655_v49, %v679_v25  ;;  %v787_v8 = vadd.f32 %v783_v38, %v2427_v2 }
 0x10b   : > { %v815_v55 = vadd.f32 %v811_v6, %v2429_v32  ;;  %v843_v30 = vadd.f32 %v839_v15, %v2431_v24  ;;  %v645_v23 = vadd.f32 %v641_v12, %v2377_v16  ;;  %v673_v56 = vadd.f32 %v669_v0, %v2380_v61  ;;  %v3340_v15 = vld [vmem:[#allocation5_spill] sm:$0xff]  ;;  %v627_v12 = vpop.permute.xlu0 %626 }
 0x10c   : > { %3334 = vst [vmem:[#allocation24_spill] sm:$0xff] %v2576_v21  ;;  %v480_v36 = vmax.f32 %v437_v10, %v476_v59  ;;  %v711_v34 = vmax.f32 %v683_v44, %v707_v29  ;;  %v735_v31 = vmax.f32 %v731_v43, 0.0  ;;  %v697_v37 = vmul.f32 %v2111_v5, %v615_v39 }
 0x10d   : > { %v763_v47 = vmax.f32 %v759_v42, 0.0  ;;  %v791_v52 = vmax.f32 %v787_v8, 0.0  ;;  %v649_v14 = vmax.f32 %v645_v23, 0.0  ;;  %v677_v54 = vmax.f32 %v673_v56, 0.0  ;;  %v3342_v8 = vld [vmem:[#allocation6_spill] sm:$0xff] }
 0x10e   : > { %v523_v57 = vmax.f32 %v480_v36, %v519_v17  ;;  %v739_v22 = vmax.f32 %v711_v34, %v735_v31  ;;  %v701_v2 = vadd.f32 %v697_v37, %v2394_v26  ;;  %v725_v32 = vmul.f32 %v3263_v18, %v615_v39  ;;  %v2622_v23 = vld [vmem:[%s1889_s23 + $0x4] ss:$0 sm:$0xff]  ;;  %v874_v36 = vpop.permute.xlu1 %873  ;;  %v3345_v34 = vld [vmem:[#allocation52_spill] sm:$0xff]  ;;  %v3346_v37 = vld [vmem:[#allocation7_spill] sm:$0xff] }
 0x10f   : > { %v653_v24 = vmax.f32 %v649_v14, 0.0  ;;  %v753_v16 = vmul.f32 %v3264_v46, %v615_v39  ;;  %v781_v61 = vmul.f32 %v2132_v1, %v615_v39  ;;  %v809_v27 = vmul.f32 %v3265_v48, %v615_v39  ;;  %3344 = vst [vmem:[#allocation23_spill] sm:$0xff] %v2622_v23  ;;  %v903_v21 = vpop.permute.xlu0 %902 }
 0x110   : > { %v2589_v51 = vmax.f32 %v523_v57, %v562_v41  ;;  %v767_v43 = vmax.f32 %v739_v22, %v763_v47  ;;  %v819_v42 = vmax.f32 %v815_v55, 0.0  ;;  %v729_v40 = vadd.f32 %v725_v32, %v2364_v13 }
 0x111   : > { %v681_v50 = vmax.f32 %v653_v24, %v677_v54  ;;  %v705_v59 = vmax.f32 %v701_v2, 0.0  ;;  %v757_v26 = vadd.f32 %v753_v16, %v2367_v3  ;;  %v785_v45 = vadd.f32 %v781_v61, %v2385_v53  ;;  %v2640_v24 = vld [vmem:[%s1889_s23 + $0x6] ss:$0 sm:$0xff]  ;;  %v2644_v61 = vld [vmem:[%s1889_s23 + $0x7] ss:$0 sm:$0xff] }
 0x112   : > { %3335 = vst [vmem:[#allocation27_spill] sm:$0xff] %v2589_v51  ;;  %v795_v17 = vmax.f32 %v767_v43, %v791_v52  ;;  %v813_v25 = vadd.f32 %v809_v27, %v2388_v28  ;;  %v837_v29 = vmul.f32 %v3323_v11, %v615_v39  ;;  %v913_v60 = vmul.f32 %v1892_v19, %v864_v9  ;;  %v3338_v19 = vld [vmem:[#allocation15_spill] sm:$0xff]  ;;  %v2632_v52 = vld [vmem:[%s1889_s23 + $0x5] ss:$0 sm:$0xff]  ;;  %v3349_v43 = vld [vmem:[#allocation38_spill] sm:$0xff] }
 0x113   : > { %v2599_v41 = vmul.f32 %v2003_v62, %v2489_v35  ;;  %v2603_v13 = vmul.f32 %v2006_v63, %v2489_v35  ;;  %v709_v33 = vmax.f32 %v681_v50, %v705_v59  ;;  %v733_v49 = vmax.f32 %v729_v40, 0.0  ;;  %3347 = vst [vmem:[#allocation15_spill] sm:$0xff] %v2632_v52  ;;  %3348 = vst [vmem:[#allocation5_spill] sm:$0xff] %v2640_v24  ;;  %v3350_v59 = vld [vmem:[#allocation40_spill] sm:$0xff]  ;;  %v3373_v51 = vld [vmem:[#allocation42_spill] sm:$0xff] }
 0x114   : > { %v823_v3 = vmax.f32 %v795_v17, %v819_v42  ;;  %v847_v53 = vmax.f32 %v843_v30, 0.0  ;;  %v841_v28 = vadd.f32 %v837_v29, %v2391_v58  ;;  %v941_v39 = vmul.f32 %v1895_v20, %v864_v9  ;;  %v2618_v30 = vld [vmem:[%s1889_s23 + $0x3] ss:$0 sm:$0xff] }
 0x115   : > { %3336 = vst [vmem:[#allocation16_spill] sm:$0xff] %v2599_v41  ;;  %3337 = vst [vmem:[#allocation17_spill] sm:$0xff] %v2603_v13  ;;  %v2609_v38 = vmul.f32 %v3338_v19, %v2489_v35  ;;  %v737_v62 = vmax.f32 %v709_v33, %v733_v49  ;;  %v761_v6 = vmax.f32 %v757_v26, 0.0  ;;  %v969_v63 = vmul.f32 %v3340_v15, %v864_v9  ;;  %v3353_v33 = vld [vmem:[#allocation34_spill] sm:$0xff]  ;;  %v3356_v19 = vld [vmem:[#allocation9_spill] sm:$0xff] }
 0x116   : > { %v2612_v0 = vmax.f32 %v823_v3, %v847_v53  ;;  %v789_v10 = vmax.f32 %v785_v45, 0.0  ;;  %v817_v44 = vmax.f32 %v813_v25, 0.0  ;;  %v2615_v55 = vadd.f32 %v3342_v8, %v913_v60  ;;  %3343 = vst [vmem:[#allocation22_spill] sm:$0xff] %v2618_v30  ;;  %v3351_v45 = vld [vmem:[#allocation32_spill] sm:$0xff]  ;;  %v3352_v25 = vld [vmem:[#allocation33_spill] sm:$0xff]  ;;  %v3358_v8 = vld [vmem:[#allocation31_spill] sm:$0xff] }
 0x117   : > { %3339 = vst [vmem:[#allocation20_spill] sm:$0xff] %v2609_v38  ;;  %v765_v58 = vmax.f32 %v737_v62, %v761_v6  ;;  %v845_v20 = vmax.f32 %v841_v28, 0.0  ;;  %v997_v35 = vmul.f32 %v2618_v30, %v864_v9  ;;  %v1025_v56 = vmul.f32 %v2622_v23, %v864_v9  ;;  %v3357_v6 = vld [vmem:[#allocation10_spill] sm:$0xff]  ;;  %v3374_v38 = vld [vmem:[#allocation43_spill] sm:$0xff] }
 0x118   : > { %3341 = vst [vmem:[#allocation21_spill] sm:$0xff] %v2612_v0  ;;  %v2626_v31 = vadd.f32 %v3345_v34, %v941_v39  ;;  %v2629_v47 = vadd.f32 %v3346_v37, %v969_v63  ;;  %v1053_v14 = vmul.f32 %v2632_v52, %v864_v9  ;;  %v644_v54 = vmul.f32 %v2093_v7, %v627_v12  ;;  %v2666_v63 = vpop.permute.xlu1 %878  ;;  %v3360_v37 = vld [vmem:[#allocation11_spill] sm:$0xff]  ;;  %v3375_v41 = vld [vmem:[#allocation46_spill] sm:$0xff] }
 0x119   : > { %v793_v57 = vmax.f32 %v765_v58, %v789_v10  ;;  %v672_v22 = vmul.f32 %v2108_v4, %v627_v12  ;;  %v700_v2 = vmul.f32 %v2111_v5, %v627_v12  ;;  %v728_v32 = vmul.f32 %v3263_v18, %v627_v12 }
 0x11a   : > { %v1081_v16 = vmul.f32 %v2640_v24, %v864_v9  ;;  %v1109_v27 = vmul.f32 %v2644_v61, %v864_v9  ;;  %v648_v42 = vadd.f32 %v644_v54, %v3349_v43  ;;  %v756_v40 = vmul.f32 %v3264_v46, %v627_v12  ;;  %v3355_v9 = vld [vmem:[#allocation8_spill] sm:$0xff]  ;;  %v2678_v43 = vld [vmem:[%s1889_s23] ss:$0 sm:$0xff] }
 0x11b   : > { %v821_v50 = vmax.f32 %v793_v57, %v817_v44  ;;  %v676_v26 = vadd.f32 %v672_v22, %v3350_v59  ;;  %v704_v17 = vadd.f32 %v700_v2, %v3351_v45  ;;  %v732_v29 = vadd.f32 %v728_v32, %v3352_v25  ;;  %3362 = vst [vmem:[#allocation52_spill] sm:$0xff] %v2678_v43 }
 0x11c   : > { %v652_v60 = vmax.f32 %v648_v42, 0.0  ;;  %v760_v49 = vadd.f32 %v756_v40, %v3353_v33  ;;  %v784_v3 = vmul.f32 %v2132_v1, %v627_v12  ;;  %v812_v53 = vmul.f32 %v3265_v48, %v627_v12 }
 0x11d   : > { %v2655_v28 = vmax.f32 %v821_v50, %v845_v20  ;;  %v2658_v39 = vadd.f32 %v3355_v9, %v997_v35  ;;  %v2661_v62 = vadd.f32 %v3356_v19, %v1025_v56  ;;  %v2664_v15 = vadd.f32 %v3357_v6, %v1053_v14  ;;  %v3359_v20 = vld [vmem:[#allocation25_spill] sm:$0xff]  ;;  %v3361_v35 = vld [vmem:[#allocation12_spill] sm:$0xff] }
 0x11e   : > { %v656_v10 = vmax.f32 %v652_v60, 0.0  ;;  %v680_v44 = vmax.f32 %v676_v26, 0.0  ;;  %v788_v58 = vadd.f32 %v784_v3, %v3358_v8  ;;  %v816_v34 = vadd.f32 %v812_v53, %v3359_v20  ;;  %v3363_v50 = vld [vmem:[#allocation37_spill] sm:$0xff]  ;;  %v887_v53 = vpop.permute.xlu1 %886  ;;  %v3367_v20 = vld [vmem:[#allocation14_spill] sm:$0xff] }
 0x11f   : > { %3354 = vst [vmem:[#allocation6_spill] sm:$0xff] %v2655_v28  ;;  %v2671_v54 = vadd.f32 %v3360_v37, %v1081_v16  ;;  %v2674_v57 = vadd.f32 %v3361_v35, %v1109_v27  ;;  %v708_v56 = vmax.f32 %v704_v17, 0.0  ;;  %v840_v14 = vmul.f32 %v3323_v11, %v627_v12  ;;  %v2685_v26 = vld [vmem:[%s1889_s23 + $0x1] ss:$0 sm:$0xff]  ;;  %v2691_v27 = vld [vmem:[%s1889_s23 + $0x2] ss:$0 sm:$0xff] }
 0x120   : > { %v684_v22 = vmax.f32 %v656_v10, %v680_v44  ;;  %v736_v2 = vmax.f32 %v732_v29, 0.0  ;;  %v764_v32 = vmax.f32 %v760_v49, 0.0  ;;  %v2681_v42 = vmul.f32 %v2678_v43, %v874_v36  ;;  %3364 = vst [vmem:[#allocation7_spill] sm:$0xff] %v2685_v26  ;;  %3365 = vst [vmem:[#allocation38_spill] sm:$0xff] %v2691_v27  ;;  %v3366_v8 = vld [vmem:[#allocation13_spill] sm:$0xff] }
 0x121   : > { %v792_v40 = vmax.f32 %v788_v58, 0.0  ;;  %v844_v59 = vadd.f32 %v840_v14, %v3363_v50  ;;  %v2688_v16 = vmul.f32 %v2685_v26, %v874_v36  ;;  %v2694_v12 = vmul.f32 %v2691_v27, %v874_v36  ;;  %v3370_v50 = vld [vmem:[#allocation28_spill] sm:$0xff] }
 0x122   : > { %v712_v45 = vmax.f32 %v684_v22, %v708_v56  ;;  %v820_v17 = vmax.f32 %v816_v34, 0.0  ;;  %v916_v25 = vmul.f32 %v2678_v43, %v2666_v63  ;;  %v944_v29 = vmul.f32 %v2685_v26, %v2666_v63  ;;  %v3368_v56 = vld [vmem:[#allocation26_spill] sm:$0xff] }
 0x123   : > { %v2701_v60 = vmul.f32 %v2618_v30, %v874_v36  ;;  %v2704_v33 = vmul.f32 %v2622_v23, %v874_v36  ;;  %v972_v49 = vmul.f32 %v2691_v27, %v2666_v63  ;;  %v1000_v3 = vmul.f32 %v2618_v30, %v2666_v63  ;;  %v3376_v30 = vld [vmem:[#allocation47_spill] sm:$0xff]  ;;  %v2767_v27 = vld [vmem:[%s1889_s23 + $0xe] ss:$0 sm:$0xff] }
 0x124   : > { %v740_v9 = vmax.f32 %v712_v45, %v736_v2  ;;  %v2711_v19 = vmul.f32 %v2632_v52, %v874_v36  ;;  %v2714_v6 = vmul.f32 %v2640_v24, %v874_v36  ;;  %v2717_v10 = vmul.f32 %v2644_v61, %v874_v36  ;;  %v2733_v36 = vld [vmem:[%s1889_s23 + $0x8] ss:$0 sm:$0xff]  ;;  %v2740_v45 = vld [vmem:[%s1889_s23 + $0x9] ss:$0 sm:$0xff] }
 0x125   : > { %v848_v44 = vmax.f32 %v844_v59, 0.0  ;;  %v2720_v58 = vadd.f32 %v3366_v8, %v916_v25  ;;  %v2723_v34 = vadd.f32 %v3367_v20, %v944_v29  ;;  %v1028_v37 = vmul.f32 %v2622_v23, %v2666_v63  ;;  %v2744_v29 = vld [vmem:[%s1889_s23 + $0xa] ss:$0 sm:$0xff]  ;;  %v3372_v20 = vld [vmem:[#allocation41_spill] sm:$0xff]  ;;  %v2762_v23 = vld [vmem:[%s1889_s23 + $0xd] ss:$0 sm:$0xff] }
 0x126   : > { %v768_v35 = vmax.f32 %v740_v9, %v764_v32  ;;  %v2728_v14 = vadd.f32 %v3368_v56, %v972_v49  ;;  %v1056_v22 = vmul.f32 %v2632_v52, %v2666_v63  ;;  %v918_v2 = vmul.f32 %v2733_v36, %v887_v53  ;;  %v2748_v49 = vld [vmem:[%s1889_s23 + $0xb] ss:$0 sm:$0xff] }
 0x127   : > { %v2737_v59 = vadd.f32 %v3370_v50, %v1000_v3  ;;  %v946_v25 = vmul.f32 %v2740_v45, %v887_v53  ;;  %v974_v32 = vmul.f32 %v2744_v29, %v887_v53  ;;  %v1002_v9 = vmul.f32 %v2748_v49, %v887_v53  ;;  %v2755_v50 = vld [vmem:[%s1889_s23 + $0xc] ss:$0 sm:$0xff] }
 0x128   : > { %3369 = vst [vmem:[#allocation40_spill] sm:$0xff] %v2728_v14  ;;  %v796_v8 = vmax.f32 %v768_v35, %v792_v40  ;;  %v1084_v3 = vmul.f32 %v2640_v24, %v2666_v63  ;;  %v922_v56 = vadd.f32 %v918_v2, %v3372_v20  ;;  %v1030_v0 = vmul.f32 %v2755_v50, %v887_v53  ;;  %v2771_v20 = vld [vmem:[%s1889_s23 + $0xf] ss:$0 sm:$0xff] }
 0x129   : > { %3371 = vst [vmem:[#allocation32_spill] sm:$0xff] %v2737_v59  ;;  %v950_v28 = vadd.f32 %v946_v25, %v3373_v51  ;;  %v978_v13 = vadd.f32 %v974_v32, %v3374_v38  ;;  %v1006_v52 = vadd.f32 %v1002_v9, %v3375_v41  ;;  %v1058_v40 = vmul.f32 %v2762_v23, %v887_v53  ;;  %v3378_v51 = vld [vmem:[#allocation48_spill] sm:$0xff]  ;;  %v891_v59 = vpop.permute.xlu1 %890 }
 0x12a   : > { %v824_v35 = vmax.f32 %v796_v8, %v820_v17  ;;  %v1034_v24 = vadd.f32 %v1030_v0, %v3376_v30  ;;  %v1086_v2 = vmul.f32 %v2767_v27, %v887_v53  ;;  %3377 = vst [vmem:[#allocation33_spill] sm:$0xff] %v2771_v20  ;;  %v1114_v26 = vmul.f32 %v2771_v20, %v887_v53  ;;  %v3380_v17 = vld [vmem:[#allocation49_spill] sm:$0xff]  ;;  %v3381_v30 = vld [vmem:[#allocation51_spill] sm:$0xff] }
 0x12b   : > { %v1062_v25 = vadd.f32 %v1058_v40, %v3378_v51  ;;  %v926_v38 = vmul.f32 %v2093_v7, %v903_v21  ;;  %v954_v41 = vmul.f32 %v2108_v4, %v903_v21  ;;  %v982_v32 = vmul.f32 %v2111_v5, %v903_v21 }
 0x12c   : > { %v2778_v9 = vmax.f32 %v824_v35, %v848_v44  ;;  %v1090_v0 = vadd.f32 %v1086_v2, %v3380_v17  ;;  %v1118_v8 = vadd.f32 %v1114_v26, %v3381_v30  ;;  %v1010_v43 = vmul.f32 %v3263_v18, %v903_v21  ;;  %v3382_v35 = vld [vmem:[#allocation18_spill] sm:$0xff]  ;;  %v3383_v30 = vld [vmem:[#allocation19_spill] sm:$0xff] }
 0x12d   : > { %v1112_v53 = vmul.f32 %v2644_v61, %v2666_v63  ;;  %v930_v14 = vadd.f32 %v926_v38, %v922_v56  ;;  %v958_v40 = vadd.f32 %v954_v41, %v950_v28  ;;  %v1038_v7 = vmul.f32 %v3264_v46, %v903_v21 }
 0x12e   : > { %3379 = vst [vmem:[#allocation34_spill] sm:$0xff] %v2778_v9  ;;  %v986_v51 = vadd.f32 %v982_v32, %v978_v13  ;;  %v1066_v4 = vmul.f32 %v2132_v1, %v903_v21  ;;  %v1094_v5 = vmul.f32 %v3265_v48, %v903_v21  ;;  %v1122_v44 = vmul.f32 %v3323_v11, %v903_v21  ;;  %v3384_v21 = vld [vmem:[#allocation29_spill] sm:$0xff] }
 0x12f   : > { %v2790_v2 = vadd.f32 %v3382_v35, %v1028_v37  ;;  %v934_v26 = vmax.f32 %v930_v14, 0.0  ;;  %v1014_v18 = vadd.f32 %v1010_v43, %v1006_v52  ;;  %v1042_v17 = vadd.f32 %v1038_v7, %v1034_v24  ;;  %v3385_v14 = vld [vmem:[#allocation30_spill] sm:$0xff]  ;;  %v2822_v35 = vld [vmem:[%s1889_s23 + $0x11] ss:$0 sm:$0xff] }
 0x130   : > { %v2793_v9 = vadd.f32 %v3383_v30, %v1056_v22  ;;  %v1070_v63 = vadd.f32 %v1066_v4, %v1062_v25  ;;  %v2795_v28 = vadd.f32 %v1094_v5, %v1090_v0  ;;  %v2797_v46 = vadd.f32 %v1122_v44, %v1118_v8  ;;  %v899_v22 = vpop.permute.xlu1 %898 }
 0x131   : > { %v938_v13 = vmax.f32 %v934_v26, 0.0  ;;  %v962_v1 = vmax.f32 %v958_v40, 0.0  ;;  %v919_v48 = vmul.f32 %v2733_v36, %v891_v59  ;;  %v947_v11 = vmul.f32 %v2740_v45, %v891_v59 }
 0x132   : > { %v2802_v37 = vadd.f32 %v3384_v21, %v1084_v3  ;;  %v2805_v52 = vadd.f32 %v3385_v14, %v1112_v53  ;;  %v990_v24 = vmax.f32 %v986_v51, 0.0  ;;  %v975_v43 = vmul.f32 %v2744_v29, %v891_v59  ;;  %v2815_v51 = vld [vmem:[%s1889_s23 + $0x10] ss:$0 sm:$0xff] }
 0x133   : > { %v966_v56 = vmax.f32 %v938_v13, %v962_v1  ;;  %v1018_v25 = vmax.f32 %v1014_v18, 0.0  ;;  %v1046_v38 = vmax.f32 %v1042_v17, 0.0  ;;  %v1074_v41 = vmax.f32 %v1070_v63, 0.0  ;;  %v2828_v17 = vld [vmem:[%s1889_s23 + $0x12] ss:$0 sm:$0xff] }
 0x134   : > { %v1102_v32 = vmax.f32 %v2795_v28, 0.0  ;;  %v923_v3 = vadd.f32 %v919_v48, %v2681_v42  ;;  %v951_v8 = vadd.f32 %v947_v11, %v2688_v16  ;;  %v979_v40 = vadd.f32 %v975_v43, %v2694_v12  ;;  %v2833_v28 = vld [vmem:[%s1889_s23 + $0x13] ss:$0 sm:$0xff]  ;;  %v2837_v1 = vld [vmem:[%s1889_s23 + $0x14] ss:$0 sm:$0xff] }
 0x135   : > { %v994_v53 = vmax.f32 %v966_v56, %v990_v24  ;;  %v1003_v7 = vmul.f32 %v2748_v49, %v891_v59  ;;  %v925_v4 = vmul.f32 %v2815_v51, %v899_v22  ;;  %v1031_v5 = vmul.f32 %v2755_v50, %v891_v59  ;;  %v2841_v11 = vld [vmem:[%s1889_s23 + $0x15] ss:$0 sm:$0xff]  ;;  %v2846_v24 = vld [vmem:[%s1889_s23 + $0x16] ss:$0 sm:$0xff] }
 0x136   : > { %v1059_v44 = vmul.f32 %v2762_v23, %v891_v59  ;;  %v1087_v42 = vmul.f32 %v2767_v27, %v891_v59  ;;  %v953_v16 = vmul.f32 %v2822_v35, %v899_v22  ;;  %v1115_v26 = vmul.f32 %v2771_v20, %v891_v59 }
 0x137   : > { %v1022_v12 = vmax.f32 %v994_v53, %v1018_v25  ;;  %v929_v18 = vadd.f32 %v925_v4, %v2615_v55  ;;  %v981_v30 = vmul.f32 %v2828_v17, %v899_v22  ;;  %v1009_v13 = vmul.f32 %v2833_v28, %v899_v22  ;;  %v907_v4 = vpop.permute.xlu1 %906 }
 0x138   : > { %v957_v63 = vadd.f32 %v953_v16, %v2626_v31  ;;  %v1037_v48 = vmul.f32 %v2837_v1, %v899_v22  ;;  %v1065_v59 = vmul.f32 %v2841_v11, %v899_v22  ;;  %v1093_v31 = vmul.f32 %v2846_v24, %v899_v22 }
 0x139   : > { %v1050_v21 = vmax.f32 %v1022_v12, %v1046_v38  ;;  %v933_v55 = vmax.f32 %v929_v18, 0.0  ;;  %v985_v14 = vadd.f32 %v981_v30, %v2629_v47  ;;  %v1007_v43 = vadd.f32 %v1003_v7, %v2701_v60  ;;  %v2859_v7 = vld [vmem:[%s1889_s23 + $0x17] ss:$0 sm:$0xff] }
 0x13a   : > { %v1035_v56 = vadd.f32 %v1031_v5, %v2704_v33  ;;  %v1063_v25 = vadd.f32 %v1059_v44, %v2711_v19  ;;  %v1091_v53 = vadd.f32 %v1087_v42, %v2714_v6  ;;  %v961_v38 = vmax.f32 %v957_v63, 0.0 }
 0x13b   : > { %v1078_v16 = vmax.f32 %v1050_v21, %v1074_v41  ;;  %v937_v0 = vmax.f32 %v933_v55, 0.0  ;;  %v1013_v12 = vadd.f32 %v1009_v13, %v2658_v39  ;;  %v1119_v47 = vadd.f32 %v1115_v26, %v2717_v10 }
 0x13c   : > { %v989_v18 = vmax.f32 %v985_v14, 0.0  ;;  %v1041_v30 = vadd.f32 %v1037_v48, %v2661_v62  ;;  %v1069_v20 = vadd.f32 %v1065_v59, %v2664_v15  ;;  %v1097_v33 = vadd.f32 %v1093_v31, %v2671_v54  ;;  %v911_v59 = vpop.permute.xlu1 %910 }
 0x13d   : > { %v965_v60 = vmax.f32 %v937_v0, %v961_v38  ;;  %v1121_v19 = vmul.f32 %v2859_v7, %v899_v22  ;;  %v927_v6 = vmul.f32 %v2815_v51, %v907_v4  ;;  %v1106_v41 = vmax.f32 %v1078_v16, %v1102_v32 }
 0x13e   : > { %v955_v5 = vmul.f32 %v2822_v35, %v907_v4  ;;  %v983_v39 = vmul.f32 %v2828_v17, %v907_v4  ;;  %v1011_v10 = vmul.f32 %v2833_v28, %v907_v4  ;;  %v1017_v62 = vmax.f32 %v1013_v12, 0.0 }
 0x13f   : > { %v993_v44 = vmax.f32 %v965_v60, %v989_v18  ;;  %v931_v42 = vadd.f32 %v927_v6, %v923_v3  ;;  %v1039_v15 = vmul.f32 %v2837_v1, %v907_v4  ;;  %v1045_v0 = vmax.f32 %v1041_v30, 0.0 }
 0x140   : > { %v1073_v54 = vmax.f32 %v1069_v20, 0.0  ;;  %v959_v26 = vadd.f32 %v955_v5, %v951_v8  ;;  %v987_v63 = vadd.f32 %v983_v39, %v979_v40  ;;  %v1101_v22 = vmax.f32 %v1097_v33, 0.0 }
 0x141   : > { %v1021_v13 = vmax.f32 %v993_v44, %v1017_v62  ;;  %v935_v48 = vmax.f32 %v931_v42, 0.0  ;;  %v1067_v32 = vmul.f32 %v2841_v11, %v907_v4  ;;  %v3386_v21 = vmax.f32 %v2797_v46, 0.0  ;;  %v3388_v62 = vld [vmem:[#allocation40_spill] sm:$0xff] }
 0x142   : > { %v1125_v14 = vadd.f32 %v1121_v19, %v2674_v57  ;;  %v1015_v31 = vadd.f32 %v1011_v10, %v1007_v43  ;;  %v1095_v3 = vmul.f32 %v2846_v24, %v907_v4  ;;  %v963_v20 = vmax.f32 %v959_v26, 0.0  ;;  %v3389_v26 = vld [vmem:[#allocation32_spill] sm:$0xff] }
 0x143   : > { %v2870_v55 = vmax.f32 %v1106_v41, %v3386_v21  ;;  %v1049_v16 = vmax.f32 %v1021_v13, %v1045_v0  ;;  %v939_v38 = vmax.f32 %v935_v48, 0.0  ;;  %v1043_v8 = vadd.f32 %v1039_v15, %v1035_v56  ;;  %v1153_v13 = vpop.permute.xlu1 %1152 }
 0x144   : > { %v991_v40 = vmax.f32 %v987_v63, 0.0  ;;  %v1123_v12 = vmul.f32 %v2859_v7, %v907_v4  ;;  %v928_v18 = vmul.f32 %v2815_v51, %v911_v59  ;;  %v956_v30 = vmul.f32 %v2822_v35, %v911_v59 }
 0x145   : > { %3387 = vst [vmem:[#allocation8_spill] sm:$0xff] %v2870_v55  ;;  %v967_v60 = vmax.f32 %v939_v38, %v963_v20  ;;  %v1071_v46 = vadd.f32 %v1067_v32, %v1063_v25  ;;  %v1099_v33 = vadd.f32 %v1095_v3, %v1091_v53  ;;  %v984_v6 = vmul.f32 %v2828_v17, %v911_v59  ;;  %v3390_v38 = vld [vmem:[#allocation52_spill] sm:$0xff] }
 0x146   : > { %v1129_v57 = vmax.f32 %v1125_v14, 0.0  ;;  %v1019_v43 = vmax.f32 %v1015_v31, 0.0  ;;  %v932_v19 = vadd.f32 %v928_v18, %v2720_v58  ;;  %v960_v41 = vadd.f32 %v956_v30, %v2723_v34 }
 0x147   : > { %v1077_v5 = vmax.f32 %v1049_v16, %v1073_v54  ;;  %v995_v56 = vmax.f32 %v967_v60, %v991_v40  ;;  %v1047_v39 = vmax.f32 %v1043_v8, 0.0  ;;  %v1012_v4 = vmul.f32 %v2833_v28, %v911_v59 }
 0x148   : > { %v1127_v10 = vadd.f32 %v1123_v12, %v1119_v47  ;;  %v936_v44 = vmax.f32 %v932_v19, 0.0  ;;  %v988_v42 = vadd.f32 %v984_v6, %v3388_v62  ;;  %v1040_v25 = vmul.f32 %v2837_v1, %v911_v59  ;;  %v3394_v19 = vld [vmem:[#allocation22_spill] sm:$0xff] }
 0x149   : > { %v1023_v53 = vmax.f32 %v995_v56, %v1019_v43  ;;  %v1075_v15 = vmax.f32 %v1071_v46, 0.0  ;;  %v1103_v0 = vmax.f32 %v1099_v33, 0.0  ;;  %v1016_v63 = vadd.f32 %v1012_v4, %v3389_v26  ;;  %v3392_v33 = vld [vmem:[#allocation38_spill] sm:$0xff]  ;;  %v3399_v26 = vld [vmem:[#allocation36_spill] sm:$0xff] }
 0x14a   : > { %v940_v58 = vmax.f32 %v936_v44, 0.0  ;;  %v964_v48 = vmax.f32 %v960_v41, 0.0  ;;  %v1068_v34 = vmul.f32 %v2841_v11, %v911_v59  ;;  %v1096_v54 = vmul.f32 %v2846_v24, %v911_v59 }
 0x14b   : > { %v1105_v32 = vmax.f32 %v1077_v5, %v1101_v22  ;;  %v1051_v21 = vmax.f32 %v1023_v53, %v1047_v39  ;;  %v1044_v47 = vadd.f32 %v1040_v25, %v2790_v2  ;;  %v1124_v14 = vmul.f32 %v2859_v7, %v911_v59  ;;  %v3391_v22 = vld [vmem:[#allocation7_spill] sm:$0xff]  ;;  %v1158_v5 = vpop.permute.xlu1 %1157  ;;  %v3398_v25 = vld [vmem:[#allocation5_spill] sm:$0xff] }
 0x14c   : > { %v1131_v31 = vmax.f32 %v1127_v10, 0.0  ;;  %v968_v3 = vmax.f32 %v940_v58, %v964_v48  ;;  %v992_v16 = vmax.f32 %v988_v42, 0.0  ;;  %v1198_v20 = vmul.f32 %v3390_v38, %v1153_v13  ;;  %v3395_v39 = vld [vmem:[#allocation35_spill] sm:$0xff]  ;;  %v3400_v58 = vld [vmem:[#allocation69_spill] sm:$0xff] }
 0x14d   : > { %v1079_v8 = vmax.f32 %v1051_v21, %v1075_v15  ;;  %v1020_v40 = vmax.f32 %v1016_v63, 0.0  ;;  %v1072_v12 = vadd.f32 %v1068_v34, %v2793_v9  ;;  %v1100_v18 = vadd.f32 %v1096_v54, %v2802_v37  ;;  %v3396_v9 = vld [vmem:[#allocation23_spill] sm:$0xff]  ;;  %v3402_v54 = vld [vmem:[#allocation50_spill] sm:$0xff] }
 0x14e   : > { %v996_v30 = vmax.f32 %v968_v3, %v992_v16  ;;  %v1128_v60 = vadd.f32 %v1124_v14, %v2805_v52  ;;  %v1226_v46 = vmul.f32 %v3391_v22, %v1153_v13  ;;  %v1254_v2 = vmul.f32 %v3392_v33, %v1153_v13  ;;  %v3397_v10 = vld [vmem:[#allocation15_spill] sm:$0xff]  ;;  %v1183_v52 = vpop.permute.xlu0 %1182  ;;  %v3403_v21 = vld [vmem:[#allocation70_spill] sm:$0xff]  ;;  %v3404_v14 = vld [vmem:[#allocation16_spill] sm:$0xff] }
 0x14f   : > { %v2894_v6 = vmax.f32 %v1105_v32, %v1129_v57  ;;  %v1107_v59 = vmax.f32 %v1079_v8, %v1103_v0  ;;  %v1048_v43 = vmax.f32 %v1044_v47, 0.0  ;;  %v1282_v41 = vmul.f32 %v3394_v19, %v1153_v13  ;;  %v3405_v16 = vld [vmem:[#allocation17_spill] sm:$0xff]  ;;  %v3407_v8 = vld [vmem:[#allocation20_spill] sm:$0xff] }
 0x150   : > { %v1024_v56 = vmax.f32 %v996_v30, %v1020_v40  ;;  %v2898_v4 = vadd.f32 %v3395_v39, %v1198_v20  ;;  %v1310_v37 = vmul.f32 %v3396_v9, %v1153_v13  ;;  %v1338_v44 = vmul.f32 %v3397_v10, %v1153_v13 }
 0x151   : > { %3393 = vst [vmem:[#allocation9_spill] sm:$0xff] %v2894_v6  ;;  %v1076_v62 = vmax.f32 %v1072_v12, 0.0  ;;  %v1104_v42 = vmax.f32 %v1100_v18, 0.0  ;;  %v1366_v53 = vmul.f32 %v3398_v25, %v1153_v13  ;;  %v1394_v57 = vmul.f32 %v2644_v61, %v1153_v13 }
 0x152   : > { %v1052_v15 = vmax.f32 %v1024_v56, %v1048_v43  ;;  %v1132_v0 = vmax.f32 %v1128_v60, 0.0  ;;  %v2905_v63 = vadd.f32 %v3399_v26, %v1226_v46  ;;  %v2908_v48 = vadd.f32 %v3400_v58, %v1254_v2  ;;  %v1167_v46 = vpop.permute.xlu1 %1166  ;;  %v1195_v56 = vpop.permute.xlu0 %1194  ;;  %v3418_v26 = vld [vmem:[#allocation33_spill] sm:$0xff] }
 0x153   : > { %v2910_v34 = vmax.f32 %v1107_v59, %v1131_v31  ;;  %v2913_v32 = vadd.f32 %v3402_v54, %v1282_v41  ;;  %v2916_v47 = vadd.f32 %v3403_v21, %v1310_v37  ;;  %v2919_v3 = vadd.f32 %v3404_v14, %v1338_v44  ;;  %v3419_v21 = vld [vmem:[#allocation53_spill] sm:$0xff] }
 0x154   : > { %v1080_v13 = vmax.f32 %v1052_v15, %v1076_v62  ;;  %v2922_v20 = vadd.f32 %v3405_v16, %v1366_v53  ;;  %v2925_v40 = vadd.f32 %v3407_v8, %v1394_v57  ;;  %v1209_v12 = vmul.f32 %v2815_v51, %v1183_v52  ;;  %v3421_v8 = vld [vmem:[#allocation55_spill] sm:$0xff] }
 0x155   : > { %3401 = vst [vmem:[#allocation10_spill] sm:$0xff] %v2910_v34  ;;  %v1237_v31 = vmul.f32 %v2822_v35, %v1183_v52  ;;  %v1265_v18 = vmul.f32 %v2828_v17, %v1183_v52  ;;  %v1293_v30 = vmul.f32 %v2833_v28, %v1183_v52  ;;  %v1321_v60 = vmul.f32 %v2837_v1, %v1183_v52  ;;  %v3423_v34 = vld [vmem:[#allocation57_spill] sm:$0xff] }
 0x156   : > { %3406 = vst [vmem:[#allocation31_spill] sm:$0xff] %v2922_v20  ;;  %3408 = vst [vmem:[#allocation25_spill] sm:$0xff] %v2925_v40  ;;  %v1108_v2 = vmax.f32 %v1080_v13, %v1104_v42  ;;  %v1349_v59 = vmul.f32 %v2841_v11, %v1183_v52  ;;  %v1377_v43 = vmul.f32 %v2846_v24, %v1183_v52  ;;  %v1175_v54 = vpop.permute.xlu1 %1174  ;;  %v3420_v13 = vld [vmem:[#allocation54_spill] sm:$0xff] }
 0x157   : > { %v1405_v41 = vmul.f32 %v2859_v7, %v1183_v52  ;;  %v2936_v39 = vmul.f32 %v3390_v38, %v1158_v5  ;;  %v2939_v37 = vmul.f32 %v3391_v22, %v1158_v5  ;;  %v2942_v44 = vmul.f32 %v3392_v33, %v1158_v5 }
 0x158   : > { %v2945_v62 = vmul.f32 %v3394_v19, %v1158_v5  ;;  %v2948_v42 = vmul.f32 %v3396_v9, %v1158_v5  ;;  %v2951_v53 = vmul.f32 %v3397_v10, %v1158_v5  ;;  %v2954_v52 = vmul.f32 %v3398_v25, %v1158_v5 }
 0x159   : > { %3409 = vst [vmem:[#allocation11_spill] sm:$0xff] %v2936_v39  ;;  %3410 = vst [vmem:[#allocation12_spill] sm:$0xff] %v2939_v37  ;;  %v2957_v38 = vmul.f32 %v2644_v61, %v1158_v5  ;;  %v2959_v22 = vmax.f32 %v1108_v2, %v1132_v0  ;;  %v1212_v33 = vmul.f32 %v2815_v51, %v1195_v56 }
 0x15a   : > { %3411 = vst [vmem:[#allocation37_spill] sm:$0xff] %v2942_v44  ;;  %3412 = vst [vmem:[#allocation13_spill] sm:$0xff] %v2945_v62  ;;  %v1240_v57 = vmul.f32 %v2822_v35, %v1195_v56  ;;  %v2964_v19 = vmul.f32 %v2828_v17, %v1195_v56  ;;  %v1201_v9 = vmul.f32 %v2733_v36, %v1167_v46  ;;  %v3426_v62 = vld [vmem:[#allocation60_spill] sm:$0xff] }
 0x15b   : > { %3413 = vst [vmem:[#allocation14_spill] sm:$0xff] %v2948_v42  ;;  %3414 = vst [vmem:[#allocation26_spill] sm:$0xff] %v2951_v53  ;;  %v1229_v10 = vmul.f32 %v2740_v45, %v1167_v46  ;;  %v1257_v15 = vmul.f32 %v2744_v29, %v1167_v46  ;;  %v1285_v25 = vmul.f32 %v2748_v49, %v1167_v46  ;;  %v3425_v53 = vld [vmem:[#allocation59_spill] sm:$0xff] }
 0x15c   : > { %3415 = vst [vmem:[#allocation28_spill] sm:$0xff] %v2954_v52  ;;  %3416 = vst [vmem:[#allocation41_spill] sm:$0xff] %v2957_v38  ;;  %v1313_v61 = vmul.f32 %v2755_v50, %v1167_v46  ;;  %v1341_v5 = vmul.f32 %v2762_v23, %v1167_v46  ;;  %v1369_v0 = vmul.f32 %v2767_v27, %v1167_v46  ;;  %v3424_v38 = vld [vmem:[#allocation58_spill] sm:$0xff] }
 0x15d   : > { %3417 = vst [vmem:[#allocation42_spill] sm:$0xff] %v2959_v22  ;;  %v1397_v58 = vmul.f32 %v3418_v26, %v1167_v46  ;;  %v1205_v14 = vadd.f32 %v1201_v9, %v3419_v21  ;;  %v1233_v16 = vadd.f32 %v1229_v10, %v3420_v13  ;;  %v1261_v2 = vadd.f32 %v1257_v15, %v3421_v8  ;;  %v3422_v22 = vld [vmem:[#allocation56_spill] sm:$0xff]  ;;  %v3428_v21 = vld [vmem:[#allocation62_spill] sm:$0xff] }
 0x15e   : > { %v1289_v6 = vadd.f32 %v1285_v25, %v3422_v22  ;;  %v1317_v55 = vadd.f32 %v1313_v61, %v3423_v34  ;;  %v1345_v52 = vadd.f32 %v1341_v5, %v3424_v38  ;;  %v1373_v42 = vadd.f32 %v1369_v0, %v3425_v53  ;;  %v3427_v0 = vld [vmem:[#allocation61_spill] sm:$0xff] }
 0x15f   : > { %v1401_v40 = vadd.f32 %v1397_v58, %v3426_v62  ;;  %v1213_v20 = vadd.f32 %v1209_v12, %v1205_v14  ;;  %v1241_v44 = vadd.f32 %v1237_v31, %v1233_v16  ;;  %v1269_v46 = vadd.f32 %v1265_v18, %v1261_v2  ;;  %v1179_v31 = vpop.permute.xlu1 %1178  ;;  %v3429_v16 = vld [vmem:[#allocation63_spill] sm:$0xff] }
 0x160   : > { %v1297_v37 = vadd.f32 %v1293_v30, %v1289_v6  ;;  %v1325_v39 = vadd.f32 %v1321_v60, %v1317_v55  ;;  %v2982_v9 = vadd.f32 %v1349_v59, %v1345_v52  ;;  %v2984_v10 = vadd.f32 %v1377_v43, %v1373_v42  ;;  %v3433_v43 = vld [vmem:[#allocation67_spill] sm:$0xff] }
 0x161   : > { %v2986_v15 = vadd.f32 %v1405_v41, %v1401_v40  ;;  %v1296_v22 = vmul.f32 %v2833_v28, %v1195_v56  ;;  %v1324_v34 = vmul.f32 %v2837_v1, %v1195_v56  ;;  %v1352_v38 = vmul.f32 %v2841_v11, %v1195_v56 }
 0x162   : > { %v1217_v53 = vmax.f32 %v1213_v20, 0.0  ;;  %v1380_v62 = vmul.f32 %v2846_v24, %v1195_v56  ;;  %v2993_v12 = vmul.f32 %v2859_v7, %v1195_v56  ;;  %v1245_v6 = vmax.f32 %v1241_v44, 0.0 }
 0x163   : > { %v1273_v55 = vmax.f32 %v1269_v46, 0.0  ;;  %v1301_v30 = vmax.f32 %v1297_v37, 0.0  ;;  %v1329_v60 = vmax.f32 %v1325_v39, 0.0  ;;  %v1357_v40 = vmax.f32 %v2982_v9, 0.0 }
 0x164   : > { %v1221_v18 = vmax.f32 %v1217_v53, 0.0  ;;  %v2999_v41 = vmul.f32 %v2733_v36, %v1175_v54  ;;  %v3002_v20 = vmul.f32 %v2740_v45, %v1175_v54  ;;  %v3005_v44 = vmul.f32 %v2744_v29, %v1175_v54 }
 0x165   : > { %v1204_v42 = vmul.f32 %v2733_v36, %v1179_v31  ;;  %v1232_v39 = vmul.f32 %v2740_v45, %v1179_v31  ;;  %v1260_v37 = vmul.f32 %v2744_v29, %v1179_v31  ;;  %v1288_v52 = vmul.f32 %v2748_v49, %v1179_v31  ;;  %v3430_v36 = vld [vmem:[#allocation64_spill] sm:$0xff]  ;;  %v3431_v45 = vld [vmem:[#allocation65_spill] sm:$0xff]  ;;  %v3432_v29 = vld [vmem:[#allocation66_spill] sm:$0xff] }
 0x166   : > { %v1249_v56 = vmax.f32 %v1221_v18, %v1245_v6  ;;  %v1316_v25 = vmul.f32 %v2755_v50, %v1179_v31  ;;  %v1344_v61 = vmul.f32 %v2762_v23, %v1179_v31  ;;  %v1372_v13 = vmul.f32 %v2767_v27, %v1179_v31 }
 0x167   : > { %v1208_v58 = vadd.f32 %v1204_v42, %v3427_v0  ;;  %v1236_v14 = vadd.f32 %v1232_v39, %v3428_v21  ;;  %v1264_v8 = vadd.f32 %v1260_v37, %v3429_v16  ;;  %v1292_v2 = vadd.f32 %v1288_v52, %v3430_v36  ;;  %v3434_v21 = vld [vmem:[#allocation68_spill] sm:$0xff] }
 0x168   : > { %v1277_v5 = vmax.f32 %v1249_v56, %v1273_v55  ;;  %v1320_v46 = vadd.f32 %v1316_v25, %v3431_v45  ;;  %v1348_v9 = vadd.f32 %v1344_v61, %v3432_v29  ;;  %v1376_v59 = vadd.f32 %v1372_v13, %v3433_v43  ;;  %v1187_v43 = vpop.permute.xlu1 %1186 }
 0x169   : > { %v1216_v6 = vadd.f32 %v1212_v33, %v1208_v58  ;;  %v1244_v18 = vadd.f32 %v1240_v57, %v1236_v14  ;;  %v3022_v55 = vmul.f32 %v2748_v49, %v1175_v54  ;;  %v3025_v56 = vmul.f32 %v2755_v50, %v1175_v54 }
 0x16a   : > { %v1305_v53 = vmax.f32 %v1277_v5, %v1301_v30  ;;  %v3028_v42 = vmul.f32 %v2762_v23, %v1175_v54  ;;  %v1272_v39 = vadd.f32 %v2964_v19, %v1264_v8  ;;  %v3032_v37 = vmul.f32 %v2767_v27, %v1175_v54 }
 0x16b   : > { %v3035_v30 = vmul.f32 %v3418_v26, %v1175_v54  ;;  %v1220_v33 = vmax.f32 %v1216_v6, 0.0  ;;  %v1300_v57 = vadd.f32 %v1296_v22, %v1292_v2  ;;  %v1248_v49 = vmax.f32 %v1244_v18, 0.0 }
 0x16c   : > { %v1333_v52 = vmax.f32 %v1305_v53, %v1329_v60  ;;  %v1328_v25 = vadd.f32 %v1324_v34, %v1320_v46  ;;  %v1356_v61 = vadd.f32 %v1352_v38, %v1348_v9  ;;  %v1276_v5 = vmax.f32 %v1272_v39, 0.0  ;;  %v1191_v29 = vpop.permute.xlu1 %1190  ;;  %v3435_v39 = vld [vmem:[#allocation11_spill] sm:$0xff] }
 0x16d   : > { %v1224_v50 = vmax.f32 %v1220_v33, 0.0  ;;  %v3037_v0 = vadd.f32 %v1380_v62, %v1376_v59  ;;  %v1400_v23 = vmul.f32 %v3418_v26, %v1179_v31  ;;  %v1210_v19 = vmul.f32 %v2815_v51, %v1187_v43 }
 0x16e   : > { %v1238_v27 = vmul.f32 %v2822_v35, %v1187_v43  ;;  %v1266_v54 = vmul.f32 %v2828_v17, %v1187_v43  ;;  %v1294_v58 = vmul.f32 %v2833_v28, %v1187_v43  ;;  %v1322_v34 = vmul.f32 %v2837_v1, %v1187_v43 }
 0x16f   : > { %v1252_v22 = vmax.f32 %v1224_v50, %v1248_v49  ;;  %v1404_v60 = vadd.f32 %v1400_v23, %v3434_v21  ;;  %v1350_v38 = vmul.f32 %v2841_v11, %v1187_v43  ;;  %v1304_v14 = vmax.f32 %v1300_v57, 0.0 }
 0x170   : > { %v1214_v62 = vadd.f32 %v1210_v19, %v2898_v4  ;;  %v1242_v26 = vadd.f32 %v1238_v27, %v2905_v63  ;;  %v1270_v31 = vadd.f32 %v1266_v54, %v2908_v48  ;;  %v3050_v59 = vmax.f32 %v1333_v52, %v1357_v40  ;;  %v3438_v27 = vld [vmem:[#allocation31_spill] sm:$0xff]  ;;  %v3439_v54 = vld [vmem:[#allocation25_spill] sm:$0xff] }
 0x171   : > { %v1280_v13 = vmax.f32 %v1252_v22, %v1276_v5  ;;  %v1332_v16 = vmax.f32 %v1328_v25, 0.0  ;;  %v1360_v8 = vmax.f32 %v1356_v61, 0.0  ;;  %v1388_v36 = vmax.f32 %v3037_v0, 0.0  ;;  %v3437_v5 = vld [vmem:[#allocation37_spill] sm:$0xff] }
 0x172   : > { %v1218_v2 = vmax.f32 %v1214_v62, 0.0  ;;  %v1298_v45 = vadd.f32 %v1294_v58, %v2913_v32  ;;  %v1326_v46 = vadd.f32 %v1322_v34, %v2916_v47  ;;  %v3056_v4 = vadd.f32 %v2993_v12, %v1404_v60  ;;  %v3436_v47 = vld [vmem:[#allocation12_spill] sm:$0xff] }
 0x173   : > { %v1308_v9 = vmax.f32 %v1280_v13, %v1304_v14  ;;  %v1246_v63 = vmax.f32 %v1242_v26, 0.0  ;;  %v1354_v48 = vadd.f32 %v1350_v38, %v2919_v3  ;;  %v1274_v53 = vmax.f32 %v1270_v31, 0.0  ;;  %v3441_v14 = vld [vmem:[#allocation14_spill] sm:$0xff] }
 0x174   : > { %v1222_v40 = vmax.f32 %v1218_v2, 0.0  ;;  %v1378_v6 = vmul.f32 %v2846_v24, %v1187_v43  ;;  %v1406_v18 = vmul.f32 %v2859_v7, %v1187_v43  ;;  %v1207_v33 = vadd.f32 %v2999_v41, %v3435_v39  ;;  %v3445_v39 = vld [vmem:[#allocation6_spill] sm:$0xff] }
 0x175   : > { %v1211_v32 = vmul.f32 %v2815_v51, %v1191_v29  ;;  %v1235_v57 = vadd.f32 %v3002_v20, %v3436_v47  ;;  %v1239_v12 = vmul.f32 %v2822_v35, %v1191_v29  ;;  %v1336_v52 = vmax.f32 %v1308_v9, %v1332_v16  ;;  %v3440_v35 = vld [vmem:[#allocation13_spill] sm:$0xff] }
 0x176   : > { %v1250_v49 = vmax.f32 %v1222_v40, %v1246_v63  ;;  %v1302_v25 = vmax.f32 %v1298_v45, 0.0  ;;  %v1330_v3 = vmax.f32 %v1326_v46, 0.0  ;;  %v1263_v23 = vadd.f32 %v3005_v44, %v3437_v5  ;;  %v3442_v46 = vld [vmem:[#allocation26_spill] sm:$0xff]  ;;  %v3443_v40 = vld [vmem:[#allocation28_spill] sm:$0xff] }
 0x177   : > { %v1215_v61 = vadd.f32 %v1211_v32, %v1207_v33  ;;  %v1243_v50 = vadd.f32 %v1239_v12, %v1235_v57  ;;  %v1267_v43 = vmul.f32 %v2828_v17, %v1191_v29  ;;  %v1358_v41 = vmax.f32 %v1354_v48, 0.0  ;;  %v3447_v32 = vld [vmem:[#allocation24_spill] sm:$0xff]  ;;  %v3452_v5 = vld [vmem:[#allocation34_spill] sm:$0xff] }
 0x178   : > { %v1278_v19 = vmax.f32 %v1250_v49, %v1274_v53  ;;  %v1382_v51 = vadd.f32 %v1378_v6, %v3438_v27  ;;  %v1410_v58 = vadd.f32 %v1406_v18, %v3439_v54  ;;  %v1291_v21 = vadd.f32 %v3022_v55, %v3440_v35  ;;  %v3444_v18 = vld [vmem:[#allocation44_spill] sm:$0xff]  ;;  %v3449_v49 = vld [vmem:[#allocation39_spill] sm:$0xff]  ;;  %v3456_v35 = vld [vmem:[#allocation9_spill] sm:$0xff] }
 0x179   : > { %v1219_v20 = vmax.f32 %v1215_v61, 0.0  ;;  %v1271_v22 = vadd.f32 %v1267_v43, %v1263_v23  ;;  %v1295_v60 = vmul.f32 %v2833_v28, %v1191_v29  ;;  %v1364_v34 = vmax.f32 %v1336_v52, %v1360_v8 }
 0x17a   : > { %v1306_v38 = vmax.f32 %v1278_v19, %v1302_v25  ;;  %v1319_v44 = vadd.f32 %v3025_v56, %v3441_v14  ;;  %v1323_v17 = vmul.f32 %v2837_v1, %v1191_v29  ;;  %v1247_v26 = vmax.f32 %v1243_v50, 0.0  ;;  %v3450_v25 = vld [vmem:[#allocation21_spill] sm:$0xff]  ;;  %v3454_v19 = vld [vmem:[#allocation10_spill] sm:$0xff] }
 0x17b   : > { %v1223_v62 = vmax.f32 %v1219_v20, 0.0  ;;  %v1299_v31 = vadd.f32 %v1295_v60, %v1291_v21  ;;  %v1351_v13 = vmul.f32 %v2841_v11, %v1191_v29  ;;  %v1386_v2 = vmax.f32 %v1382_v51, 0.0  ;;  %v3451_v50 = vld [vmem:[#allocation45_spill] sm:$0xff]  ;;  %v3457_v60 = vld [vmem:[#allocation42_spill] sm:$0xff] }
 0x17c   : > { %v1334_v16 = vmax.f32 %v1306_v38, %v1330_v3  ;;  %v1327_v45 = vadd.f32 %v1323_v17, %v1319_v44  ;;  %v1347_v55 = vadd.f32 %v3028_v42, %v3442_v46  ;;  %v1414_v28 = vmax.f32 %v1410_v58, 0.0  ;;  %v3446_v42 = vld [vmem:[#allocation27_spill] sm:$0xff] }
 0x17d   : > { %v1251_v8 = vmax.f32 %v1223_v62, %v1247_v26  ;;  %v1275_v9 = vmax.f32 %v1271_v22, 0.0  ;;  %v1379_v63 = vmul.f32 %v2846_v24, %v1191_v29  ;;  %v1303_v48 = vmax.f32 %v1299_v31, 0.0  ;;  %v3448_v24 = vld [vmem:[#allocation41_spill] sm:$0xff] }
 0x17e   : > { %v1362_v56 = vmax.f32 %v1334_v16, %v1358_v41  ;;  %v1355_v1 = vadd.f32 %v1351_v13, %v1347_v55  ;;  %v1375_v53 = vadd.f32 %v3032_v37, %v3443_v40  ;;  %v1407_v11 = vmul.f32 %v2859_v7, %v1191_v29  ;;  %v3453_v29 = vld [vmem:[#allocation8_spill] sm:$0xff] }
 0x17f   : > { %v1279_v6 = vmax.f32 %v1251_v8, %v1275_v9  ;;  %v853_v33 = vadd.f32 %v3445_v39, %v3444_v18  ;;  %v854_v47 = vadd.f32 %v3447_v32, %v3446_v42  ;;  %v1331_v12 = vmax.f32 %v1327_v45, 0.0 }
 0x180   : > { %v1390_v57 = vmax.f32 %v1362_v56, %v1386_v2  ;;  %v1403_v52 = vadd.f32 %v3035_v30, %v3448_v24  ;;  %v855_v3 = vadd.f32 %v3450_v25, %v3449_v49  ;;  %v1383_v37 = vadd.f32 %v1379_v63, %v1375_v53 }
 0x181   : > { %v1307_v61 = vmax.f32 %v1279_v6, %v1303_v48  ;;  %v856_v7 = vadd.f32 %v3452_v5, %v3451_v50  ;;  %v1138_v23 = vadd.f32 %v3453_v29, %v854_v47  ;;  %v1416_v43 = vmax.f32 %v3056_v4, 0.0 }
 0x182   : > { %v1139_v41 = vadd.f32 %v3454_v19, %v855_v3  ;;  %v3455_v27 = vmax.f32 %v2984_v10, 0.0  ;;  %v1392_v51 = vmax.f32 %v1364_v34, %v1388_v36  ;;  %v1359_v58 = vmax.f32 %v1355_v1, 0.0 }
 0x183   : > { %v1335_v54 = vmax.f32 %v1307_v61, %v1331_v12  ;;  %v1411_v20 = vadd.f32 %v1407_v11, %v1403_v52  ;;  %v1418_v22 = vmax.f32 %v1390_v57, %v1414_v28  ;;  %v1137_v21 = vadd.f32 %v3456_v35, %v853_v33 }
 0x184   : > { %v1389_v30 = vmax.f32 %v3050_v59, %v3455_v27  ;;  %v1140_v4 = vadd.f32 %v3457_v60, %v856_v7  ;;  %v3458_v38 = vmax.f32 %v2986_v15, 0.0  ;;  %v1420_v44 = vmax.f32 %v1392_v51, %v1416_v43 }
 0x185   : > { %v1363_v17 = vmax.f32 %v1335_v54, %v1359_v58  ;;  %v1387_v10 = vmax.f32 %v1383_v37, 0.0  ;;  %v1422_v62 = vadd.f32 %v1418_v22, %v1138_v23  ;;  %v1415_v34 = vmax.f32 %v1411_v20, 0.0 }
 0x186   : > { %v1417_v14 = vmax.f32 %v1389_v30, %v3458_v38  ;;  %v1424_v0 = vadd.f32 %v1420_v44, %v1140_v4 }
 0x187   : > { %v1391_v36 = vmax.f32 %v1363_v17, %v1387_v10  ;;  %1426 = vst [vmem:[%s158_s26 + $0x8] sm:$0xff] %v1422_v62 }
 0x188   : > { %v1421_v59 = vadd.f32 %v1417_v14, %v1137_v21  ;;  %1428 = vst [vmem:[%s158_s26 + $0x18] sm:$0xff] %v1424_v0 }
 0x189   : > { %v1419_v26 = vmax.f32 %v1391_v36, %v1415_v34 }
 0x18a   : > { %1425 = vst [vmem:[%s158_s26] sm:$0xff] %v1421_v59 }
 0x18b   : > { %v1423_v15 = vadd.f32 %v1419_v26, %v1139_v41 }
 0x18d   : > { %1427 = vst [vmem:[%s158_s26 + $0x10] sm:$0xff] %v1423_v15 }
 0x18e   : > { %1688 = shalt.err (!%p1685_p5)
}
 0x18f   : > { %s1689_s8 = scalar_lea.hbm %s3114_s3, 512  ;;  %s1693_s18 = scalar_lea.hbm %s3168_s2, 1024 }
 0x190   : > { %p1690_p6 = scmp.ne.s32.totalorder %s3114_s3, %s1689_s8  ;;  %p1694_p10 = scmp.lt.u32.totalorder %s3114_s3, %s3168_s2 }
 0x191   : > { %p1695_p11 = scmp.lt.u32.totalorder %s1693_s18, %s1689_s8  ;;  %p1697_p13 = scmp.lt.u32.totalorder %s1689_s8, %s3114_s3 }
 0x192   : > { %p1691_p7 = pnand %p1690_p6, %p1816_p4 }
 0x193   : > { %p1696_p12 = por %p1695_p11, %p1694_p10 }
 0x194   : > { %p1692_p9 = pneg %p1691_p7 }
 0x195   : > { %p1698_p0 = por %p1697_p13, %p1696_p12 }
 0x197   : > { %p1699_p1 = pnand %p1698_p0, %p1692_p9 }
 0x199   : > { %1702 = shalt.err (!%p1699_p1)
}
 0x19a   : > { %s1759_s24 = smov 128   ;;  %s1760_s25 = smov 8  }
 0x19b   : > { %1576 = dma.vmem_to_hbm [thread:$0]  (%p1816_p4), %s3116_s28, 512, %s3114_s3, %s3120_s4, %s1759_s24, %s1759_s24, %s1760_s25  }
 0x19c PF: > { %p1582_p2 = scmp.ge.s32.totalorder %s1753_s14, 2  ;;  %s1459_s26 = sand.u32 1, %s1733_s9  }
 0x19d   : > { %s1460_s27 = scalar_lea.sflag [#allocation3], %s1459_s26 }
 0x19e   : > { %p1579_p3 = pnand %p1582_p2, %p1823_p8 }
 0x1a0   : > { %1728 = dma.done.wait (!%p1579_p3), %s1460_s27, 512  }
 0x1a1   : > { %1730 = vsyncadd (!%p1579_p3), %s1460_s27, 4294966784  ;;  %s15_s14 = sadd.s32 1, %s1753_s14   ;;  %s3459_s9 = smov %s1737_s10 }
 0x1a2   : > { %p12_p5 = scmp.ge.s32.totalorder %s15_s14, 4   ;;  %s3460_s10 = smov %s1741_s11 }
 0x1a3   : > { %s3461_s11 = smov %s1829_s22  ;;  %s3462_s12 = smov %s1749_s13 }
 0x1a4   : > { %s3463_s13 = smov %s3465_s17  ;;  %14 = sbr.rel (!%p12_p5) target bundleno = 4 (0x4), region = 65 }
 0x1ab   :  { %1465 = vsyncpa [#allocation3], 1 }
 0x1ac   :  { %1467 = vsyncpa [#allocation3 + $0x1], 1 }

</bundles_post_ra>
